<compile_context>
chip_gen: v7x
topology: tpu7x:2x2x1
jax: 0.10.0
libtpu: 0.0.40
codegen_flags: <defaults>
</compile_context>

<pallas_src>
import functools

import jax
import jax.numpy as jnp
from jax.experimental import pallas as pl
from jax.experimental.pallas import tpu as pltpu

HID = 32                 # LSTM hidden size
NUM_LAYERS = 2           # LSTM layers (unrolled inside the kernel)
C1, K1, S1 = 8, 8, 4     # conv1: Conv2d(1, 8, kernel=8, stride=4)
C2, K2, S2 = 16, 4, 2    # conv2: Conv2d(8, 16, kernel=4, stride=2)
FC1 = 256                # frame_fc1 output width


# --------------------------------------------------------------------------
# The single fused Pallas kernel
# --------------------------------------------------------------------------

def _fused_kernel(p1_ref, pose_ref, h0_ref, c0_ref,
                  w1_ref, b1_ref, w2_ref, b2_ref,
                  fc1w_ref, fc1b_ref, fc2w_ref, fc2b_ref,
                  posew_ref, poseb_ref,
                  wih0a_ref, wih0b_ref, bl0_ref,
                  whh0_ref, wih1_ref, whh1_ref, bl1_ref,
                  whead_ref, bhead_ref,
                  out_ref, hout_ref, cout_ref,
                  xg_s, h_st, c_st,
                  *, T, N, A, OH2, OW2):
    t = pl.program_id(0)
    TN = T * N

    # ---------------- t == 0: feature path for ALL timesteps ----------------
    @pl.when(t == 0)
    def _features():
        h_st[...] = h0_ref[...]
        c_st[...] = c0_ref[...]

        # conv1 as ONE block-diagonal matmul; rows = (oh1, img), cols = (ow1, c1)
        f1 = jnp.dot(p1_ref[...], w1_ref[...],
                     preferred_element_type=jnp.float32)
        f1 = jnp.maximum(f1 + b1_ref[...], 0.0)           # (OH1*TN, OW1*C1)

        # conv2 (static slices of f1) fused with the NCHW flatten + fc1:
        #   o1 += relu(conv2 at spatial position pos) @ fc1_block[pos]
        o1 = jnp.zeros((TN, FC1), jnp.float32)
        for pos in range(OH2 * OW2):
            oh2, ow2 = pos // OW2, pos % OW2
            acc = jnp.zeros((TN, C2), jnp.float32)
            for kh in range(K2):
                r0 = (S2 * oh2 + kh) * TN
                cs = (S2 * ow2) * C1
                blk = f1[r0:r0 + TN, cs:cs + K2 * C1]      # (TN, K2*C1)
                acc = acc + jnp.dot(blk, w2_ref[kh],
                                    preferred_element_type=jnp.float32)
            g = jnp.maximum(acc + b2_ref[...], 0.0)        # (TN, C2)
            o1 = o1 + jnp.dot(g, fc1w_ref[pos],
                              preferred_element_type=jnp.float32)
        o1 = jnp.maximum(o1 + fc1b_ref[...], 0.0)                      # (TN, 256)
        o1 = jnp.maximum(
            jnp.dot(o1, fc2w_ref[...], preferred_element_type=jnp.float32)
            + fc2b_ref[...], 0.0)                                      # (TN, 32)
        o2 = jnp.maximum(
            jnp.dot(pose_ref[...], posew_ref[...],
                    preferred_element_type=jnp.float32)
            + poseb_ref[...], 0.0)                                     # (TN, 32)

        # Hoisted LSTM layer-0 input projection for all T*N rows at once.
        # concat(o1, o2) @ Wih0^T is split into two matmuls -> no concat needed.
        xg_s[...] = (
            jnp.dot(o1, wih0a_ref[...], preferred_element_type=jnp.float32)
            + jnp.dot(o2, wih0b_ref[...], preferred_element_type=jnp.float32)
            + bl0_ref[...])                                            # (TN, 4H)

    # ---------------- every step: 2-layer LSTM cell + fused heads -----------
    xg_t = xg_s[pl.ds(t * N, N), :]                                    # (N, 4H)

    # layer 0 (input projection already precomputed in xg_t)
    h0p = h_st[0]
    c0p = c_st[0]
    g0 = xg_t + jnp.dot(h0p, whh0_ref[...], preferred_element_type=jnp.float32)
    # PyTorch gate order: i, f, g, o
    c0n = (jax.nn.sigmoid(g0[:, HID:2 * HID]) * c0p
           + jax.nn.sigmoid(g0[:, 0:HID]) * jnp.tanh(g0[:, 2 * HID:3 * HID]))
    h0n = jax.nn.sigmoid(g0[:, 3 * HID:4 * HID]) * jnp.tanh(c0n)
    h_st[0] = h0n
    c_st[0] = c0n

    # layer 1
    h1p = h_st[1]
    c1p = c_st[1]
    g1 = (jnp.dot(h0n, wih1_ref[...], preferred_element_type=jnp.float32)
          + jnp.dot(h1p, whh1_ref[...], preferred_element_type=jnp.float32)
          + bl1_ref[...])
    c1n = (jax.nn.sigmoid(g1[:, HID:2 * HID]) * c1p
           + jax.nn.sigmoid(g1[:, 0:HID]) * jnp.tanh(g1[:, 2 * HID:3 * HID]))
    h1n = jax.nn.sigmoid(g1[:, 3 * HID:4 * HID]) * jnp.tanh(c1n)
    h_st[1] = h1n
    c_st[1] = c1n

    # fused value / policy heads (+ softmax over the action dim)
    hv = (jnp.dot(h1n, whead_ref[...], preferred_element_type=jnp.float32)
          + bhead_ref[...])                                            # (N, 1+A)
    logits = hv[:, 1:1 + A]
    m = jnp.max(logits, axis=-1, keepdims=True)
    e = jnp.exp(logits - m)
    probs = e / jnp.sum(e, axis=-1, keepdims=True)   # exact divide (ref-exact)
    out_ref[0, :, 0:1] = hv[:, 0:1]
    out_ref[0, :, 1:1 + A] = probs

    @pl.when(t == T - 1)
    def _finalize():
        hout_ref[...] = h_st[...]
        cout_ref[...] = c_st[...]


# --------------------------------------------------------------------------
# Wrapper: im2col gather + trace-time weight repacking + one pallas_call
# --------------------------------------------------------------------------

def ppo_lstm2_forward(params, frame, robot_pose, h_in, c_in):
    T, N, C, H, W = frame.shape
    assert C == 1
    TN = T * N
    L = h_in.shape[0]
    assert L == NUM_LAYERS
    A = params["pol_w"].shape[0]

    OH1 = (H - K1) // S1 + 1
    OW1 = (W - K1) // S1 + 1
    OH2 = (OH1 - K2) // S2 + 1
    OW2 = (OW1 - K2) // S2 + 1

    # ---- conv1 im2col patch gather (the only non-Pallas glue op) -----------
    # TODO(synk): the strided window gather itself stays in XLA; expressing it
    # with static BlockSpec slices would need strided in-kernel loads.
    # p1[oh1*TN + img, ow1*K1*K1 + ki*K1 + kj] = frame[img, oh1*S1+ki, ow1*S1+kj]
    x = frame.reshape(TN, H, W)
    img_idx = jnp.arange(TN).reshape(1, TN, 1, 1, 1)
    row_idx = ((jnp.arange(OH1) * S1).reshape(OH1, 1, 1, 1, 1)
               + jnp.arange(K1).reshape(1, 1, 1, K1, 1))
    col_idx = ((jnp.arange(OW1) * S1).reshape(1, 1, OW1, 1, 1)
               + jnp.arange(K1).reshape(1, 1, 1, 1, K1))
    p1 = x[img_idx, row_idx, col_idx].reshape(OH1 * TN, OW1 * K1 * K1)

    pose = robot_pose.reshape(TN, robot_pose.shape[-1])

    # ---- trace-time weight repacking (constant-folded under jit) -----------
    # conv1 as a block-diagonal matmul over the ow1 axis
    w1t = params["conv1_w"].reshape(C1, K1 * K1).T                  # (64, 8)
    w1big = jnp.kron(jnp.eye(OW1, dtype=jnp.float32), w1t)          # (OW1*64, OW1*8)
    b1big = jnp.tile(params["conv1_b"], OW1).reshape(1, OW1 * C1)
    # conv2 weights per kernel-row, columns ordered (kw, cin) to match f1 slices
    w2perm = params["conv2_w"].transpose(2, 3, 1, 0).reshape(K2, K2 * C1, C2)
    b2 = params["conv2_b"].reshape(1, C2)
    # fc1 split into blocks indexed by conv2 spatial position; this folds the
    # torch NCHW .reshape(B, -1) permutation into the weights (no runtime perm).
    fc1blk = params["fc1_w"].T.reshape(C2, OH2 * OW2, FC1).transpose(1, 0, 2)
    bfc1 = params["fc1_b"].reshape(1, FC1)
    fc2wt = params["fc2_w"].T                                       # (256, 32)
    bfc2 = params["fc2_b"].reshape(1, HID)
    posewt = params["pose_fc1_w"].T                                 # (2, 32)
    bpose = params["pose_fc1_b"].reshape(1, HID)
    # LSTM weights transposed to (in, 4H); Wih0 split so concat(o1,o2) is never built
    wih0t = params["lstm_wih0"].T                                   # (64, 4H)
    wih0a, wih0b = wih0t[:HID], wih0t[HID:]
    bl0 = (params["lstm_bih0"] + params["lstm_bhh0"]).reshape(1, 4 * HID)
    whh0t = params["lstm_whh0"].T
    wih1t = params["lstm_wih1"].T
    whh1t = params["lstm_whh1"].T
    bl1 = (params["lstm_bih1"] + params["lstm_bhh1"]).reshape(1, 4 * HID)
    # value + policy heads fused into a single (HID, 1+A) matmul
    whead = jnp.concatenate([params["val_w"].T, params["pol_w"].T], axis=1)
    bhead = jnp.concatenate([params["val_b"], params["pol_b"]]).reshape(1, 1 + A)

    inputs = (p1, pose, h_in, c_in,
              w1big, b1big, w2perm, b2,
              fc1blk, bfc1, fc2wt, bfc2, posewt, bpose,
              wih0a, wih0b, bl0, whh0t, wih1t, whh1t, bl1,
              whead, bhead)

    def const_spec(a):
        # Full-array block with a constant index map: DMA'd once, then resident
        # in VMEM for all grid steps.  (Single-buffering via pl.Buffered(1)
        # would halve their VMEM footprint; skipped -- total is ~1 MiB.)
        return pl.BlockSpec(a.shape, lambda t, z=(0,) * a.ndim: z)

    kernel = functools.partial(_fused_kernel, T=T, N=N, A=A, OH2=OH2, OW2=OW2)

    valpol, h_out, c_out = pl.pallas_call(
        kernel,
        grid=(T,),
        in_specs=[const_spec(a) for a in inputs],
        out_specs=(
            pl.BlockSpec((1, N, 1 + A), lambda t: (t, 0, 0)),
            pl.BlockSpec((L, N, HID), lambda t: (0, 0, 0)),
            pl.BlockSpec((L, N, HID), lambda t: (0, 0, 0)),
        ),
        out_shape=(
            jax.ShapeDtypeStruct((T, N, 1 + A), jnp.float32),
            jax.ShapeDtypeStruct((L, N, HID), jnp.float32),
            jax.ShapeDtypeStruct((L, N, HID), jnp.float32),
        ),
        scratch_shapes=[
            pltpu.VMEM((TN, 4 * HID), jnp.float32),   # hoisted layer-0 gates
            pltpu.VMEM((L, N, HID), jnp.float32),     # h state
            pltpu.VMEM((L, N, HID), jnp.float32),     # c state
        ],
        compiler_params=pltpu.CompilerParams(
            dimension_semantics=("arbitrary",)),      # time axis is sequential
    )(*inputs)

    return valpol[:, :, 0:1], valpol[:, :, 1:], h_out, c_out


# --------------------------------------------------------------------------
# Parameters (deterministic synthetic init, PyTorch weight layouts)
# --------------------------------------------------------------------------

def init_params(key, action_size):
    ks = jax.random.split(key, 22)

    def w(k, shape, scale=0.1):
        return jax.random.normal(k, shape, jnp.float32) * scale

    p = {}
    p["conv1_w"] = w(ks[0], (8, 1, 8, 8))        # Conv2d(1, 8, k=8, s=4)
    p["conv1_b"] = w(ks[1], (8,))
    p["conv2_w"] = w(ks[2], (16, 8, 4, 4))       # Conv2d(8, 16, k=4, s=2)
    p["conv2_b"] = w(ks[3], (16,))
    p["fc1_w"] = w(ks[4], (256, 144))            # Linear(144, 256)
    p["fc1_b"] = w(ks[5], (256,))
    p["fc2_w"] = w(ks[6], (32, 256))             # Linear(256, 32)
    p["fc2_b"] = w(ks[7], (32,))
    p["pose_fc1_w"] = w(ks[8], (32, 2))          # Linear(2, 32)
    p["pose_fc1_b"] = w(ks[9], (32,))
    # LSTM(input=64, hidden=32, num_layers=2); torch layout (4H, in), (4H, H)
    p["lstm_wih0"] = w(ks[10], (4 * HID, 64))
    p["lstm_whh0"] = w(ks[11], (4 * HID, HID))
    p["lstm_bih0"] = w(ks[12], (4 * HID,))
    p["lstm_bhh0"] = w(ks[13], (4 * HID,))
    p["lstm_wih1"] = w(ks[14], (4 * HID, HID))
    p["lstm_whh1"] = w(ks[15], (4 * HID, HID))
    p["lstm_bih1"] = w(ks[16], (4 * HID,))
    p["lstm_bhh1"] = w(ks[17], (4 * HID,))
    p["val_w"] = w(ks[18], (1, HID))             # Linear(32, 1)
    p["val_b"] = w(ks[19], (1,))
    p["pol_w"] = w(ks[20], (action_size, HID))   # Linear(32, action_size)
    p["pol_b"] = w(ks[21], (action_size,))
    return p


# --------------------------------------------------------------------------
# Pure-JAX (XLA) reference of the PyTorch module, for numerical validation
# --------------------------------------------------------------------------

def ppo_lstm2_reference(params, frame, robot_pose, h_in, c_in):
    T, N, C, H, W = frame.shape
    TN = T * N
    x = frame.reshape(TN, C, H, W)
    dn = ("NCHW", "OIHW", "NCHW")
    y = jax.lax.conv_general_dilated(x, params["conv1_w"], (S1, S1), "VALID",
                                     dimension_numbers=dn)
    y = jax.nn.relu(y + params["conv1_b"].reshape(1, C1, 1, 1))
    y = jax.lax.conv_general_dilated(y, params["conv2_w"], (S2, S2), "VALID",
                                     dimension_numbers=dn)
    y = jax.nn.relu(y + params["conv2_b"].reshape(1, C2, 1, 1))
    y = y.reshape(TN, -1)
    y = jax.nn.relu(y @ params["fc1_w"].T + params["fc1_b"])
    y = jax.nn.relu(y @ params["fc2_w"].T + params["fc2_b"])
    p = robot_pose.reshape(TN, -1)
    p = jax.nn.relu(p @ params["pose_fc1_w"].T + params["pose_fc1_b"])
    seq = jnp.concatenate([y, p], axis=1).reshape(T, N, 2 * HID)

    def step(carry, x_t):
        h, c = carry
        g0 = (x_t @ params["lstm_wih0"].T + h[0] @ params["lstm_whh0"].T
              + params["lstm_bih0"] + params["lstm_bhh0"])
        i0, f0, gg0, o0 = jnp.split(g0, 4, axis=1)
        c0 = jax.nn.sigmoid(f0) * c[0] + jax.nn.sigmoid(i0) * jnp.tanh(gg0)
        h0 = jax.nn.sigmoid(o0) * jnp.tanh(c0)
        g1 = (h0 @ params["lstm_wih1"].T + h[1] @ params["lstm_whh1"].T
              + params["lstm_bih1"] + params["lstm_bhh1"])
        i1, f1, gg1, o1 = jnp.split(g1, 4, axis=1)
        c1 = jax.nn.sigmoid(f1) * c[1] + jax.nn.sigmoid(i1) * jnp.tanh(gg1)
        h1 = jax.nn.sigmoid(o1) * jnp.tanh(c1)
        return (jnp.stack([h0, h1]), jnp.stack([c0, c1])), h1

    (h_out, c_out), outs = jax.lax.scan(step, (h_in, c_in), seq)
    val = outs @ params["val_w"].T + params["val_b"]
    pol = jax.nn.softmax(outs @ params["pol_w"].T + params["pol_b"], axis=2)
    return val, pol, h_out, c_out


# --------------------------------------------------------------------------

if __name__ == "__main__":
    T, N = 4, 2               # (seq, batch)
    action_size = 5
    H = W = 36                # gives 16*3*3 = 144 flattened conv features

    key = jax.random.PRNGKey(0)
    k_frame, k_pose, k_h, k_c = jax.random.split(key, 4)
    frame = jax.random.normal(k_frame, (T, N, 1, H, W), jnp.float32)
    robot_pose = jax.random.normal(k_pose, (T, N, 2), jnp.float32)
    h_in = 0.1 * jax.random.normal(k_h, (NUM_LAYERS, N, HID), jnp.float32)
    c_in = 0.1 * jax.random.normal(k_c, (NUM_LAYERS, N, HID), jnp.float32)

    params = init_params(jax.random.PRNGKey(42), action_size)

    fwd = jax.jit(functools.partial(ppo_lstm2_forward, params))
    val, pol, h_out, c_out = fwd(frame, robot_pose, h_in, c_in)
    jax.block_until_ready((val, pol, h_out, c_out))

    # shape / sanity checks
    assert val.shape == (T, N, 1)
    assert pol.shape == (T, N, action_size)
    assert h_out.shape == (NUM_LAYERS, N, HID)
    assert c_out.shape == (NUM_LAYERS, N, HID)
    assert bool(jnp.all(jnp.isfinite(val)))
    assert bool(jnp.all(jnp.isfinite(pol)))
    assert bool(jnp.allclose(jnp.sum(pol, axis=2), 1.0, atol=1e-5))

    # numerical check against a pure-JAX reference of the torch module
    ref = jax.jit(functools.partial(ppo_lstm2_reference, params))
    val_r, pol_r, h_r, c_r = ref(frame, robot_pose, h_in, c_in)
    jax.block_until_ready((val_r, pol_r, h_r, c_r))
    assert bool(jnp.allclose(val, val_r, atol=1e-3, rtol=1e-3))
    assert bool(jnp.allclose(pol, pol_r, atol=1e-3, rtol=1e-3))
    assert bool(jnp.allclose(h_out, h_r, atol=1e-3, rtol=1e-3))
    assert bool(jnp.allclose(c_out, c_r, atol=1e-3, rtol=1e-3))

    print("KERNEL_OK")
</pallas_src>

<mosaic_0001>
module attributes {stable_mosaic.version = 11 : i64} {
  func.func @_fused_kernel(%arg0: i32, %arg1: memref<64x512xf32, #tpu.memory_space<vmem>>, %arg2: memref<8x2xf32, #tpu.memory_space<vmem>>, %arg3: memref<2x2x32xf32, #tpu.memory_space<vmem>>, %arg4: memref<2x2x32xf32, #tpu.memory_space<vmem>>, %arg5: memref<512x64xf32, #tpu.memory_space<vmem>>, %arg6: memref<1x64xf32, #tpu.memory_space<vmem>>, %arg7: memref<4x32x16xf32, #tpu.memory_space<vmem>>, %arg8: memref<1x16xf32, #tpu.memory_space<vmem>>, %arg9: memref<9x16x256xf32, #tpu.memory_space<vmem>>, %arg10: memref<1x256xf32, #tpu.memory_space<vmem>>, %arg11: memref<256x32xf32, #tpu.memory_space<vmem>>, %arg12: memref<1x32xf32, #tpu.memory_space<vmem>>, %arg13: memref<2x32xf32, #tpu.memory_space<vmem>>, %arg14: memref<1x32xf32, #tpu.memory_space<vmem>>, %arg15: memref<32x128xf32, #tpu.memory_space<vmem>>, %arg16: memref<32x128xf32, #tpu.memory_space<vmem>>, %arg17: memref<1x128xf32, #tpu.memory_space<vmem>>, %arg18: memref<32x128xf32, #tpu.memory_space<vmem>>, %arg19: memref<32x128xf32, #tpu.memory_space<vmem>>, %arg20: memref<32x128xf32, #tpu.memory_space<vmem>>, %arg21: memref<1x128xf32, #tpu.memory_space<vmem>>, %arg22: memref<32x6xf32, #tpu.memory_space<vmem>>, %arg23: memref<1x6xf32, #tpu.memory_space<vmem>>, %arg24: memref<1x2x6xf32, #tpu.memory_space<vmem>>, %arg25: memref<2x2x32xf32, #tpu.memory_space<vmem>>, %arg26: memref<2x2x32xf32, #tpu.memory_space<vmem>>, %arg27: memref<8x128xf32, #tpu.memory_space<vmem>>, %arg28: memref<2x2x32xf32, #tpu.memory_space<vmem>>, %arg29: memref<2x2x32xf32, #tpu.memory_space<vmem>>) attributes {dimension_semantics = [#tpu.dimension_semantics<arbitrary>], iteration_bounds = array<i64: 4>, scalar_prefetch = 0 : i64, scratch_operands = 3 : i64, tpu.core_type = #tpu.core_type<tc>, window_params = [{pipeline_mode = #tpu.pipeline_mode<synchronous>, transform_indices = @transform_0, window_bounds = array<i64: 64, 512>}, {pipeline_mode = #tpu.pipeline_mode<synchronous>, transform_indices = @transform_1, window_bounds = array<i64: 8, 2>}, {pipeline_mode = #tpu.pipeline_mode<synchronous>, transform_indices = @transform_2, window_bounds = array<i64: 2, 2, 32>}, {pipeline_mode = #tpu.pipeline_mode<synchronous>, transform_indices = @transform_3, window_bounds = array<i64: 2, 2, 32>}, {pipeline_mode = #tpu.pipeline_mode<synchronous>, transform_indices = @transform_4, window_bounds = array<i64: 512, 64>}, {pipeline_mode = #tpu.pipeline_mode<synchronous>, transform_indices = @transform_5, window_bounds = array<i64: 1, 64>}, {pipeline_mode = #tpu.pipeline_mode<synchronous>, transform_indices = @transform_6, window_bounds = array<i64: 4, 32, 16>}, {pipeline_mode = #tpu.pipeline_mode<synchronous>, transform_indices = @transform_7, window_bounds = array<i64: 1, 16>}, {pipeline_mode = #tpu.pipeline_mode<synchronous>, transform_indices = @transform_8, window_bounds = array<i64: 9, 16, 256>}, {pipeline_mode = #tpu.pipeline_mode<synchronous>, transform_indices = @transform_9, window_bounds = array<i64: 1, 256>}, {pipeline_mode = #tpu.pipeline_mode<synchronous>, transform_indices = @transform_10, window_bounds = array<i64: 256, 32>}, {pipeline_mode = #tpu.pipeline_mode<synchronous>, transform_indices = @transform_11, window_bounds = array<i64: 1, 32>}, {pipeline_mode = #tpu.pipeline_mode<synchronous>, transform_indices = @transform_12, window_bounds = array<i64: 2, 32>}, {pipeline_mode = #tpu.pipeline_mode<synchronous>, transform_indices = @transform_13, window_bounds = array<i64: 1, 32>}, {pipeline_mode = #tpu.pipeline_mode<synchronous>, transform_indices = @transform_14, window_bounds = array<i64: 32, 128>}, {pipeline_mode = #tpu.pipeline_mode<synchronous>, transform_indices = @transform_15, window_bounds = array<i64: 32, 128>}, {pipeline_mode = #tpu.pipeline_mode<synchronous>, transform_indices = @transform_16, window_bounds = array<i64: 1, 128>}, {pipeline_mode = #tpu.pipeline_mode<synchronous>, transform_indices = @transform_17, window_bounds = array<i64: 32, 128>}, {pipeline_mode = #tpu.pipeline_mode<synchronous>, transform_indices = @transform_18, window_bounds = array<i64: 32, 128>}, {pipeline_mode = #tpu.pipeline_mode<synchronous>, transform_indices = @transform_19, window_bounds = array<i64: 32, 128>}, {pipeline_mode = #tpu.pipeline_mode<synchronous>, transform_indices = @transform_20, window_bounds = array<i64: 1, 128>}, {pipeline_mode = #tpu.pipeline_mode<synchronous>, transform_indices = @transform_21, window_bounds = array<i64: 32, 6>}, {pipeline_mode = #tpu.pipeline_mode<synchronous>, transform_indices = @transform_22, window_bounds = array<i64: 1, 6>}, {transform_indices = @transform_23, window_bounds = array<i64: 1, 2, 6>}, {pipeline_mode = #tpu.pipeline_mode<synchronous>, transform_indices = @transform_24, window_bounds = array<i64: 2, 2, 32>}, {pipeline_mode = #tpu.pipeline_mode<synchronous>, transform_indices = @transform_25, window_bounds = array<i64: 2, 2, 32>}]} {
    %c0_i32 = arith.constant 0 : i32
    %0 = arith.cmpi eq, %arg0, %c0_i32 : i32
    %1 = arith.extui %0 : i1 to i32
    %c0_i32_0 = arith.constant 0 : i32
    %2 = arith.cmpi ne, %1, %c0_i32_0 : i32
    scf.if %2 {
      %c0_54 = arith.constant 0 : index
      %c0_55 = arith.constant 0 : index
      %c0_56 = arith.constant 0 : index
      %112 = vector.load %arg3[%c0_54, %c0_55, %c0_56] : memref<2x2x32xf32, #tpu.memory_space<vmem>>, vector<2x2x32xf32>
      %c0_57 = arith.constant 0 : index
      %c0_58 = arith.constant 0 : index
      %c0_59 = arith.constant 0 : index
      %113 = vector.load %arg28[%c0_57, %c0_58, %c0_59] : memref<2x2x32xf32, #tpu.memory_space<vmem>>, vector<2x2x32xf32>
      tpu.vector_store %arg28[%c0_57, %c0_58, %c0_59], %112 {strides = array<i32>} : memref<2x2x32xf32, #tpu.memory_space<vmem>>, vector<2x2x32xf32>,
      %c0_60 = arith.constant 0 : index
      %c0_61 = arith.constant 0 : index
      %c0_62 = arith.constant 0 : index
      %114 = vector.load %arg4[%c0_60, %c0_61, %c0_62] : memref<2x2x32xf32, #tpu.memory_space<vmem>>, vector<2x2x32xf32>
      %c0_63 = arith.constant 0 : index
      %c0_64 = arith.constant 0 : index
      %c0_65 = arith.constant 0 : index
      %115 = vector.load %arg29[%c0_63, %c0_64, %c0_65] : memref<2x2x32xf32, #tpu.memory_space<vmem>>, vector<2x2x32xf32>
      tpu.vector_store %arg29[%c0_63, %c0_64, %c0_65], %114 {strides = array<i32>} : memref<2x2x32xf32, #tpu.memory_space<vmem>>, vector<2x2x32xf32>,
      %c0_66 = arith.constant 0 : index
      %c0_67 = arith.constant 0 : index
      %116 = vector.load %arg1[%c0_66, %c0_67] : memref<64x512xf32, #tpu.memory_space<vmem>>, vector<64x512xf32>
      %c0_68 = arith.constant 0 : index
      %c0_69 = arith.constant 0 : index
      %117 = vector.load %arg5[%c0_68, %c0_69] : memref<512x64xf32, #tpu.memory_space<vmem>>, vector<512x64xf32>
      %cst_70 = arith.constant dense<0.000000e+00> : vector<64x64xf32>
      %118 = tpu.matmul %116, %117, %cst_70 {dimension_numbers = #tpu.dot_dimension_numbers<[1], [0], [0], [1], [0, 0, 1, 1], [], []>} : vector<64x512xf32>, vector<512x64xf32>, vector<64x64xf32> -> vector<64x64xf32>
      %c0_71 = arith.constant 0 : index
      %c0_72 = arith.constant 0 : index
      %119 = vector.load %arg6[%c0_71, %c0_72] : memref<1x64xf32, #tpu.memory_space<vmem>>, vector<1x64xf32>
      %120 = vector.broadcast %119 : vector<1x64xf32> to vector<64x64xf32>
      %121 = arith.addf %118, %120 : vector<64x64xf32>
      %cst_73 = arith.constant 0.000000e+00 : f32
      %122 = vector.broadcast %cst_73 : f32 to vector<64x64xf32>
      %123 = arith.maximumf %121, %122 : vector<64x64xf32>
      %cst_74 = arith.constant 0.000000e+00 : f32
      %124 = vector.broadcast %cst_74 : f32 to vector<8x256xf32>
      %cst_75 = arith.constant 0.000000e+00 : f32
      %125 = vector.broadcast %cst_75 : f32 to vector<8x16xf32>
      %126 = vector.extract_strided_slice %123 {offsets = [0, 0], sizes = [8, 32], strides = [1, 1]} : vector<64x64xf32> to vector<8x32xf32>
      %c0_76 = arith.constant 0 : index
      %c0_77 = arith.constant 0 : index
      %c0_78 = arith.constant 0 : index
      %127 = vector.load %arg7[%c0_76, %c0_77, %c0_78] : memref<4x32x16xf32, #tpu.memory_space<vmem>>, vector<1x32x16xf32>
      %128 = vector.shape_cast %127 : vector<1x32x16xf32> to vector<32x16xf32>
      %cst_79 = arith.constant dense<0.000000e+00> : vector<8x16xf32>
      %129 = tpu.matmul %126, %128, %cst_79 {dimension_numbers = #tpu.dot_dimension_numbers<[1], [0], [0], [1], [0, 0, 1, 1], [], []>} : vector<8x32xf32>, vector<32x16xf32>, vector<8x16xf32> -> vector<8x16xf32>
      %130 = arith.addf %125, %129 : vector<8x16xf32>
      %131 = vector.extract_strided_slice %123 {offsets = [8, 0], sizes = [8, 32], strides = [1, 1]} : vector<64x64xf32> to vector<8x32xf32>
      %c1_80 = arith.constant 1 : index
      %c0_81 = arith.constant 0 : index
      %c0_82 = arith.constant 0 : index
      %132 = vector.load %arg7[%c1_80, %c0_81, %c0_82] : memref<4x32x16xf32, #tpu.memory_space<vmem>>, vector<1x32x16xf32>
      %133 = vector.shape_cast %132 : vector<1x32x16xf32> to vector<32x16xf32>
      %cst_83 = arith.constant dense<0.000000e+00> : vector<8x16xf32>
      %134 = tpu.matmul %131, %133, %cst_83 {dimension_numbers = #tpu.dot_dimension_numbers<[1], [0], [0], [1], [0, 0, 1, 1], [], []>} : vector<8x32xf32>, vector<32x16xf32>, vector<8x16xf32> -> vector<8x16xf32>
      %135 = arith.addf %130, %134 : vector<8x16xf32>
      %136 = vector.extract_strided_slice %123 {offsets = [16, 0], sizes = [8, 32], strides = [1, 1]} : vector<64x64xf32> to vector<8x32xf32>
      %c2 = arith.constant 2 : index
      %c0_84 = arith.constant 0 : index
      %c0_85 = arith.constant 0 : index
      %137 = vector.load %arg7[%c2, %c0_84, %c0_85] : memref<4x32x16xf32, #tpu.memory_space<vmem>>, vector<1x32x16xf32>
      %138 = vector.shape_cast %137 : vector<1x32x16xf32> to vector<32x16xf32>
      %cst_86 = arith.constant dense<0.000000e+00> : vector<8x16xf32>
      %139 = tpu.matmul %136, %138, %cst_86 {dimension_numbers = #tpu.dot_dimension_numbers<[1], [0], [0], [1], [0, 0, 1, 1], [], []>} : vector<8x32xf32>, vector<32x16xf32>, vector<8x16xf32> -> vector<8x16xf32>
      %140 = arith.addf %135, %139 : vector<8x16xf32>
      %141 = vector.extract_strided_slice %123 {offsets = [24, 0], sizes = [8, 32], strides = [1, 1]} : vector<64x64xf32> to vector<8x32xf32>
      %c3 = arith.constant 3 : index
      %c0_87 = arith.constant 0 : index
      %c0_88 = arith.constant 0 : index
      %142 = vector.load %arg7[%c3, %c0_87, %c0_88] : memref<4x32x16xf32, #tpu.memory_space<vmem>>, vector<1x32x16xf32>
      %143 = vector.shape_cast %142 : vector<1x32x16xf32> to vector<32x16xf32>
      %cst_89 = arith.constant dense<0.000000e+00> : vector<8x16xf32>
      %144 = tpu.matmul %141, %143, %cst_89 {dimension_numbers = #tpu.dot_dimension_numbers<[1], [0], [0], [1], [0, 0, 1, 1], [], []>} : vector<8x32xf32>, vector<32x16xf32>, vector<8x16xf32> -> vector<8x16xf32>
      %145 = arith.addf %140, %144 : vector<8x16xf32>
      %c0_90 = arith.constant 0 : index
      %c0_91 = arith.constant 0 : index
      %146 = vector.load %arg8[%c0_90, %c0_91] : memref<1x16xf32, #tpu.memory_space<vmem>>, vector<1x16xf32>
      %147 = vector.broadcast %146 : vector<1x16xf32> to vector<8x16xf32>
      %148 = arith.addf %145, %147 : vector<8x16xf32>
      %cst_92 = arith.constant 0.000000e+00 : f32
      %149 = vector.broadcast %cst_92 : f32 to vector<8x16xf32>
      %150 = arith.maximumf %148, %149 : vector<8x16xf32>
      %c0_93 = arith.constant 0 : index
      %c0_94 = arith.constant 0 : index
      %c0_95 = arith.constant 0 : index
      %151 = vector.load %arg9[%c0_93, %c0_94, %c0_95] : memref<9x16x256xf32, #tpu.memory_space<vmem>>, vector<1x16x256xf32>
      %152 = vector.shape_cast %151 : vector<1x16x256xf32> to vector<16x256xf32>
      %cst_96 = arith.constant dense<0.000000e+00> : vector<8x256xf32>
      %153 = tpu.matmul %150, %152, %cst_96 {dimension_numbers = #tpu.dot_dimension_numbers<[1], [0], [0], [1], [0, 0, 1, 1], [], []>} : vector<8x16xf32>, vector<16x256xf32>, vector<8x256xf32> -> vector<8x256xf32>
      %154 = arith.addf %124, %153 : vector<8x256xf32>
      %cst_97 = arith.constant 0.000000e+00 : f32
      %155 = vector.broadcast %cst_97 : f32 to vector<8x16xf32>
      %156 = vector.extract_strided_slice %123 {offsets = [0, 16], sizes = [8, 32], strides = [1, 1]} : vector<64x64xf32> to vector<8x32xf32>
      %c0_98 = arith.constant 0 : index
      %c0_99 = arith.constant 0 : index
      %c0_100 = arith.constant 0 : index
      %157 = vector.load %arg7[%c0_98, %c0_99, %c0_100] : memref<4x32x16xf32, #tpu.memory_space<vmem>>, vector<1x32x16xf32>
      %158 = vector.shape_cast %157 : vector<1x32x16xf32> to vector<32x16xf32>
      %cst_101 = arith.constant dense<0.000000e+00> : vector<8x16xf32>
      %159 = tpu.matmul %156, %158, %cst_101 {dimension_numbers = #tpu.dot_dimension_numbers<[1], [0], [0], [1], [0, 0, 1, 1], [], []>} : vector<8x32xf32>, vector<32x16xf32>, vector<8x16xf32> -> vector<8x16xf32>
      %160 = arith.addf %155, %159 : vector<8x16xf32>
      %161 = vector.extract_strided_slice %123 {offsets = [8, 16], sizes = [8, 32], strides = [1, 1]} : vector<64x64xf32> to vector<8x32xf32>
      %c1_102 = arith.constant 1 : index
      %c0_103 = arith.constant 0 : index
      %c0_104 = arith.constant 0 : index
      %162 = vector.load %arg7[%c1_102, %c0_103, %c0_104] : memref<4x32x16xf32, #tpu.memory_space<vmem>>, vector<1x32x16xf32>
      %163 = vector.shape_cast %162 : vector<1x32x16xf32> to vector<32x16xf32>
      %cst_105 = arith.constant dense<0.000000e+00> : vector<8x16xf32>
      %164 = tpu.matmul %161, %163, %cst_105 {dimension_numbers = #tpu.dot_dimension_numbers<[1], [0], [0], [1], [0, 0, 1, 1], [], []>} : vector<8x32xf32>, vector<32x16xf32>, vector<8x16xf32> -> vector<8x16xf32>
      %165 = arith.addf %160, %164 : vector<8x16xf32>
      %166 = vector.extract_strided_slice %123 {offsets = [16, 16], sizes = [8, 32], strides = [1, 1]} : vector<64x64xf32> to vector<8x32xf32>
      %c2_106 = arith.constant 2 : index
      %c0_107 = arith.constant 0 : index
      %c0_108 = arith.constant 0 : index
      %167 = vector.load %arg7[%c2_106, %c0_107, %c0_108] : memref<4x32x16xf32, #tpu.memory_space<vmem>>, vector<1x32x16xf32>
      %168 = vector.shape_cast %167 : vector<1x32x16xf32> to vector<32x16xf32>
      %cst_109 = arith.constant dense<0.000000e+00> : vector<8x16xf32>
      %169 = tpu.matmul %166, %168, %cst_109 {dimension_numbers = #tpu.dot_dimension_numbers<[1], [0], [0], [1], [0, 0, 1, 1], [], []>} : vector<8x32xf32>, vector<32x16xf32>, vector<8x16xf32> -> vector<8x16xf32>
      %170 = arith.addf %165, %169 : vector<8x16xf32>
      %171 = vector.extract_strided_slice %123 {offsets = [24, 16], sizes = [8, 32], strides = [1, 1]} : vector<64x64xf32> to vector<8x32xf32>
      %c3_110 = arith.constant 3 : index
      %c0_111 = arith.constant 0 : index
      %c0_112 = arith.constant 0 : index
      %172 = vector.load %arg7[%c3_110, %c0_111, %c0_112] : memref<4x32x16xf32, #tpu.memory_space<vmem>>, vector<1x32x16xf32>
      %173 = vector.shape_cast %172 : vector<1x32x16xf32> to vector<32x16xf32>
      %cst_113 = arith.constant dense<0.000000e+00> : vector<8x16xf32>
      %174 = tpu.matmul %171, %173, %cst_113 {dimension_numbers = #tpu.dot_dimension_numbers<[1], [0], [0], [1], [0, 0, 1, 1], [], []>} : vector<8x32xf32>, vector<32x16xf32>, vector<8x16xf32> -> vector<8x16xf32>
      %175 = arith.addf %170, %174 : vector<8x16xf32>
      %c0_114 = arith.constant 0 : index
      %c0_115 = arith.constant 0 : index
      %176 = vector.load %arg8[%c0_114, %c0_115] : memref<1x16xf32, #tpu.memory_space<vmem>>, vector<1x16xf32>
      %177 = vector.broadcast %176 : vector<1x16xf32> to vector<8x16xf32>
      %178 = arith.addf %175, %177 : vector<8x16xf32>
      %cst_116 = arith.constant 0.000000e+00 : f32
      %179 = vector.broadcast %cst_116 : f32 to vector<8x16xf32>
      %180 = arith.maximumf %178, %179 : vector<8x16xf32>
      %c1_117 = arith.constant 1 : index
      %c0_118 = arith.constant 0 : index
      %c0_119 = arith.constant 0 : index
      %181 = vector.load %arg9[%c1_117, %c0_118, %c0_119] : memref<9x16x256xf32, #tpu.memory_space<vmem>>, vector<1x16x256xf32>
      %182 = vector.shape_cast %181 : vector<1x16x256xf32> to vector<16x256xf32>
      %cst_120 = arith.constant dense<0.000000e+00> : vector<8x256xf32>
      %183 = tpu.matmul %180, %182, %cst_120 {dimension_numbers = #tpu.dot_dimension_numbers<[1], [0], [0], [1], [0, 0, 1, 1], [], []>} : vector<8x16xf32>, vector<16x256xf32>, vector<8x256xf32> -> vector<8x256xf32>
      %184 = arith.addf %154, %183 : vector<8x256xf32>
      %cst_121 = arith.constant 0.000000e+00 : f32
      %185 = vector.broadcast %cst_121 : f32 to vector<8x16xf32>
      %186 = vector.extract_strided_slice %123 {offsets = [0, 32], sizes = [8, 32], strides = [1, 1]} : vector<64x64xf32> to vector<8x32xf32>
      %c0_122 = arith.constant 0 : index
      %c0_123 = arith.constant 0 : index
      %c0_124 = arith.constant 0 : index
      %187 = vector.load %arg7[%c0_122, %c0_123, %c0_124] : memref<4x32x16xf32, #tpu.memory_space<vmem>>, vector<1x32x16xf32>
      %188 = vector.shape_cast %187 : vector<1x32x16xf32> to vector<32x16xf32>
      %cst_125 = arith.constant dense<0.000000e+00> : vector<8x16xf32>
      %189 = tpu.matmul %186, %188, %cst_125 {dimension_numbers = #tpu.dot_dimension_numbers<[1], [0], [0], [1], [0, 0, 1, 1], [], []>} : vector<8x32xf32>, vector<32x16xf32>, vector<8x16xf32> -> vector<8x16xf32>
      %190 = arith.addf %185, %189 : vector<8x16xf32>
      %191 = vector.extract_strided_slice %123 {offsets = [8, 32], sizes = [8, 32], strides = [1, 1]} : vector<64x64xf32> to vector<8x32xf32>
      %c1_126 = arith.constant 1 : index
      %c0_127 = arith.constant 0 : index
      %c0_128 = arith.constant 0 : index
      %192 = vector.load %arg7[%c1_126, %c0_127, %c0_128] : memref<4x32x16xf32, #tpu.memory_space<vmem>>, vector<1x32x16xf32>
      %193 = vector.shape_cast %192 : vector<1x32x16xf32> to vector<32x16xf32>
      %cst_129 = arith.constant dense<0.000000e+00> : vector<8x16xf32>
      %194 = tpu.matmul %191, %193, %cst_129 {dimension_numbers = #tpu.dot_dimension_numbers<[1], [0], [0], [1], [0, 0, 1, 1], [], []>} : vector<8x32xf32>, vector<32x16xf32>, vector<8x16xf32> -> vector<8x16xf32>
      %195 = arith.addf %190, %194 : vector<8x16xf32>
      %196 = vector.extract_strided_slice %123 {offsets = [16, 32], sizes = [8, 32], strides = [1, 1]} : vector<64x64xf32> to vector<8x32xf32>
      %c2_130 = arith.constant 2 : index
      %c0_131 = arith.constant 0 : index
      %c0_132 = arith.constant 0 : index
      %197 = vector.load %arg7[%c2_130, %c0_131, %c0_132] : memref<4x32x16xf32, #tpu.memory_space<vmem>>, vector<1x32x16xf32>
      %198 = vector.shape_cast %197 : vector<1x32x16xf32> to vector<32x16xf32>
      %cst_133 = arith.constant dense<0.000000e+00> : vector<8x16xf32>
      %199 = tpu.matmul %196, %198, %cst_133 {dimension_numbers = #tpu.dot_dimension_numbers<[1], [0], [0], [1], [0, 0, 1, 1], [], []>} : vector<8x32xf32>, vector<32x16xf32>, vector<8x16xf32> -> vector<8x16xf32>
      %200 = arith.addf %195, %199 : vector<8x16xf32>
      %201 = vector.extract_strided_slice %123 {offsets = [24, 32], sizes = [8, 32], strides = [1, 1]} : vector<64x64xf32> to vector<8x32xf32>
      %c3_134 = arith.constant 3 : index
      %c0_135 = arith.constant 0 : index
      %c0_136 = arith.constant 0 : index
      %202 = vector.load %arg7[%c3_134, %c0_135, %c0_136] : memref<4x32x16xf32, #tpu.memory_space<vmem>>, vector<1x32x16xf32>
      %203 = vector.shape_cast %202 : vector<1x32x16xf32> to vector<32x16xf32>
      %cst_137 = arith.constant dense<0.000000e+00> : vector<8x16xf32>
      %204 = tpu.matmul %201, %203, %cst_137 {dimension_numbers = #tpu.dot_dimension_numbers<[1], [0], [0], [1], [0, 0, 1, 1], [], []>} : vector<8x32xf32>, vector<32x16xf32>, vector<8x16xf32> -> vector<8x16xf32>
      %205 = arith.addf %200, %204 : vector<8x16xf32>
      %c0_138 = arith.constant 0 : index
      %c0_139 = arith.constant 0 : index
      %206 = vector.load %arg8[%c0_138, %c0_139] : memref<1x16xf32, #tpu.memory_space<vmem>>, vector<1x16xf32>
      %207 = vector.broadcast %206 : vector<1x16xf32> to vector<8x16xf32>
      %208 = arith.addf %205, %207 : vector<8x16xf32>
      %cst_140 = arith.constant 0.000000e+00 : f32
      %209 = vector.broadcast %cst_140 : f32 to vector<8x16xf32>
      %210 = arith.maximumf %208, %209 : vector<8x16xf32>
      %c2_141 = arith.constant 2 : index
      %c0_142 = arith.constant 0 : index
      %c0_143 = arith.constant 0 : index
      %211 = vector.load %arg9[%c2_141, %c0_142, %c0_143] : memref<9x16x256xf32, #tpu.memory_space<vmem>>, vector<1x16x256xf32>
      %212 = vector.shape_cast %211 : vector<1x16x256xf32> to vector<16x256xf32>
      %cst_144 = arith.constant dense<0.000000e+00> : vector<8x256xf32>
      %213 = tpu.matmul %210, %212, %cst_144 {dimension_numbers = #tpu.dot_dimension_numbers<[1], [0], [0], [1], [0, 0, 1, 1], [], []>} : vector<8x16xf32>, vector<16x256xf32>, vector<8x256xf32> -> vector<8x256xf32>
      %214 = arith.addf %184, %213 : vector<8x256xf32>
      %cst_145 = arith.constant 0.000000e+00 : f32
      %215 = vector.broadcast %cst_145 : f32 to vector<8x16xf32>
      %216 = vector.extract_strided_slice %123 {offsets = [16, 0], sizes = [8, 32], strides = [1, 1]} : vector<64x64xf32> to vector<8x32xf32>
      %c0_146 = arith.constant 0 : index
      %c0_147 = arith.constant 0 : index
      %c0_148 = arith.constant 0 : index
      %217 = vector.load %arg7[%c0_146, %c0_147, %c0_148] : memref<4x32x16xf32, #tpu.memory_space<vmem>>, vector<1x32x16xf32>
      %218 = vector.shape_cast %217 : vector<1x32x16xf32> to vector<32x16xf32>
      %cst_149 = arith.constant dense<0.000000e+00> : vector<8x16xf32>
      %219 = tpu.matmul %216, %218, %cst_149 {dimension_numbers = #tpu.dot_dimension_numbers<[1], [0], [0], [1], [0, 0, 1, 1], [], []>} : vector<8x32xf32>, vector<32x16xf32>, vector<8x16xf32> -> vector<8x16xf32>
      %220 = arith.addf %215, %219 : vector<8x16xf32>
      %221 = vector.extract_strided_slice %123 {offsets = [24, 0], sizes = [8, 32], strides = [1, 1]} : vector<64x64xf32> to vector<8x32xf32>
      %c1_150 = arith.constant 1 : index
      %c0_151 = arith.constant 0 : index
      %c0_152 = arith.constant 0 : index
      %222 = vector.load %arg7[%c1_150, %c0_151, %c0_152] : memref<4x32x16xf32, #tpu.memory_space<vmem>>, vector<1x32x16xf32>
      %223 = vector.shape_cast %222 : vector<1x32x16xf32> to vector<32x16xf32>
      %cst_153 = arith.constant dense<0.000000e+00> : vector<8x16xf32>
      %224 = tpu.matmul %221, %223, %cst_153 {dimension_numbers = #tpu.dot_dimension_numbers<[1], [0], [0], [1], [0, 0, 1, 1], [], []>} : vector<8x32xf32>, vector<32x16xf32>, vector<8x16xf32> -> vector<8x16xf32>
      %225 = arith.addf %220, %224 : vector<8x16xf32>
      %226 = vector.extract_strided_slice %123 {offsets = [32, 0], sizes = [8, 32], strides = [1, 1]} : vector<64x64xf32> to vector<8x32xf32>
      %c2_154 = arith.constant 2 : index
      %c0_155 = arith.constant 0 : index
      %c0_156 = arith.constant 0 : index
      %227 = vector.load %arg7[%c2_154, %c0_155, %c0_156] : memref<4x32x16xf32, #tpu.memory_space<vmem>>, vector<1x32x16xf32>
      %228 = vector.shape_cast %227 : vector<1x32x16xf32> to vector<32x16xf32>
      %cst_157 = arith.constant dense<0.000000e+00> : vector<8x16xf32>
      %229 = tpu.matmul %226, %228, %cst_157 {dimension_numbers = #tpu.dot_dimension_numbers<[1], [0], [0], [1], [0, 0, 1, 1], [], []>} : vector<8x32xf32>, vector<32x16xf32>, vector<8x16xf32> -> vector<8x16xf32>
      %230 = arith.addf %225, %229 : vector<8x16xf32>
      %231 = vector.extract_strided_slice %123 {offsets = [40, 0], sizes = [8, 32], strides = [1, 1]} : vector<64x64xf32> to vector<8x32xf32>
      %c3_158 = arith.constant 3 : index
      %c0_159 = arith.constant 0 : index
      %c0_160 = arith.constant 0 : index
      %232 = vector.load %arg7[%c3_158, %c0_159, %c0_160] : memref<4x32x16xf32, #tpu.memory_space<vmem>>, vector<1x32x16xf32>
      %233 = vector.shape_cast %232 : vector<1x32x16xf32> to vector<32x16xf32>
      %cst_161 = arith.constant dense<0.000000e+00> : vector<8x16xf32>
      %234 = tpu.matmul %231, %233, %cst_161 {dimension_numbers = #tpu.dot_dimension_numbers<[1], [0], [0], [1], [0, 0, 1, 1], [], []>} : vector<8x32xf32>, vector<32x16xf32>, vector<8x16xf32> -> vector<8x16xf32>
      %235 = arith.addf %230, %234 : vector<8x16xf32>
      %c0_162 = arith.constant 0 : index
      %c0_163 = arith.constant 0 : index
      %236 = vector.load %arg8[%c0_162, %c0_163] : memref<1x16xf32, #tpu.memory_space<vmem>>, vector<1x16xf32>
      %237 = vector.broadcast %236 : vector<1x16xf32> to vector<8x16xf32>
      %238 = arith.addf %235, %237 : vector<8x16xf32>
      %cst_164 = arith.constant 0.000000e+00 : f32
      %239 = vector.broadcast %cst_164 : f32 to vector<8x16xf32>
      %240 = arith.maximumf %238, %239 : vector<8x16xf32>
      %c3_165 = arith.constant 3 : index
      %c0_166 = arith.constant 0 : index
      %c0_167 = arith.constant 0 : index
      %241 = vector.load %arg9[%c3_165, %c0_166, %c0_167] : memref<9x16x256xf32, #tpu.memory_space<vmem>>, vector<1x16x256xf32>
      %242 = vector.shape_cast %241 : vector<1x16x256xf32> to vector<16x256xf32>
      %cst_168 = arith.constant dense<0.000000e+00> : vector<8x256xf32>
      %243 = tpu.matmul %240, %242, %cst_168 {dimension_numbers = #tpu.dot_dimension_numbers<[1], [0], [0], [1], [0, 0, 1, 1], [], []>} : vector<8x16xf32>, vector<16x256xf32>, vector<8x256xf32> -> vector<8x256xf32>
      %244 = arith.addf %214, %243 : vector<8x256xf32>
      %cst_169 = arith.constant 0.000000e+00 : f32
      %245 = vector.broadcast %cst_169 : f32 to vector<8x16xf32>
      %246 = vector.extract_strided_slice %123 {offsets = [16, 16], sizes = [8, 32], strides = [1, 1]} : vector<64x64xf32> to vector<8x32xf32>
      %c0_170 = arith.constant 0 : index
      %c0_171 = arith.constant 0 : index
      %c0_172 = arith.constant 0 : index
      %247 = vector.load %arg7[%c0_170, %c0_171, %c0_172] : memref<4x32x16xf32, #tpu.memory_space<vmem>>, vector<1x32x16xf32>
      %248 = vector.shape_cast %247 : vector<1x32x16xf32> to vector<32x16xf32>
      %cst_173 = arith.constant dense<0.000000e+00> : vector<8x16xf32>
      %249 = tpu.matmul %246, %248, %cst_173 {dimension_numbers = #tpu.dot_dimension_numbers<[1], [0], [0], [1], [0, 0, 1, 1], [], []>} : vector<8x32xf32>, vector<32x16xf32>, vector<8x16xf32> -> vector<8x16xf32>
      %250 = arith.addf %245, %249 : vector<8x16xf32>
      %251 = vector.extract_strided_slice %123 {offsets = [24, 16], sizes = [8, 32], strides = [1, 1]} : vector<64x64xf32> to vector<8x32xf32>
      %c1_174 = arith.constant 1 : index
      %c0_175 = arith.constant 0 : index
      %c0_176 = arith.constant 0 : index
      %252 = vector.load %arg7[%c1_174, %c0_175, %c0_176] : memref<4x32x16xf32, #tpu.memory_space<vmem>>, vector<1x32x16xf32>
      %253 = vector.shape_cast %252 : vector<1x32x16xf32> to vector<32x16xf32>
      %cst_177 = arith.constant dense<0.000000e+00> : vector<8x16xf32>
      %254 = tpu.matmul %251, %253, %cst_177 {dimension_numbers = #tpu.dot_dimension_numbers<[1], [0], [0], [1], [0, 0, 1, 1], [], []>} : vector<8x32xf32>, vector<32x16xf32>, vector<8x16xf32> -> vector<8x16xf32>
      %255 = arith.addf %250, %254 : vector<8x16xf32>
      %256 = vector.extract_strided_slice %123 {offsets = [32, 16], sizes = [8, 32], strides = [1, 1]} : vector<64x64xf32> to vector<8x32xf32>
      %c2_178 = arith.constant 2 : index
      %c0_179 = arith.constant 0 : index
      %c0_180 = arith.constant 0 : index
      %257 = vector.load %arg7[%c2_178, %c0_179, %c0_180] : memref<4x32x16xf32, #tpu.memory_space<vmem>>, vector<1x32x16xf32>
      %258 = vector.shape_cast %257 : vector<1x32x16xf32> to vector<32x16xf32>
      %cst_181 = arith.constant dense<0.000000e+00> : vector<8x16xf32>
      %259 = tpu.matmul %256, %258, %cst_181 {dimension_numbers = #tpu.dot_dimension_numbers<[1], [0], [0], [1], [0, 0, 1, 1], [], []>} : vector<8x32xf32>, vector<32x16xf32>, vector<8x16xf32> -> vector<8x16xf32>
      %260 = arith.addf %255, %259 : vector<8x16xf32>
      %261 = vector.extract_strided_slice %123 {offsets = [40, 16], sizes = [8, 32], strides = [1, 1]} : vector<64x64xf32> to vector<8x32xf32>
      %c3_182 = arith.constant 3 : index
      %c0_183 = arith.constant 0 : index
      %c0_184 = arith.constant 0 : index
      %262 = vector.load %arg7[%c3_182, %c0_183, %c0_184] : memref<4x32x16xf32, #tpu.memory_space<vmem>>, vector<1x32x16xf32>
      %263 = vector.shape_cast %262 : vector<1x32x16xf32> to vector<32x16xf32>
      %cst_185 = arith.constant dense<0.000000e+00> : vector<8x16xf32>
      %264 = tpu.matmul %261, %263, %cst_185 {dimension_numbers = #tpu.dot_dimension_numbers<[1], [0], [0], [1], [0, 0, 1, 1], [], []>} : vector<8x32xf32>, vector<32x16xf32>, vector<8x16xf32> -> vector<8x16xf32>
      %265 = arith.addf %260, %264 : vector<8x16xf32>
      %c0_186 = arith.constant 0 : index
      %c0_187 = arith.constant 0 : index
      %266 = vector.load %arg8[%c0_186, %c0_187] : memref<1x16xf32, #tpu.memory_space<vmem>>, vector<1x16xf32>
      %267 = vector.broadcast %266 : vector<1x16xf32> to vector<8x16xf32>
      %268 = arith.addf %265, %267 : vector<8x16xf32>
      %cst_188 = arith.constant 0.000000e+00 : f32
      %269 = vector.broadcast %cst_188 : f32 to vector<8x16xf32>
      %270 = arith.maximumf %268, %269 : vector<8x16xf32>
      %c4 = arith.constant 4 : index
      %c0_189 = arith.constant 0 : index
      %c0_190 = arith.constant 0 : index
      %271 = vector.load %arg9[%c4, %c0_189, %c0_190] : memref<9x16x256xf32, #tpu.memory_space<vmem>>, vector<1x16x256xf32>
      %272 = vector.shape_cast %271 : vector<1x16x256xf32> to vector<16x256xf32>
      %cst_191 = arith.constant dense<0.000000e+00> : vector<8x256xf32>
      %273 = tpu.matmul %270, %272, %cst_191 {dimension_numbers = #tpu.dot_dimension_numbers<[1], [0], [0], [1], [0, 0, 1, 1], [], []>} : vector<8x16xf32>, vector<16x256xf32>, vector<8x256xf32> -> vector<8x256xf32>
      %274 = arith.addf %244, %273 : vector<8x256xf32>
      %cst_192 = arith.constant 0.000000e+00 : f32
      %275 = vector.broadcast %cst_192 : f32 to vector<8x16xf32>
      %276 = vector.extract_strided_slice %123 {offsets = [16, 32], sizes = [8, 32], strides = [1, 1]} : vector<64x64xf32> to vector<8x32xf32>
      %c0_193 = arith.constant 0 : index
      %c0_194 = arith.constant 0 : index
      %c0_195 = arith.constant 0 : index
      %277 = vector.load %arg7[%c0_193, %c0_194, %c0_195] : memref<4x32x16xf32, #tpu.memory_space<vmem>>, vector<1x32x16xf32>
      %278 = vector.shape_cast %277 : vector<1x32x16xf32> to vector<32x16xf32>
      %cst_196 = arith.constant dense<0.000000e+00> : vector<8x16xf32>
      %279 = tpu.matmul %276, %278, %cst_196 {dimension_numbers = #tpu.dot_dimension_numbers<[1], [0], [0], [1], [0, 0, 1, 1], [], []>} : vector<8x32xf32>, vector<32x16xf32>, vector<8x16xf32> -> vector<8x16xf32>
      %280 = arith.addf %275, %279 : vector<8x16xf32>
      %281 = vector.extract_strided_slice %123 {offsets = [24, 32], sizes = [8, 32], strides = [1, 1]} : vector<64x64xf32> to vector<8x32xf32>
      %c1_197 = arith.constant 1 : index
      %c0_198 = arith.constant 0 : index
      %c0_199 = arith.constant 0 : index
      %282 = vector.load %arg7[%c1_197, %c0_198, %c0_199] : memref<4x32x16xf32, #tpu.memory_space<vmem>>, vector<1x32x16xf32>
      %283 = vector.shape_cast %282 : vector<1x32x16xf32> to vector<32x16xf32>
      %cst_200 = arith.constant dense<0.000000e+00> : vector<8x16xf32>
      %284 = tpu.matmul %281, %283, %cst_200 {dimension_numbers = #tpu.dot_dimension_numbers<[1], [0], [0], [1], [0, 0, 1, 1], [], []>} : vector<8x32xf32>, vector<32x16xf32>, vector<8x16xf32> -> vector<8x16xf32>
      %285 = arith.addf %280, %284 : vector<8x16xf32>
      %286 = vector.extract_strided_slice %123 {offsets = [32, 32], sizes = [8, 32], strides = [1, 1]} : vector<64x64xf32> to vector<8x32xf32>
      %c2_201 = arith.constant 2 : index
      %c0_202 = arith.constant 0 : index
      %c0_203 = arith.constant 0 : index
      %287 = vector.load %arg7[%c2_201, %c0_202, %c0_203] : memref<4x32x16xf32, #tpu.memory_space<vmem>>, vector<1x32x16xf32>
      %288 = vector.shape_cast %287 : vector<1x32x16xf32> to vector<32x16xf32>
      %cst_204 = arith.constant dense<0.000000e+00> : vector<8x16xf32>
      %289 = tpu.matmul %286, %288, %cst_204 {dimension_numbers = #tpu.dot_dimension_numbers<[1], [0], [0], [1], [0, 0, 1, 1], [], []>} : vector<8x32xf32>, vector<32x16xf32>, vector<8x16xf32> -> vector<8x16xf32>
      %290 = arith.addf %285, %289 : vector<8x16xf32>
      %291 = vector.extract_strided_slice %123 {offsets = [40, 32], sizes = [8, 32], strides = [1, 1]} : vector<64x64xf32> to vector<8x32xf32>
      %c3_205 = arith.constant 3 : index
      %c0_206 = arith.constant 0 : index
      %c0_207 = arith.constant 0 : index
      %292 = vector.load %arg7[%c3_205, %c0_206, %c0_207] : memref<4x32x16xf32, #tpu.memory_space<vmem>>, vector<1x32x16xf32>
      %293 = vector.shape_cast %292 : vector<1x32x16xf32> to vector<32x16xf32>
      %cst_208 = arith.constant dense<0.000000e+00> : vector<8x16xf32>
      %294 = tpu.matmul %291, %293, %cst_208 {dimension_numbers = #tpu.dot_dimension_numbers<[1], [0], [0], [1], [0, 0, 1, 1], [], []>} : vector<8x32xf32>, vector<32x16xf32>, vector<8x16xf32> -> vector<8x16xf32>
      %295 = arith.addf %290, %294 : vector<8x16xf32>
      %c0_209 = arith.constant 0 : index
      %c0_210 = arith.constant 0 : index
      %296 = vector.load %arg8[%c0_209, %c0_210] : memref<1x16xf32, #tpu.memory_space<vmem>>, vector<1x16xf32>
      %297 = vector.broadcast %296 : vector<1x16xf32> to vector<8x16xf32>
      %298 = arith.addf %295, %297 : vector<8x16xf32>
      %cst_211 = arith.constant 0.000000e+00 : f32
      %299 = vector.broadcast %cst_211 : f32 to vector<8x16xf32>
      %300 = arith.maximumf %298, %299 : vector<8x16xf32>
      %c5 = arith.constant 5 : index
      %c0_212 = arith.constant 0 : index
      %c0_213 = arith.constant 0 : index
      %301 = vector.load %arg9[%c5, %c0_212, %c0_213] : memref<9x16x256xf32, #tpu.memory_space<vmem>>, vector<1x16x256xf32>
      %302 = vector.shape_cast %301 : vector<1x16x256xf32> to vector<16x256xf32>
      %cst_214 = arith.constant dense<0.000000e+00> : vector<8x256xf32>
      %303 = tpu.matmul %300, %302, %cst_214 {dimension_numbers = #tpu.dot_dimension_numbers<[1], [0], [0], [1], [0, 0, 1, 1], [], []>} : vector<8x16xf32>, vector<16x256xf32>, vector<8x256xf32> -> vector<8x256xf32>
      %304 = arith.addf %274, %303 : vector<8x256xf32>
      %cst_215 = arith.constant 0.000000e+00 : f32
      %305 = vector.broadcast %cst_215 : f32 to vector<8x16xf32>
      %306 = vector.extract_strided_slice %123 {offsets = [32, 0], sizes = [8, 32], strides = [1, 1]} : vector<64x64xf32> to vector<8x32xf32>
      %c0_216 = arith.constant 0 : index
      %c0_217 = arith.constant 0 : index
      %c0_218 = arith.constant 0 : index
      %307 = vector.load %arg7[%c0_216, %c0_217, %c0_218] : memref<4x32x16xf32, #tpu.memory_space<vmem>>, vector<1x32x16xf32>
      %308 = vector.shape_cast %307 : vector<1x32x16xf32> to vector<32x16xf32>
      %cst_219 = arith.constant dense<0.000000e+00> : vector<8x16xf32>
      %309 = tpu.matmul %306, %308, %cst_219 {dimension_numbers = #tpu.dot_dimension_numbers<[1], [0], [0], [1], [0, 0, 1, 1], [], []>} : vector<8x32xf32>, vector<32x16xf32>, vector<8x16xf32> -> vector<8x16xf32>
      %310 = arith.addf %305, %309 : vector<8x16xf32>
      %311 = vector.extract_strided_slice %123 {offsets = [40, 0], sizes = [8, 32], strides = [1, 1]} : vector<64x64xf32> to vector<8x32xf32>
      %c1_220 = arith.constant 1 : index
      %c0_221 = arith.constant 0 : index
      %c0_222 = arith.constant 0 : index
      %312 = vector.load %arg7[%c1_220, %c0_221, %c0_222] : memref<4x32x16xf32, #tpu.memory_space<vmem>>, vector<1x32x16xf32>
      %313 = vector.shape_cast %312 : vector<1x32x16xf32> to vector<32x16xf32>
      %cst_223 = arith.constant dense<0.000000e+00> : vector<8x16xf32>
      %314 = tpu.matmul %311, %313, %cst_223 {dimension_numbers = #tpu.dot_dimension_numbers<[1], [0], [0], [1], [0, 0, 1, 1], [], []>} : vector<8x32xf32>, vector<32x16xf32>, vector<8x16xf32> -> vector<8x16xf32>
      %315 = arith.addf %310, %314 : vector<8x16xf32>
      %316 = vector.extract_strided_slice %123 {offsets = [48, 0], sizes = [8, 32], strides = [1, 1]} : vector<64x64xf32> to vector<8x32xf32>
      %c2_224 = arith.constant 2 : index
      %c0_225 = arith.constant 0 : index
      %c0_226 = arith.constant 0 : index
      %317 = vector.load %arg7[%c2_224, %c0_225, %c0_226] : memref<4x32x16xf32, #tpu.memory_space<vmem>>, vector<1x32x16xf32>
      %318 = vector.shape_cast %317 : vector<1x32x16xf32> to vector<32x16xf32>
      %cst_227 = arith.constant dense<0.000000e+00> : vector<8x16xf32>
      %319 = tpu.matmul %316, %318, %cst_227 {dimension_numbers = #tpu.dot_dimension_numbers<[1], [0], [0], [1], [0, 0, 1, 1], [], []>} : vector<8x32xf32>, vector<32x16xf32>, vector<8x16xf32> -> vector<8x16xf32>
      %320 = arith.addf %315, %319 : vector<8x16xf32>
      %321 = vector.extract_strided_slice %123 {offsets = [56, 0], sizes = [8, 32], strides = [1, 1]} : vector<64x64xf32> to vector<8x32xf32>
      %c3_228 = arith.constant 3 : index
      %c0_229 = arith.constant 0 : index
      %c0_230 = arith.constant 0 : index
      %322 = vector.load %arg7[%c3_228, %c0_229, %c0_230] : memref<4x32x16xf32, #tpu.memory_space<vmem>>, vector<1x32x16xf32>
      %323 = vector.shape_cast %322 : vector<1x32x16xf32> to vector<32x16xf32>
      %cst_231 = arith.constant dense<0.000000e+00> : vector<8x16xf32>
      %324 = tpu.matmul %321, %323, %cst_231 {dimension_numbers = #tpu.dot_dimension_numbers<[1], [0], [0], [1], [0, 0, 1, 1], [], []>} : vector<8x32xf32>, vector<32x16xf32>, vector<8x16xf32> -> vector<8x16xf32>
      %325 = arith.addf %320, %324 : vector<8x16xf32>
      %c0_232 = arith.constant 0 : index
      %c0_233 = arith.constant 0 : index
      %326 = vector.load %arg8[%c0_232, %c0_233] : memref<1x16xf32, #tpu.memory_space<vmem>>, vector<1x16xf32>
      %327 = vector.broadcast %326 : vector<1x16xf32> to vector<8x16xf32>
      %328 = arith.addf %325, %327 : vector<8x16xf32>
      %cst_234 = arith.constant 0.000000e+00 : f32
      %329 = vector.broadcast %cst_234 : f32 to vector<8x16xf32>
      %330 = arith.maximumf %328, %329 : vector<8x16xf32>
      %c6 = arith.constant 6 : index
      %c0_235 = arith.constant 0 : index
      %c0_236 = arith.constant 0 : index
      %331 = vector.load %arg9[%c6, %c0_235, %c0_236] : memref<9x16x256xf32, #tpu.memory_space<vmem>>, vector<1x16x256xf32>
      %332 = vector.shape_cast %331 : vector<1x16x256xf32> to vector<16x256xf32>
      %cst_237 = arith.constant dense<0.000000e+00> : vector<8x256xf32>
      %333 = tpu.matmul %330, %332, %cst_237 {dimension_numbers = #tpu.dot_dimension_numbers<[1], [0], [0], [1], [0, 0, 1, 1], [], []>} : vector<8x16xf32>, vector<16x256xf32>, vector<8x256xf32> -> vector<8x256xf32>
      %334 = arith.addf %304, %333 : vector<8x256xf32>
      %cst_238 = arith.constant 0.000000e+00 : f32
      %335 = vector.broadcast %cst_238 : f32 to vector<8x16xf32>
      %336 = vector.extract_strided_slice %123 {offsets = [32, 16], sizes = [8, 32], strides = [1, 1]} : vector<64x64xf32> to vector<8x32xf32>
      %c0_239 = arith.constant 0 : index
      %c0_240 = arith.constant 0 : index
      %c0_241 = arith.constant 0 : index
      %337 = vector.load %arg7[%c0_239, %c0_240, %c0_241] : memref<4x32x16xf32, #tpu.memory_space<vmem>>, vector<1x32x16xf32>
      %338 = vector.shape_cast %337 : vector<1x32x16xf32> to vector<32x16xf32>
      %cst_242 = arith.constant dense<0.000000e+00> : vector<8x16xf32>
      %339 = tpu.matmul %336, %338, %cst_242 {dimension_numbers = #tpu.dot_dimension_numbers<[1], [0], [0], [1], [0, 0, 1, 1], [], []>} : vector<8x32xf32>, vector<32x16xf32>, vector<8x16xf32> -> vector<8x16xf32>
      %340 = arith.addf %335, %339 : vector<8x16xf32>
      %341 = vector.extract_strided_slice %123 {offsets = [40, 16], sizes = [8, 32], strides = [1, 1]} : vector<64x64xf32> to vector<8x32xf32>
      %c1_243 = arith.constant 1 : index
      %c0_244 = arith.constant 0 : index
      %c0_245 = arith.constant 0 : index
      %342 = vector.load %arg7[%c1_243, %c0_244, %c0_245] : memref<4x32x16xf32, #tpu.memory_space<vmem>>, vector<1x32x16xf32>
      %343 = vector.shape_cast %342 : vector<1x32x16xf32> to vector<32x16xf32>
      %cst_246 = arith.constant dense<0.000000e+00> : vector<8x16xf32>
      %344 = tpu.matmul %341, %343, %cst_246 {dimension_numbers = #tpu.dot_dimension_numbers<[1], [0], [0], [1], [0, 0, 1, 1], [], []>} : vector<8x32xf32>, vector<32x16xf32>, vector<8x16xf32> -> vector<8x16xf32>
      %345 = arith.addf %340, %344 : vector<8x16xf32>
      %346 = vector.extract_strided_slice %123 {offsets = [48, 16], sizes = [8, 32], strides = [1, 1]} : vector<64x64xf32> to vector<8x32xf32>
      %c2_247 = arith.constant 2 : index
      %c0_248 = arith.constant 0 : index
      %c0_249 = arith.constant 0 : index
      %347 = vector.load %arg7[%c2_247, %c0_248, %c0_249] : memref<4x32x16xf32, #tpu.memory_space<vmem>>, vector<1x32x16xf32>
      %348 = vector.shape_cast %347 : vector<1x32x16xf32> to vector<32x16xf32>
      %cst_250 = arith.constant dense<0.000000e+00> : vector<8x16xf32>
      %349 = tpu.matmul %346, %348, %cst_250 {dimension_numbers = #tpu.dot_dimension_numbers<[1], [0], [0], [1], [0, 0, 1, 1], [], []>} : vector<8x32xf32>, vector<32x16xf32>, vector<8x16xf32> -> vector<8x16xf32>
      %350 = arith.addf %345, %349 : vector<8x16xf32>
      %351 = vector.extract_strided_slice %123 {offsets = [56, 16], sizes = [8, 32], strides = [1, 1]} : vector<64x64xf32> to vector<8x32xf32>
      %c3_251 = arith.constant 3 : index
      %c0_252 = arith.constant 0 : index
      %c0_253 = arith.constant 0 : index
      %352 = vector.load %arg7[%c3_251, %c0_252, %c0_253] : memref<4x32x16xf32, #tpu.memory_space<vmem>>, vector<1x32x16xf32>
      %353 = vector.shape_cast %352 : vector<1x32x16xf32> to vector<32x16xf32>
      %cst_254 = arith.constant dense<0.000000e+00> : vector<8x16xf32>
      %354 = tpu.matmul %351, %353, %cst_254 {dimension_numbers = #tpu.dot_dimension_numbers<[1], [0], [0], [1], [0, 0, 1, 1], [], []>} : vector<8x32xf32>, vector<32x16xf32>, vector<8x16xf32> -> vector<8x16xf32>
      %355 = arith.addf %350, %354 : vector<8x16xf32>
      %c0_255 = arith.constant 0 : index
      %c0_256 = arith.constant 0 : index
      %356 = vector.load %arg8[%c0_255, %c0_256] : memref<1x16xf32, #tpu.memory_space<vmem>>, vector<1x16xf32>
      %357 = vector.broadcast %356 : vector<1x16xf32> to vector<8x16xf32>
      %358 = arith.addf %355, %357 : vector<8x16xf32>
      %cst_257 = arith.constant 0.000000e+00 : f32
      %359 = vector.broadcast %cst_257 : f32 to vector<8x16xf32>
      %360 = arith.maximumf %358, %359 : vector<8x16xf32>
      %c7 = arith.constant 7 : index
      %c0_258 = arith.constant 0 : index
      %c0_259 = arith.constant 0 : index
      %361 = vector.load %arg9[%c7, %c0_258, %c0_259] : memref<9x16x256xf32, #tpu.memory_space<vmem>>, vector<1x16x256xf32>
      %362 = vector.shape_cast %361 : vector<1x16x256xf32> to vector<16x256xf32>
      %cst_260 = arith.constant dense<0.000000e+00> : vector<8x256xf32>
      %363 = tpu.matmul %360, %362, %cst_260 {dimension_numbers = #tpu.dot_dimension_numbers<[1], [0], [0], [1], [0, 0, 1, 1], [], []>} : vector<8x16xf32>, vector<16x256xf32>, vector<8x256xf32> -> vector<8x256xf32>
      %364 = arith.addf %334, %363 : vector<8x256xf32>
      %cst_261 = arith.constant 0.000000e+00 : f32
      %365 = vector.broadcast %cst_261 : f32 to vector<8x16xf32>
      %366 = vector.extract_strided_slice %123 {offsets = [32, 32], sizes = [8, 32], strides = [1, 1]} : vector<64x64xf32> to vector<8x32xf32>
      %c0_262 = arith.constant 0 : index
      %c0_263 = arith.constant 0 : index
      %c0_264 = arith.constant 0 : index
      %367 = vector.load %arg7[%c0_262, %c0_263, %c0_264] : memref<4x32x16xf32, #tpu.memory_space<vmem>>, vector<1x32x16xf32>
      %368 = vector.shape_cast %367 : vector<1x32x16xf32> to vector<32x16xf32>
      %cst_265 = arith.constant dense<0.000000e+00> : vector<8x16xf32>
      %369 = tpu.matmul %366, %368, %cst_265 {dimension_numbers = #tpu.dot_dimension_numbers<[1], [0], [0], [1], [0, 0, 1, 1], [], []>} : vector<8x32xf32>, vector<32x16xf32>, vector<8x16xf32> -> vector<8x16xf32>
      %370 = arith.addf %365, %369 : vector<8x16xf32>
      %371 = vector.extract_strided_slice %123 {offsets = [40, 32], sizes = [8, 32], strides = [1, 1]} : vector<64x64xf32> to vector<8x32xf32>
      %c1_266 = arith.constant 1 : index
      %c0_267 = arith.constant 0 : index
      %c0_268 = arith.constant 0 : index
      %372 = vector.load %arg7[%c1_266, %c0_267, %c0_268] : memref<4x32x16xf32, #tpu.memory_space<vmem>>, vector<1x32x16xf32>
      %373 = vector.shape_cast %372 : vector<1x32x16xf32> to vector<32x16xf32>
      %cst_269 = arith.constant dense<0.000000e+00> : vector<8x16xf32>
      %374 = tpu.matmul %371, %373, %cst_269 {dimension_numbers = #tpu.dot_dimension_numbers<[1], [0], [0], [1], [0, 0, 1, 1], [], []>} : vector<8x32xf32>, vector<32x16xf32>, vector<8x16xf32> -> vector<8x16xf32>
      %375 = arith.addf %370, %374 : vector<8x16xf32>
      %376 = vector.extract_strided_slice %123 {offsets = [48, 32], sizes = [8, 32], strides = [1, 1]} : vector<64x64xf32> to vector<8x32xf32>
      %c2_270 = arith.constant 2 : index
      %c0_271 = arith.constant 0 : index
      %c0_272 = arith.constant 0 : index
      %377 = vector.load %arg7[%c2_270, %c0_271, %c0_272] : memref<4x32x16xf32, #tpu.memory_space<vmem>>, vector<1x32x16xf32>
      %378 = vector.shape_cast %377 : vector<1x32x16xf32> to vector<32x16xf32>
      %cst_273 = arith.constant dense<0.000000e+00> : vector<8x16xf32>
      %379 = tpu.matmul %376, %378, %cst_273 {dimension_numbers = #tpu.dot_dimension_numbers<[1], [0], [0], [1], [0, 0, 1, 1], [], []>} : vector<8x32xf32>, vector<32x16xf32>, vector<8x16xf32> -> vector<8x16xf32>
      %380 = arith.addf %375, %379 : vector<8x16xf32>
      %381 = vector.extract_strided_slice %123 {offsets = [56, 32], sizes = [8, 32], strides = [1, 1]} : vector<64x64xf32> to vector<8x32xf32>
      %c3_274 = arith.constant 3 : index
      %c0_275 = arith.constant 0 : index
      %c0_276 = arith.constant 0 : index
      %382 = vector.load %arg7[%c3_274, %c0_275, %c0_276] : memref<4x32x16xf32, #tpu.memory_space<vmem>>, vector<1x32x16xf32>
      %383 = vector.shape_cast %382 : vector<1x32x16xf32> to vector<32x16xf32>
      %cst_277 = arith.constant dense<0.000000e+00> : vector<8x16xf32>
      %384 = tpu.matmul %381, %383, %cst_277 {dimension_numbers = #tpu.dot_dimension_numbers<[1], [0], [0], [1], [0, 0, 1, 1], [], []>} : vector<8x32xf32>, vector<32x16xf32>, vector<8x16xf32> -> vector<8x16xf32>
      %385 = arith.addf %380, %384 : vector<8x16xf32>
      %c0_278 = arith.constant 0 : index
      %c0_279 = arith.constant 0 : index
      %386 = vector.load %arg8[%c0_278, %c0_279] : memref<1x16xf32, #tpu.memory_space<vmem>>, vector<1x16xf32>
      %387 = vector.broadcast %386 : vector<1x16xf32> to vector<8x16xf32>
      %388 = arith.addf %385, %387 : vector<8x16xf32>
      %cst_280 = arith.constant 0.000000e+00 : f32
      %389 = vector.broadcast %cst_280 : f32 to vector<8x16xf32>
      %390 = arith.maximumf %388, %389 : vector<8x16xf32>
      %c8 = arith.constant 8 : index
      %c0_281 = arith.constant 0 : index
      %c0_282 = arith.constant 0 : index
      %391 = vector.load %arg9[%c8, %c0_281, %c0_282] : memref<9x16x256xf32, #tpu.memory_space<vmem>>, vector<1x16x256xf32>
      %392 = vector.shape_cast %391 : vector<1x16x256xf32> to vector<16x256xf32>
      %cst_283 = arith.constant dense<0.000000e+00> : vector<8x256xf32>
      %393 = tpu.matmul %390, %392, %cst_283 {dimension_numbers = #tpu.dot_dimension_numbers<[1], [0], [0], [1], [0, 0, 1, 1], [], []>} : vector<8x16xf32>, vector<16x256xf32>, vector<8x256xf32> -> vector<8x256xf32>
      %394 = arith.addf %364, %393 : vector<8x256xf32>
      %c0_284 = arith.constant 0 : index
      %c0_285 = arith.constant 0 : index
      %395 = vector.load %arg10[%c0_284, %c0_285] : memref<1x256xf32, #tpu.memory_space<vmem>>, vector<1x256xf32>
      %396 = vector.broadcast %395 : vector<1x256xf32> to vector<8x256xf32>
      %397 = arith.addf %394, %396 : vector<8x256xf32>
      %cst_286 = arith.constant 0.000000e+00 : f32
      %398 = vector.broadcast %cst_286 : f32 to vector<8x256xf32>
      %399 = arith.maximumf %397, %398 : vector<8x256xf32>
      %c0_287 = arith.constant 0 : index
      %c0_288 = arith.constant 0 : index
      %400 = vector.load %arg11[%c0_287, %c0_288] : memref<256x32xf32, #tpu.memory_space<vmem>>, vector<256x32xf32>
      %cst_289 = arith.constant dense<0.000000e+00> : vector<8x32xf32>
      %401 = tpu.matmul %399, %400, %cst_289 {dimension_numbers = #tpu.dot_dimension_numbers<[1], [0], [0], [1], [0, 0, 1, 1], [], []>} : vector<8x256xf32>, vector<256x32xf32>, vector<8x32xf32> -> vector<8x32xf32>
      %c0_290 = arith.constant 0 : index
      %c0_291 = arith.constant 0 : index
      %402 = vector.load %arg12[%c0_290, %c0_291] : memref<1x32xf32, #tpu.memory_space<vmem>>, vector<1x32xf32>
      %403 = vector.broadcast %402 : vector<1x32xf32> to vector<8x32xf32>
      %404 = arith.addf %401, %403 : vector<8x32xf32>
      %cst_292 = arith.constant 0.000000e+00 : f32
      %405 = vector.broadcast %cst_292 : f32 to vector<8x32xf32>
      %406 = arith.maximumf %404, %405 : vector<8x32xf32>
      %c0_293 = arith.constant 0 : index
      %c0_294 = arith.constant 0 : index
      %407 = vector.load %arg2[%c0_293, %c0_294] : memref<8x2xf32, #tpu.memory_space<vmem>>, vector<8x2xf32>
      %c0_295 = arith.constant 0 : index
      %c0_296 = arith.constant 0 : index
      %408 = vector.load %arg13[%c0_295, %c0_296] : memref<2x32xf32, #tpu.memory_space<vmem>>, vector<2x32xf32>
      %cst_297 = arith.constant dense<0.000000e+00> : vector<8x32xf32>
      %409 = tpu.matmul %407, %408, %cst_297 {dimension_numbers = #tpu.dot_dimension_numbers<[1], [0], [0], [1], [0, 0, 1, 1], [], []>} : vector<8x2xf32>, vector<2x32xf32>, vector<8x32xf32> -> vector<8x32xf32>
      %c0_298 = arith.constant 0 : index
      %c0_299 = arith.constant 0 : index
      %410 = vector.load %arg14[%c0_298, %c0_299] : memref<1x32xf32, #tpu.memory_space<vmem>>, vector<1x32xf32>
      %411 = vector.broadcast %410 : vector<1x32xf32> to vector<8x32xf32>
      %412 = arith.addf %409, %411 : vector<8x32xf32>
      %cst_300 = arith.constant 0.000000e+00 : f32
      %413 = vector.broadcast %cst_300 : f32 to vector<8x32xf32>
      %414 = arith.maximumf %412, %413 : vector<8x32xf32>
      %c0_301 = arith.constant 0 : index
      %c0_302 = arith.constant 0 : index
      %415 = vector.load %arg15[%c0_301, %c0_302] : memref<32x128xf32, #tpu.memory_space<vmem>>, vector<32x128xf32>
      %cst_303 = arith.constant dense<0.000000e+00> : vector<8x128xf32>
      %416 = tpu.matmul %406, %415, %cst_303 {dimension_numbers = #tpu.dot_dimension_numbers<[1], [0], [0], [1], [0, 0, 1, 1], [], []>} : vector<8x32xf32>, vector<32x128xf32>, vector<8x128xf32> -> vector<8x128xf32>
      %c0_304 = arith.constant 0 : index
      %c0_305 = arith.constant 0 : index
      %417 = vector.load %arg16[%c0_304, %c0_305] : memref<32x128xf32, #tpu.memory_space<vmem>>, vector<32x128xf32>
      %cst_306 = arith.constant dense<0.000000e+00> : vector<8x128xf32>
      %418 = tpu.matmul %414, %417, %cst_306 {dimension_numbers = #tpu.dot_dimension_numbers<[1], [0], [0], [1], [0, 0, 1, 1], [], []>} : vector<8x32xf32>, vector<32x128xf32>, vector<8x128xf32> -> vector<8x128xf32>
      %419 = arith.addf %416, %418 : vector<8x128xf32>
      %c0_307 = arith.constant 0 : index
      %c0_308 = arith.constant 0 : index
      %420 = vector.load %arg17[%c0_307, %c0_308] : memref<1x128xf32, #tpu.memory_space<vmem>>, vector<1x128xf32>
      %421 = vector.broadcast %420 : vector<1x128xf32> to vector<8x128xf32>
      %422 = arith.addf %419, %421 : vector<8x128xf32>
      %c0_309 = arith.constant 0 : index
      %c0_310 = arith.constant 0 : index
      %423 = vector.load %arg27[%c0_309, %c0_310] : memref<8x128xf32, #tpu.memory_space<vmem>>, vector<8x128xf32>
      tpu.vector_store %arg27[%c0_309, %c0_310], %422 {strides = array<i32>} : memref<8x128xf32, #tpu.memory_space<vmem>>, vector<8x128xf32>,
    } else {
    }
    %c2_i32 = arith.constant 2 : i32
    %3 = arith.muli %arg0, %c2_i32 : i32
    %4 = arith.index_cast %3 : i32 to index
    %c0 = arith.constant 0 : index
    %5 = vector.load %arg27[%4, %c0] : memref<8x128xf32, #tpu.memory_space<vmem>>, vector<2x128xf32>
    %c0_1 = arith.constant 0 : index
    %c0_2 = arith.constant 0 : index
    %c0_3 = arith.constant 0 : index
    %6 = vector.load %arg28[%c0_1, %c0_2, %c0_3] : memref<2x2x32xf32, #tpu.memory_space<vmem>>, vector<1x2x32xf32>
    %7 = vector.shape_cast %6 : vector<1x2x32xf32> to vector<2x32xf32>
    %c0_4 = arith.constant 0 : index
    %c0_5 = arith.constant 0 : index
    %c0_6 = arith.constant 0 : index
    %8 = vector.load %arg29[%c0_4, %c0_5, %c0_6] : memref<2x2x32xf32, #tpu.memory_space<vmem>>, vector<1x2x32xf32>
    %9 = vector.shape_cast %8 : vector<1x2x32xf32> to vector<2x32xf32>
    %c0_7 = arith.constant 0 : index
    %c0_8 = arith.constant 0 : index
    %10 = vector.load %arg18[%c0_7, %c0_8] : memref<32x128xf32, #tpu.memory_space<vmem>>, vector<32x128xf32>
    %cst = arith.constant dense<0.000000e+00> : vector<2x128xf32>
    %11 = tpu.matmul %7, %10, %cst {dimension_numbers = #tpu.dot_dimension_numbers<[1], [0], [0], [1], [0, 0, 1, 1], [], []>} : vector<2x32xf32>, vector<32x128xf32>, vector<2x128xf32> -> vector<2x128xf32>
    %12 = arith.addf %5, %11 : vector<2x128xf32>
    %13 = vector.extract_strided_slice %12 {offsets = [0, 32], sizes = [2, 32], strides = [1, 1]} : vector<2x128xf32> to vector<2x32xf32>
    %14 = arith.negf %13 : vector<2x32xf32>
    %15 = math.exp %14 : vector<2x32xf32>
    %cst_9 = arith.constant 1.000000e+00 : f32
    %16 = vector.broadcast %cst_9 : f32 to vector<2x32xf32>
    %17 = arith.addf %16, %15 : vector<2x32xf32>
    %18 = arith.divf %16, %17 : vector<2x32xf32>
    %19 = arith.mulf %18, %9 : vector<2x32xf32>
    %20 = vector.extract_strided_slice %12 {offsets = [0, 0], sizes = [2, 32], strides = [1, 1]} : vector<2x128xf32> to vector<2x32xf32>
    %21 = arith.negf %20 : vector<2x32xf32>
    %22 = math.exp %21 : vector<2x32xf32>
    %cst_10 = arith.constant 1.000000e+00 : f32
    %23 = vector.broadcast %cst_10 : f32 to vector<2x32xf32>
    %24 = arith.addf %23, %22 : vector<2x32xf32>
    %25 = arith.divf %23, %24 : vector<2x32xf32>
    %26 = vector.extract_strided_slice %12 {offsets = [0, 64], sizes = [2, 32], strides = [1, 1]} : vector<2x128xf32> to vector<2x32xf32>
    %27 = math.tanh %26 : vector<2x32xf32>
    %28 = arith.mulf %25, %27 : vector<2x32xf32>
    %29 = arith.addf %19, %28 : vector<2x32xf32>
    %30 = vector.extract_strided_slice %12 {offsets = [0, 96], sizes = [2, 32], strides = [1, 1]} : vector<2x128xf32> to vector<2x32xf32>
    %31 = arith.negf %30 : vector<2x32xf32>
    %32 = math.exp %31 : vector<2x32xf32>
    %cst_11 = arith.constant 1.000000e+00 : f32
    %33 = vector.broadcast %cst_11 : f32 to vector<2x32xf32>
    %34 = arith.addf %33, %32 : vector<2x32xf32>
    %35 = arith.divf %33, %34 : vector<2x32xf32>
    %36 = math.tanh %29 : vector<2x32xf32>
    %37 = arith.mulf %35, %36 : vector<2x32xf32>
    %c0_12 = arith.constant 0 : index
    %c0_13 = arith.constant 0 : index
    %c0_14 = arith.constant 0 : index
    %38 = vector.load %arg28[%c0_12, %c0_13, %c0_14] : memref<2x2x32xf32, #tpu.memory_space<vmem>>, vector<1x2x32xf32>
    %39 = vector.shape_cast %38 : vector<1x2x32xf32> to vector<2x32xf32>
    %40 = vector.shape_cast %37 : vector<2x32xf32> to vector<1x2x32xf32>
    tpu.vector_store %arg28[%c0_12, %c0_13, %c0_14], %40 {strides = array<i32>} : memref<2x2x32xf32, #tpu.memory_space<vmem>>, vector<1x2x32xf32>,
    %c0_15 = arith.constant 0 : index
    %c0_16 = arith.constant 0 : index
    %c0_17 = arith.constant 0 : index
    %41 = vector.load %arg29[%c0_15, %c0_16, %c0_17] : memref<2x2x32xf32, #tpu.memory_space<vmem>>, vector<1x2x32xf32>
    %42 = vector.shape_cast %41 : vector<1x2x32xf32> to vector<2x32xf32>
    %43 = vector.shape_cast %29 : vector<2x32xf32> to vector<1x2x32xf32>
    tpu.vector_store %arg29[%c0_15, %c0_16, %c0_17], %43 {strides = array<i32>} : memref<2x2x32xf32, #tpu.memory_space<vmem>>, vector<1x2x32xf32>,
    %c1 = arith.constant 1 : index
    %c0_18 = arith.constant 0 : index
    %c0_19 = arith.constant 0 : index
    %44 = vector.load %arg28[%c1, %c0_18, %c0_19] : memref<2x2x32xf32, #tpu.memory_space<vmem>>, vector<1x2x32xf32>
    %45 = vector.shape_cast %44 : vector<1x2x32xf32> to vector<2x32xf32>
    %c1_20 = arith.constant 1 : index
    %c0_21 = arith.constant 0 : index
    %c0_22 = arith.constant 0 : index
    %46 = vector.load %arg29[%c1_20, %c0_21, %c0_22] : memref<2x2x32xf32, #tpu.memory_space<vmem>>, vector<1x2x32xf32>
    %47 = vector.shape_cast %46 : vector<1x2x32xf32> to vector<2x32xf32>
    %c0_23 = arith.constant 0 : index
    %c0_24 = arith.constant 0 : index
    %48 = vector.load %arg19[%c0_23, %c0_24] : memref<32x128xf32, #tpu.memory_space<vmem>>, vector<32x128xf32>
    %cst_25 = arith.constant dense<0.000000e+00> : vector<2x128xf32>
    %49 = tpu.matmul %37, %48, %cst_25 {dimension_numbers = #tpu.dot_dimension_numbers<[1], [0], [0], [1], [0, 0, 1, 1], [], []>} : vector<2x32xf32>, vector<32x128xf32>, vector<2x128xf32> -> vector<2x128xf32>
    %c0_26 = arith.constant 0 : index
    %c0_27 = arith.constant 0 : index
    %50 = vector.load %arg20[%c0_26, %c0_27] : memref<32x128xf32, #tpu.memory_space<vmem>>, vector<32x128xf32>
    %cst_28 = arith.constant dense<0.000000e+00> : vector<2x128xf32>
    %51 = tpu.matmul %45, %50, %cst_28 {dimension_numbers = #tpu.dot_dimension_numbers<[1], [0], [0], [1], [0, 0, 1, 1], [], []>} : vector<2x32xf32>, vector<32x128xf32>, vector<2x128xf32> -> vector<2x128xf32>
    %52 = arith.addf %49, %51 : vector<2x128xf32>
    %c0_29 = arith.constant 0 : index
    %c0_30 = arith.constant 0 : index
    %53 = vector.load %arg21[%c0_29, %c0_30] : memref<1x128xf32, #tpu.memory_space<vmem>>, vector<1x128xf32>
    %54 = vector.broadcast %53 : vector<1x128xf32> to vector<2x128xf32>
    %55 = arith.addf %52, %54 : vector<2x128xf32>
    %56 = vector.extract_strided_slice %55 {offsets = [0, 32], sizes = [2, 32], strides = [1, 1]} : vector<2x128xf32> to vector<2x32xf32>
    %57 = arith.negf %56 : vector<2x32xf32>
    %58 = math.exp %57 : vector<2x32xf32>
    %cst_31 = arith.constant 1.000000e+00 : f32
    %59 = vector.broadcast %cst_31 : f32 to vector<2x32xf32>
    %60 = arith.addf %59, %58 : vector<2x32xf32>
    %61 = arith.divf %59, %60 : vector<2x32xf32>
    %62 = arith.mulf %61, %47 : vector<2x32xf32>
    %63 = vector.extract_strided_slice %55 {offsets = [0, 0], sizes = [2, 32], strides = [1, 1]} : vector<2x128xf32> to vector<2x32xf32>
    %64 = arith.negf %63 : vector<2x32xf32>
    %65 = math.exp %64 : vector<2x32xf32>
    %cst_32 = arith.constant 1.000000e+00 : f32
    %66 = vector.broadcast %cst_32 : f32 to vector<2x32xf32>
    %67 = arith.addf %66, %65 : vector<2x32xf32>
    %68 = arith.divf %66, %67 : vector<2x32xf32>
    %69 = vector.extract_strided_slice %55 {offsets = [0, 64], sizes = [2, 32], strides = [1, 1]} : vector<2x128xf32> to vector<2x32xf32>
    %70 = math.tanh %69 : vector<2x32xf32>
    %71 = arith.mulf %68, %70 : vector<2x32xf32>
    %72 = arith.addf %62, %71 : vector<2x32xf32>
    %73 = vector.extract_strided_slice %55 {offsets = [0, 96], sizes = [2, 32], strides = [1, 1]} : vector<2x128xf32> to vector<2x32xf32>
    %74 = arith.negf %73 : vector<2x32xf32>
    %75 = math.exp %74 : vector<2x32xf32>
    %cst_33 = arith.constant 1.000000e+00 : f32
    %76 = vector.broadcast %cst_33 : f32 to vector<2x32xf32>
    %77 = arith.addf %76, %75 : vector<2x32xf32>
    %78 = arith.divf %76, %77 : vector<2x32xf32>
    %79 = math.tanh %72 : vector<2x32xf32>
    %80 = arith.mulf %78, %79 : vector<2x32xf32>
    %c1_34 = arith.constant 1 : index
    %c0_35 = arith.constant 0 : index
    %c0_36 = arith.constant 0 : index
    %81 = vector.load %arg28[%c1_34, %c0_35, %c0_36] : memref<2x2x32xf32, #tpu.memory_space<vmem>>, vector<1x2x32xf32>
    %82 = vector.shape_cast %81 : vector<1x2x32xf32> to vector<2x32xf32>
    %83 = vector.shape_cast %80 : vector<2x32xf32> to vector<1x2x32xf32>
    tpu.vector_store %arg28[%c1_34, %c0_35, %c0_36], %83 {strides = array<i32>} : memref<2x2x32xf32, #tpu.memory_space<vmem>>, vector<1x2x32xf32>,
    %c1_37 = arith.constant 1 : index
    %c0_38 = arith.constant 0 : index
    %c0_39 = arith.constant 0 : index
    %84 = vector.load %arg29[%c1_37, %c0_38, %c0_39] : memref<2x2x32xf32, #tpu.memory_space<vmem>>, vector<1x2x32xf32>
    %85 = vector.shape_cast %84 : vector<1x2x32xf32> to vector<2x32xf32>
    %86 = vector.shape_cast %72 : vector<2x32xf32> to vector<1x2x32xf32>
    tpu.vector_store %arg29[%c1_37, %c0_38, %c0_39], %86 {strides = array<i32>} : memref<2x2x32xf32, #tpu.memory_space<vmem>>, vector<1x2x32xf32>,
    %c0_40 = arith.constant 0 : index
    %c0_41 = arith.constant 0 : index
    %87 = vector.load %arg22[%c0_40, %c0_41] : memref<32x6xf32, #tpu.memory_space<vmem>>, vector<32x6xf32>
    %cst_42 = arith.constant dense<0.000000e+00> : vector<2x6xf32>
    %88 = tpu.matmul %80, %87, %cst_42 {dimension_numbers = #tpu.dot_dimension_numbers<[1], [0], [0], [1], [0, 0, 1, 1], [], []>} : vector<2x32xf32>, vector<32x6xf32>, vector<2x6xf32> -> vector<2x6xf32>
    %c0_43 = arith.constant 0 : index
    %c0_44 = arith.constant 0 : index
    %89 = vector.load %arg23[%c0_43, %c0_44] : memref<1x6xf32, #tpu.memory_space<vmem>>, vector<1x6xf32>
    %90 = vector.broadcast %89 : vector<1x6xf32> to vector<2x6xf32>
    %91 = arith.addf %88, %90 : vector<2x6xf32>
    %92 = vector.extract_strided_slice %91 {offsets = [0, 1], sizes = [2, 5], strides = [1, 1]} : vector<2x6xf32> to vector<2x5xf32>
    %cst_45 = arith.constant dense<0xFF800000> : vector<2xf32>
    %93 = vector.multi_reduction <maximumf>, %92, %cst_45 [1] : vector<2x5xf32> to vector<2xf32>
    %94 = vector.shape_cast %93 : vector<2xf32> to vector<2x1xf32>
    %95 = vector.broadcast %94 : vector<2x1xf32> to vector<2x5xf32>
    %96 = arith.subf %92, %95 : vector<2x5xf32>
    %97 = math.exp %96 : vector<2x5xf32>
    %cst_46 = arith.constant dense<0.000000e+00> : vector<2xf32>
    %98 = vector.multi_reduction <add>, %97, %cst_46 [1] : vector<2x5xf32> to vector<2xf32>
    %99 = vector.shape_cast %98 : vector<2xf32> to vector<2x1xf32>
    %100 = vector.broadcast %99 : vector<2x1xf32> to vector<2x5xf32>
    %101 = arith.divf %97, %100 : vector<2x5xf32>
    %102 = vector.extract_strided_slice %91 {offsets = [0, 0], sizes = [2, 1], strides = [1, 1]} : vector<2x6xf32> to vector<2x1xf32>
    %c0_47 = arith.constant 0 : index
    %c0_48 = arith.constant 0 : index
    %c0_49 = arith.constant 0 : index
    %103 = vector.load %arg24[%c0_47, %c0_48, %c0_49] : memref<1x2x6xf32, #tpu.memory_space<vmem>>, vector<1x2x1xf32>
    %104 = vector.shape_cast %103 : vector<1x2x1xf32> to vector<2x1xf32>
    %105 = vector.shape_cast %102 : vector<2x1xf32> to vector<1x2x1xf32>
    tpu.vector_store %arg24[%c0_47, %c0_48, %c0_49], %105 {strides = array<i32>} : memref<1x2x6xf32, #tpu.memory_space<vmem>>, vector<1x2x1xf32>,
    %c0_50 = arith.constant 0 : index
    %c0_51 = arith.constant 0 : index
    %c1_52 = arith.constant 1 : index
    %106 = vector.load %arg24[%c0_50, %c0_51, %c1_52] : memref<1x2x6xf32, #tpu.memory_space<vmem>>, vector<1x2x5xf32>
    %107 = vector.shape_cast %106 : vector<1x2x5xf32> to vector<2x5xf32>
    %108 = vector.shape_cast %101 : vector<2x5xf32> to vector<1x2x5xf32>
    tpu.vector_store %arg24[%c0_50, %c0_51, %c1_52], %108 {strides = array<i32>} : memref<1x2x6xf32, #tpu.memory_space<vmem>>, vector<1x2x5xf32>,
    %c3_i32 = arith.constant 3 : i32
    %109 = arith.cmpi eq, %arg0, %c3_i32 : i32
    %110 = arith.extui %109 : i1 to i32
    %c0_i32_53 = arith.constant 0 : i32
    %111 = arith.cmpi ne, %110, %c0_i32_53 : i32
    scf.if %111 {
      %c0_54 = arith.constant 0 : index
      %c0_55 = arith.constant 0 : index
      %c0_56 = arith.constant 0 : index
      %112 = vector.load %arg28[%c0_54, %c0_55, %c0_56] : memref<2x2x32xf32, #tpu.memory_space<vmem>>, vector<2x2x32xf32>
      %c0_57 = arith.constant 0 : index
      %c0_58 = arith.constant 0 : index
      %c0_59 = arith.constant 0 : index
      %113 = vector.load %arg25[%c0_57, %c0_58, %c0_59] : memref<2x2x32xf32, #tpu.memory_space<vmem>>, vector<2x2x32xf32>
      tpu.vector_store %arg25[%c0_57, %c0_58, %c0_59], %112 {strides = array<i32>} : memref<2x2x32xf32, #tpu.memory_space<vmem>>, vector<2x2x32xf32>,
      %c0_60 = arith.constant 0 : index
      %c0_61 = arith.constant 0 : index
      %c0_62 = arith.constant 0 : index
      %114 = vector.load %arg29[%c0_60, %c0_61, %c0_62] : memref<2x2x32xf32, #tpu.memory_space<vmem>>, vector<2x2x32xf32>
      %c0_63 = arith.constant 0 : index
      %c0_64 = arith.constant 0 : index
      %c0_65 = arith.constant 0 : index
      %115 = vector.load %arg26[%c0_63, %c0_64, %c0_65] : memref<2x2x32xf32, #tpu.memory_space<vmem>>, vector<2x2x32xf32>
      tpu.vector_store %arg26[%c0_63, %c0_64, %c0_65], %114 {strides = array<i32>} : memref<2x2x32xf32, #tpu.memory_space<vmem>>, vector<2x2x32xf32>,
    } else {
    }
    return
  }
  func.func @transform_0(%arg0: i32) -> (i32, i32) {
    %c0_i32 = arith.constant 0 : i32
    %c0_i32_0 = arith.constant 0 : i32
    %c0_i32_1 = arith.constant 0 : i32
    return %c0_i32, %c0_i32_0 : i32, i32
  }
  func.func @transform_1(%arg0: i32) -> (i32, i32) {
    %c0_i32 = arith.constant 0 : i32
    %c0_i32_0 = arith.constant 0 : i32
    %c0_i32_1 = arith.constant 0 : i32
    return %c0_i32, %c0_i32_0 : i32, i32
  }
  func.func @transform_2(%arg0: i32) -> (i32, i32, i32) {
    %c0_i32 = arith.constant 0 : i32
    %c0_i32_0 = arith.constant 0 : i32
    %c0_i32_1 = arith.constant 0 : i32
    %c0_i32_2 = arith.constant 0 : i32
    return %c0_i32, %c0_i32_0, %c0_i32_1 : i32, i32, i32
  }
  func.func @transform_3(%arg0: i32) -> (i32, i32, i32) {
    %c0_i32 = arith.constant 0 : i32
    %c0_i32_0 = arith.constant 0 : i32
    %c0_i32_1 = arith.constant 0 : i32
    %c0_i32_2 = arith.constant 0 : i32
    return %c0_i32, %c0_i32_0, %c0_i32_1 : i32, i32, i32
  }
  func.func @transform_4(%arg0: i32) -> (i32, i32) {
    %c0_i32 = arith.constant 0 : i32
    %c0_i32_0 = arith.constant 0 : i32
    %c0_i32_1 = arith.constant 0 : i32
    return %c0_i32, %c0_i32_0 : i32, i32
  }
  func.func @transform_5(%arg0: i32) -> (i32, i32) {
    %c0_i32 = arith.constant 0 : i32
    %c0_i32_0 = arith.constant 0 : i32
    %c0_i32_1 = arith.constant 0 : i32
    return %c0_i32, %c0_i32_0 : i32, i32
  }
  func.func @transform_6(%arg0: i32) -> (i32, i32, i32) {
    %c0_i32 = arith.constant 0 : i32
    %c0_i32_0 = arith.constant 0 : i32
    %c0_i32_1 = arith.constant 0 : i32
    %c0_i32_2 = arith.constant 0 : i32
    return %c0_i32, %c0_i32_0, %c0_i32_1 : i32, i32, i32
  }
  func.func @transform_7(%arg0: i32) -> (i32, i32) {
    %c0_i32 = arith.constant 0 : i32
    %c0_i32_0 = arith.constant 0 : i32
    %c0_i32_1 = arith.constant 0 : i32
    return %c0_i32, %c0_i32_0 : i32, i32
  }
  func.func @transform_8(%arg0: i32) -> (i32, i32, i32) {
    %c0_i32 = arith.constant 0 : i32
    %c0_i32_0 = arith.constant 0 : i32
    %c0_i32_1 = arith.constant 0 : i32
    %c0_i32_2 = arith.constant 0 : i32
    return %c0_i32, %c0_i32_0, %c0_i32_1 : i32, i32, i32
  }
  func.func @transform_9(%arg0: i32) -> (i32, i32) {
    %c0_i32 = arith.constant 0 : i32
    %c0_i32_0 = arith.constant 0 : i32
    %c0_i32_1 = arith.constant 0 : i32
    return %c0_i32, %c0_i32_0 : i32, i32
  }
  func.func @transform_10(%arg0: i32) -> (i32, i32) {
    %c0_i32 = arith.constant 0 : i32
    %c0_i32_0 = arith.constant 0 : i32
    %c0_i32_1 = arith.constant 0 : i32
    return %c0_i32, %c0_i32_0 : i32, i32
  }
  func.func @transform_11(%arg0: i32) -> (i32, i32) {
    %c0_i32 = arith.constant 0 : i32
    %c0_i32_0 = arith.constant 0 : i32
    %c0_i32_1 = arith.constant 0 : i32
    return %c0_i32, %c0_i32_0 : i32, i32
  }
  func.func @transform_12(%arg0: i32) -> (i32, i32) {
    %c0_i32 = arith.constant 0 : i32
    %c0_i32_0 = arith.constant 0 : i32
    %c0_i32_1 = arith.constant 0 : i32
    return %c0_i32, %c0_i32_0 : i32, i32
  }
  func.func @transform_13(%arg0: i32) -> (i32, i32) {
    %c0_i32 = arith.constant 0 : i32
    %c0_i32_0 = arith.constant 0 : i32
    %c0_i32_1 = arith.constant 0 : i32
    return %c0_i32, %c0_i32_0 : i32, i32
  }
  func.func @transform_14(%arg0: i32) -> (i32, i32) {
    %c0_i32 = arith.constant 0 : i32
    %c0_i32_0 = arith.constant 0 : i32
    %c0_i32_1 = arith.constant 0 : i32
    return %c0_i32, %c0_i32_0 : i32, i32
  }
  func.func @transform_15(%arg0: i32) -> (i32, i32) {
    %c0_i32 = arith.constant 0 : i32
    %c0_i32_0 = arith.constant 0 : i32
    %c0_i32_1 = arith.constant 0 : i32
    return %c0_i32, %c0_i32_0 : i32, i32
  }
  func.func @transform_16(%arg0: i32) -> (i32, i32) {
    %c0_i32 = arith.constant 0 : i32
    %c0_i32_0 = arith.constant 0 : i32
    %c0_i32_1 = arith.constant 0 : i32
    return %c0_i32, %c0_i32_0 : i32, i32
  }
  func.func @transform_17(%arg0: i32) -> (i32, i32) {
    %c0_i32 = arith.constant 0 : i32
    %c0_i32_0 = arith.constant 0 : i32
    %c0_i32_1 = arith.constant 0 : i32
    return %c0_i32, %c0_i32_0 : i32, i32
  }
  func.func @transform_18(%arg0: i32) -> (i32, i32) {
    %c0_i32 = arith.constant 0 : i32
    %c0_i32_0 = arith.constant 0 : i32
    %c0_i32_1 = arith.constant 0 : i32
    return %c0_i32, %c0_i32_0 : i32, i32
  }
  func.func @transform_19(%arg0: i32) -> (i32, i32) {
    %c0_i32 = arith.constant 0 : i32
    %c0_i32_0 = arith.constant 0 : i32
    %c0_i32_1 = arith.constant 0 : i32
    return %c0_i32, %c0_i32_0 : i32, i32
  }
  func.func @transform_20(%arg0: i32) -> (i32, i32) {
    %c0_i32 = arith.constant 0 : i32
    %c0_i32_0 = arith.constant 0 : i32
    %c0_i32_1 = arith.constant 0 : i32
    return %c0_i32, %c0_i32_0 : i32, i32
  }
  func.func @transform_21(%arg0: i32) -> (i32, i32) {
    %c0_i32 = arith.constant 0 : i32
    %c0_i32_0 = arith.constant 0 : i32
    %c0_i32_1 = arith.constant 0 : i32
    return %c0_i32, %c0_i32_0 : i32, i32
  }
  func.func @transform_22(%arg0: i32) -> (i32, i32) {
    %c0_i32 = arith.constant 0 : i32
    %c0_i32_0 = arith.constant 0 : i32
    %c0_i32_1 = arith.constant 0 : i32
    return %c0_i32, %c0_i32_0 : i32, i32
  }
  func.func @transform_23(%arg0: i32) -> (i32, i32, i32) {
    %c0_i32 = arith.constant 0 : i32
    %c0_i32_0 = arith.constant 0 : i32
    %c0_i32_1 = arith.constant 0 : i32
    return %arg0, %c0_i32, %c0_i32_0 : i32, i32, i32
  }
  func.func @transform_24(%arg0: i32) -> (i32, i32, i32) {
    %c0_i32 = arith.constant 0 : i32
    %c0_i32_0 = arith.constant 0 : i32
    %c0_i32_1 = arith.constant 0 : i32
    %c0_i32_2 = arith.constant 0 : i32
    return %c0_i32, %c0_i32_0, %c0_i32_1 : i32, i32, i32
  }
  func.func @transform_25(%arg0: i32) -> (i32, i32, i32) {
    %c0_i32 = arith.constant 0 : i32
    %c0_i32_0 = arith.constant 0 : i32
    %c0_i32_1 = arith.constant 0 : i32
    %c0_i32_2 = arith.constant 0 : i32
    return %c0_i32, %c0_i32_0, %c0_i32_1 : i32, i32, i32
  }
}

</mosaic_0001>

<bundles_post_ra>
// kernel: tile.6
= control target key start
LH: loop header
LB: loop body
LE: loop exit
PB: predicated region body
PF: predicated region fallthrough
CT: control target
= control target key end

     0   :  { %s22_s0 = inlined_call_operand.vmem [shape: f32[8], index: 0, kind: input, shape index: {}]   ;;  %s23_s1 = inlined_call_operand.vmem [shape: f32[8,8], index: 1, kind: output, shape index: {}]  }
   0x1   :  { %v4_v0 = vld [vmem:[%s22_s0] ss:$0 sm:$0xff] }
   0x2   :  { %5 = vst [vmem:[%s23_s1] sm:$0xff] %v4_v0 }

// kernel: tile.7
= control target key start
LH: loop header
LB: loop body
LE: loop exit
PB: predicated region body
PF: predicated region fallthrough
CT: control target
= control target key end

     0   :  { %s67_s10 = smov 56   ;;  %s68_s11 = smov 40   ;;  %vm3_vm0 = vcmask 64512   ;;  %vm9_vm1 = vcmask 523712   ;;  %vm15_vm2 = vcmask 458112   ;;  %vm21_vm3 = vcmask 392512   ;;  %s111_s0 = inlined_call_operand.vmem [shape: f32[8,8], index: 0, kind: input, shape index: {}]   ;;  %s112_s1 = inlined_call_operand.vmem [shape: f32[1,64], index: 1, kind: output, shape index: {}]  }
   0x1   :  { %v53_v0 = vld [vmem:[%s111_s0 + $0x7] sm:$0x1]   ;;  %v55_v1 = vld [vmem:[%s111_s0 + $0x5] sm:$0x1]   ;;  %v54_v2 = vld [vmem:[%s111_s0 + $0x6] sm:$0x1]  }
   0x2   :  { %7 = vrot.lane.b32.xlu0 %v53_v0, %s67_s10  ;;  %19 = vrot.lane.b32.xlu1 %v55_v1, %s68_s11  ;;  %v56_v3 = vld [vmem:[%s111_s0 + $0x4] sm:$0x1]   ;;  %v2_v4 = vld [vmem:[%s111_s0] sm:$0x1]   ;;  %s69_s18 = smov 48   ;;  %s70_s19 = smov 32  }
   0x3   :  { %4 = vst.msk [vmem:[#allocation0] sm:$0x1] %vm3_vm0, %v2_v4   ;;  %v57_v5 = vld [vmem:[%s111_s0 + $0x3] sm:$0x1]   ;;  %v58_v6 = vld [vmem:[%s111_s0 + $0x2] sm:$0x1]  }
   0x4   :  { %s71_s24 = smov 24   ;;  %s72_s25 = smov 16   ;;  %v59_v7 = vld [vmem:[%s111_s0 + $0x1] sm:$0x1]   ;;  %vm27_vm4 = vcmask 326912   ;;  %vm33_vm5 = vcmask 261312  }
   0x5   :  { %s73_s0 = smov 8   ;;  %vm39_vm6 = vcmask 195712   ;;  %vm45_vm7 = vcmask 130112  }
   0x6   :  { %13 = vrot.lane.b32.xlu0 %v54_v2, %s69_s18  ;;  %25 = vrot.lane.b32.xlu1 %v56_v3, %s70_s19 }
   0xa   :  { %31 = vrot.lane.b32.xlu0 %v57_v5, %s71_s24  ;;  %37 = vrot.lane.b32.xlu1 %v58_v6, %s72_s25 }
   0xe   :  { %43 = vrot.lane.b32.xlu0 %v59_v7, %s73_s0 }
  0x74   :  { %v8_v8 = vpop.permute.xlu0 %7   ;;  %v20_v9 = vpop.permute.xlu1 %19  }
  0x75   :  { %10 = vst.msk [vmem:[#allocation0] sm:$0x1] %vm9_vm1, %v8_v8  }
  0x78   :  { %v14_v10 = vpop.permute.xlu0 %13   ;;  %v26_v11 = vpop.permute.xlu1 %25  }
  0x79   :  { %16 = vst.msk [vmem:[#allocation0] sm:$0x1] %vm15_vm2, %v14_v10  }
  0x7a   :  { %22 = vst.msk [vmem:[#allocation0] sm:$0x1] %vm21_vm3, %v20_v9  }
  0x7b   :  { %28 = vst.msk [vmem:[#allocation0] sm:$0x1] %vm27_vm4, %v26_v11  }
  0x7c   :  { %v32_v12 = vpop.permute.xlu0 %31   ;;  %v38_v13 = vpop.permute.xlu1 %37  }
  0x7d   :  { %34 = vst.msk [vmem:[#allocation0] sm:$0x1] %vm33_vm5, %v32_v12  }
  0x7e   :  { %40 = vst.msk [vmem:[#allocation0] sm:$0x1] %vm39_vm6, %v38_v13  }
  0x80   :  { %v44_v14 = vpop.permute.xlu0 %43  }
  0x81   :  { %46 = vst.msk [vmem:[#allocation0] sm:$0x1] %vm45_vm7, %v44_v14  }
  0x88   :  { %v50_v15 = vld [vmem:[#allocation0] sm:$0x1] }
  0x89   :  { %52 = vst [vmem:[%s112_s1] sm:$0x1] %v50_v15 }

// kernel: ppo_lstm2_forward.1
= control target key start
LH: loop header
LB: loop body
LE: loop exit
PB: predicated region body
PF: predicated region fallthrough
CT: control target
= control target key end

     0   :  { %s8199_s0 = inlined_call_operand.vmem [shape: f32[64,512], index: 0, kind: input, shape index: {}]   ;;  %s8200_s1 = inlined_call_operand.vmem [shape: f32[8,2], index: 1, kind: input, shape index: {}]   ;;  %s8201_s2 = inlined_call_operand.vmem [shape: f32[2,2,32], index: 2, kind: input, shape index: {}]   ;;  %s8202_s3 = inlined_call_operand.vmem [shape: f32[2,2,32], index: 3, kind: input, shape index: {}]   ;;  %s8203_s4 = inlined_call_operand.vmem [shape: f32[512,64], index: 4, kind: input, shape index: {}]   ;;  %s8204_s5 = inlined_call_operand.vmem [shape: f32[1,64], index: 5, kind: input, shape index: {}]   ;;  %s8205_s6 = inlined_call_operand.vmem [shape: f32[4,32,16], index: 6, kind: input, shape index: {}]   ;;  %s8206_s7 = inlined_call_operand.vmem [shape: f32[1,16], index: 7, kind: input, shape index: {}]   ;;  %s8207_s8 = inlined_call_operand.vmem [shape: f32[9,16,256], index: 8, kind: input, shape index: {}]   ;;  %s8208_s9 = inlined_call_operand.vmem [shape: f32[1,256], index: 9, kind: input, shape index: {}]   ;;  %s8209_s10 = inlined_call_operand.vmem [shape: f32[256,32], index: 10, kind: input, shape index: {}]   ;;  %s8210_s11 = inlined_call_operand.vmem [shape: f32[1,32], index: 11, kind: input, shape index: {}]   ;;  %s8211_s12 = inlined_call_operand.vmem [shape: f32[2,32], index: 12, kind: input, shape index: {}]   ;;  %s8212_s13 = inlined_call_operand.vmem [shape: f32[1,32], index: 13, kind: input, shape index: {}]   ;;  %s8213_s14 = inlined_call_operand.vmem [shape: f32[32,128], index: 14, kind: input, shape index: {}]   ;;  %s8214_s15 = inlined_call_operand.vmem [shape: f32[32,128], index: 15, kind: input, shape index: {}]   ;;  %s8215_s16 = inlined_call_operand.vmem [shape: f32[1,128], index: 16, kind: input, shape index: {}]   ;;  %s8216_s17 = inlined_call_operand.vmem [shape: f32[32,128], index: 17, kind: input, shape index: {}]   ;;  %s8217_s18 = inlined_call_operand.vmem [shape: f32[32,128], index: 18, kind: input, shape index: {}]   ;;  %s8218_s19 = inlined_call_operand.vmem [shape: f32[32,128], index: 19, kind: input, shape index: {}]   ;;  %s8219_s20 = inlined_call_operand.vmem [shape: f32[1,128], index: 20, kind: input, shape index: {}]   ;;  %s8220_s21 = inlined_call_operand.vmem [shape: f32[32,6], index: 21, kind: input, shape index: {}]   ;;  %s8221_s22 = inlined_call_operand.vmem [shape: f32[1,6], index: 22, kind: input, shape index: {}]   ;;  %s8222_s23 = inlined_call_operand.vmem [shape: f32[4,2,6], index: 23, kind: output, shape index: {0}]   ;;  %s8223_s24 = inlined_call_operand.hbm [shape: f32[2,2,32], index: 24, kind: output, shape index: {1}]   ;;  %s8224_s25 = inlined_call_operand.hbm [shape: f32[2,2,32], index: 25, kind: output, shape index: {2}]  }
   0x1   :  { %8240 = sst [smem:[#allocation11_spill]] %s8199_s0 }
   0x2   :  { %8241 = sst [smem:[#allocation12_spill]] %s8200_s1 }
   0x3   :  { %8242 = sst [smem:[#allocation13_spill]] %s8201_s2 }
   0x4   :  { %8243 = sst [smem:[#allocation14_spill]] %s8202_s3 }
   0x5   :  { %8244 = sst [smem:[#allocation15_spill]] %s8203_s4 }
   0x6   :  { %8245 = sst [smem:[#allocation16_spill]] %s8204_s5 }
   0x7   :  { %8246 = sst [smem:[#allocation17_spill]] %s8205_s6 }
   0x8   :  { %8247 = sst [smem:[#allocation18_spill]] %s8206_s7 }
   0x9   :  { %8248 = sst [smem:[#allocation19_spill]] %s8207_s8 }
   0xa   :  { %8249 = sst [smem:[#allocation20_spill]] %s8208_s9 }
   0xb   :  { %8250 = sst [smem:[#allocation21_spill]] %s8222_s23 }
   0xc   :  { %31 = vsyncpa [#allocation6], 0 }
   0xd   :  { %32 = vsyncpa [#allocation8], 0  ;;  %s6995_s29 = smov 0  }
   0xe LB: > { %s7001_s2 = sadd.s32 4294967295, %s6848_s29   ;;  %p5384_p0 = scmp.ge.s32.totalorder %s6848_s29, 1  ;;  %s6848_s29 = sphi %s6995_s29, %s38_s29  }
   0xf   : > { %p674_p1 = scmp.lt.s32.totalorder %s6848_s29, 5 }
  0x11   : > { %p675_p2 = pnand %p5384_p0, %p674_p1 }
  0x12   : > { %p736_p3 = scmp.lt.s32.totalorder (!%p675_p2), %s7001_s2, 3  ;;  %s8251_s23 = sld [smem:[#allocation21_spill]] (!%p675_p2) }
  0x13   : > { %678 = sbr.rel (%p675_p2) target bundleno = 5043 (0x13b3), region = 112  ;;  %p5386_p4 = scmp.ne.s32.totalorder (!%p675_p2), %s7001_s2, 0 }
  0x1a   : > { %s737_s6 = scalar_select %p736_p3, %s7001_s2, 3 }
  0x1b   : > { %743 = sbr.rel (%p5386_p4) target bundleno = 2932 (0xb74), region = 116  ;;  %s8252_s27 = sld [smem:[#allocation13_spill]] (!%p5386_p4)  ;;  %vm746_vm0 = vcmask (!%p5386_p4), 254976   ;;  %vm6851_vm1 = vmmov (!%p5386_p4), 0   ;;  %vm1083_vm2 = vcmask (!%p5386_p4), 261120   ;;  %vm1706_vm3 = vcmask (!%p5386_p4), 130048  }
  0x1c   : > { %s5385_s30 = sshll.u32 %s737_s6, 1  ;;  %s8253_s0 = sld [smem:[#allocation15_spill]] (!%p5386_p4)  ;;  %vm4609_vm4 = vcmask (!%p5386_p4), 1041408   ;;  %vm4605_vm5 = vcmask (!%p5386_p4), 15360  }
  0x1d   : > { %s7010_s26 = scalar_lea.vmem %s8251_s23, %s5385_s30  ;;  %s8254_s7 = sld [smem:[#allocation14_spill]] (!%p5386_p4) }
  0x1e   : > { %s8255_s3 = sld [smem:[#allocation11_spill]] (!%p5386_p4)  ;;  %s8257_s23 = sld [smem:[#allocation16_spill]] (!%p5386_p4) }
  0x1f   : > { %s6853_s5 = smov (!%p5386_p4), 112   ;;  %s6854_s6 = smov (!%p5386_p4), 96  }
  0x20   : > { %s8258_s1 = sld [smem:[#allocation19_spill]] (!%p5386_p4)  ;;  %s8259_s30 = sld [smem:[#allocation18_spill]] (!%p5386_p4) }
  0x21   : > { %v744_v0 = vld [vmem:[%s8252_s27] sm:$0x3] (!%p5386_p4)  ;;  %v745_v1 = vld [vmem:[%s8252_s27 + $0x2] sm:$0x3] (!%p5386_p4)  ;;  %s8261_s9 = sld [smem:[#allocation20_spill]] (!%p5386_p4) }
  0x22   : > { %v801_v2 = vld [vmem:[%s8253_s0 + $0x80] sm:$0xff]  ;;  %747 = vst.msk [vmem:[#allocation3] sm:$0x3] %vm746_vm0, %v744_v0  ;;  %748 = vst.msk [vmem:[#allocation3 + $0x2] sm:$0x3] %vm746_vm0, %v745_v1  ;;  %v802_v5 = vld [vmem:[%s8253_s0 + $0x88] sm:$0xff] }
  0x23   : > { %v749_v3 = vld [vmem:[%s8254_s7] sm:$0x3]  ;;  %v750_v4 = vld [vmem:[%s8254_s7 + $0x2] sm:$0x3]  ;;  %v6327_v6 = vpack.c.bf16 %v802_v5, %v801_v2  ;;  %v786_v8 = vld [vmem:[%s8253_s0 + $0x8] sm:$0xff]  ;;  %s8256_s7 = sld [smem:[#allocation17_spill]] }
  0x24   : > { %751 = vst.msk [vmem:[#allocation4] sm:$0x3] %vm746_vm0, %v749_v3  ;;  %752 = vst.msk [vmem:[#allocation4 + $0x2] sm:$0x3] %vm746_vm0, %v750_v4  ;;  %v785_v7 = vld [vmem:[%s8253_s0] sm:$0xff]  ;;  %v834_v11 = vld [vmem:[%s8253_s0 + $0x188] sm:$0xff] }
  0x25   : > { %v833_v9 = vld [vmem:[%s8253_s0 + $0x180] sm:$0xff]  ;;  %v6329_v10 = vpack.c.bf16 %v786_v8, %v785_v7  ;;  %v818_v13 = vld [vmem:[%s8253_s0 + $0x108] sm:$0xff]  ;;  %6328 = vmatprep.subr.bf16.mxu0 %v6327_v6  ;;  %v803_v16 = vld [vmem:[%s8253_s0 + $0x90] sm:$0xff] }
  0x26   : > { %v817_v12 = vld [vmem:[%s8253_s0 + $0x100] sm:$0xff]  ;;  %v6359_v14 = vpack.c.bf16 %v834_v11, %v833_v9  ;;  %v804_v17 = vld [vmem:[%s8253_s0 + $0x98] sm:$0xff]  ;;  %v787_v18 = vld [vmem:[%s8253_s0 + $0x10] sm:$0xff] }
  0x27   : > { %v6361_v15 = vpack.c.bf16 %v818_v13, %v817_v12  ;;  %6330 = vmatpush3.bf16.msra.mxu0 %v6329_v10  ;;  %v6331_v19 = vpack.c.bf16 %v804_v17, %v803_v16  ;;  %v788_v20 = vld [vmem:[%s8253_s0 + $0x18] sm:$0xff]  ;;  %v835_v21 = vld [vmem:[%s8253_s0 + $0x190] sm:$0xff]  ;;  %v805_v27 = vld [vmem:[%s8253_s0 + $0xa0] sm:$0xff] }
  0x28   : > { %v836_v22 = vld [vmem:[%s8253_s0 + $0x198] sm:$0xff]  ;;  %6360 = vmatprep.subr.bf16.mxu1 %v6359_v14  ;;  %v6333_v23 = vpack.c.bf16 %v788_v20, %v787_v18  ;;  %v819_v25 = vld [vmem:[%s8253_s0 + $0x110] sm:$0xff]  ;;  %v806_v29 = vld [vmem:[%s8253_s0 + $0xa8] sm:$0xff] }
  0x29   : > { %v6363_v24 = vpack.c.bf16 %v836_v22, %v835_v21  ;;  %v820_v26 = vld [vmem:[%s8253_s0 + $0x118] sm:$0xff]  ;;  %6362 = vmatpush3.bf16.msra.mxu1 %v6361_v15  ;;  %6332 = vmatprep.subr.bf16.mxu0 %v6331_v19  ;;  %v789_v30 = vld [vmem:[%s8253_s0 + $0x20] sm:$0xff]  ;;  %v790_v31 = vld [vmem:[%s8253_s0 + $0x28] sm:$0xff]  ;;  %v6335_v32 = vpack.c.bf16 %v806_v29, %v805_v27 }
  0x2a   : > { %v6365_v28 = vpack.c.bf16 %v820_v26, %v819_v25  ;;  %v837_v33 = vld [vmem:[%s8253_s0 + $0x1a0] sm:$0xff]  ;;  %v838_v34 = vld [vmem:[%s8253_s0 + $0x1a8] sm:$0xff]  ;;  %v6337_v36 = vpack.c.bf16 %v790_v31, %v789_v30  ;;  %v807_v39 = vld [vmem:[%s8253_s0 + $0xb0] sm:$0xff] }
  0x2b   : > { %6364 = vmatprep.subr.bf16.mxu1 %v6363_v24  ;;  %v821_v35 = vld [vmem:[%s8253_s0 + $0x120] sm:$0xff]  ;;  %6334 = vmatpush3.bf16.msra.mxu0 %v6333_v23  ;;  %v6367_v37 = vpack.c.bf16 %v838_v34, %v837_v33  ;;  %v822_v38 = vld [vmem:[%s8253_s0 + $0x128] sm:$0xff]  ;;  %v808_v40 = vld [vmem:[%s8253_s0 + $0xb8] sm:$0xff] }
  0x2c   : > { %6336 = vmatprep.subr.bf16.mxu0 %v6335_v32  ;;  %v6339_v41 = vpack.c.bf16 %v808_v40, %v807_v39  ;;  %v791_v42 = vld [vmem:[%s8253_s0 + $0x30] sm:$0xff]  ;;  %v792_v43 = vld [vmem:[%s8253_s0 + $0x38] sm:$0xff]  ;;  %v6369_v45 = vpack.c.bf16 %v822_v38, %v821_v35  ;;  %v809_v50 = vld [vmem:[%s8253_s0 + $0xc0] sm:$0xff] }
  0x2d   : > { %v839_v44 = vld [vmem:[%s8253_s0 + $0x1b0] sm:$0xff]  ;;  %6366 = vmatpush3.bf16.msra.mxu1 %v6365_v28  ;;  %v840_v46 = vld [vmem:[%s8253_s0 + $0x1b8] sm:$0xff]  ;;  %v810_v51 = vld [vmem:[%s8253_s0 + $0xc8] sm:$0xff]  ;;  %v6341_v52 = vpack.c.bf16 %v792_v43, %v791_v42 }
  0x2e   : > { %v823_v47 = vld [vmem:[%s8253_s0 + $0x130] sm:$0xff]  ;;  %6368 = vmatprep.subr.bf16.mxu1 %v6367_v37  ;;  %v6371_v48 = vpack.c.bf16 %v840_v46, %v839_v44  ;;  %v824_v49 = vld [vmem:[%s8253_s0 + $0x138] sm:$0xff]  ;;  %v841_v53 = vld [vmem:[%s8253_s0 + $0x1c0] sm:$0xff]  ;;  %v6343_v55 = vpack.c.bf16 %v810_v51, %v809_v50 }
  0x2f   : > { %6338 = vmatpush3.bf16.msra.mxu0 %v6337_v36  ;;  %v842_v54 = vld [vmem:[%s8253_s0 + $0x1c8] sm:$0xff]  ;;  %v793_v56 = vld [vmem:[%s8253_s0 + $0x40] sm:$0xff]  ;;  %v6373_v58 = vpack.c.bf16 %v824_v49, %v823_v47  ;;  %v811_v59 = vld [vmem:[%s8253_s0 + $0xd0] sm:$0xff] }
  0x30   : > { %6340 = vmatprep.subr.bf16.mxu0 %v6339_v41  ;;  %v794_v57 = vld [vmem:[%s8253_s0 + $0x48] sm:$0xff]  ;;  %v812_v60 = vld [vmem:[%s8253_s0 + $0xd8] sm:$0xff]  ;;  %v6375_v61 = vpack.c.bf16 %v842_v54, %v841_v53  ;;  %v825_v62 = vld [vmem:[%s8253_s0 + $0x140] sm:$0xff] }
  0x31   : > { %6370 = vmatpush3.bf16.msra.mxu1 %v6369_v45  ;;  %v826_v63 = vld [vmem:[%s8253_s0 + $0x148] sm:$0xff]  ;;  %v6345_v0 = vpack.c.bf16 %v794_v57, %v793_v56  ;;  %v843_v1 = vld [vmem:[%s8253_s0 + $0x1d0] sm:$0xff]  ;;  %v844_v2 = vld [vmem:[%s8253_s0 + $0x1d8] sm:$0xff]  ;;  %v6347_v3 = vpack.c.bf16 %v812_v60, %v811_v59 }
  0x32   : > { %6372 = vmatprep.subr.bf16.mxu1 %v6371_v48  ;;  %v795_v4 = vld [vmem:[%s8253_s0 + $0x50] sm:$0xff]  ;;  %v796_v5 = vld [vmem:[%s8253_s0 + $0x58] sm:$0xff]  ;;  %v6377_v6 = vpack.c.bf16 %v826_v63, %v825_v62  ;;  %v813_v7 = vld [vmem:[%s8253_s0 + $0xe0] sm:$0xff]  ;;  %v6379_v9 = vpack.c.bf16 %v844_v2, %v843_v1  ;;  %v6850_v1 = vmov 0.0|0.0  }
  0x33   : > { %6342 = vmatpush3.bf16.msra.mxu0 %v6341_v52  ;;  %v814_v8 = vld [vmem:[%s8253_s0 + $0xe8] sm:$0xff]  ;;  %v827_v10 = vld [vmem:[%s8253_s0 + $0x150] sm:$0xff]  ;;  %v828_v11 = vld [vmem:[%s8253_s0 + $0x158] sm:$0xff]  ;;  %v6349_v12 = vpack.c.bf16 %v796_v5, %v795_v4 }
  0x34   : > { %6344 = vmatprep.subr.bf16.mxu0 %v6343_v55  ;;  %v845_v13 = vld [vmem:[%s8253_s0 + $0x1e0] sm:$0xff]  ;;  %v846_v14 = vld [vmem:[%s8253_s0 + $0x1e8] sm:$0xff]  ;;  %v6351_v15 = vpack.c.bf16 %v814_v8, %v813_v7  ;;  %v6381_v19 = vpack.c.bf16 %v828_v11, %v827_v10  ;;  %v815_v20 = vld [vmem:[%s8253_s0 + $0xf0] sm:$0xff] }
  0x35   : > { %6374 = vmatpush3.bf16.msra.mxu1 %v6373_v58  ;;  %v797_v16 = vld [vmem:[%s8253_s0 + $0x60] sm:$0xff]  ;;  %v798_v17 = vld [vmem:[%s8253_s0 + $0x68] sm:$0xff]  ;;  %v816_v21 = vld [vmem:[%s8253_s0 + $0xf8] sm:$0xff]  ;;  %v6383_v23 = vpack.c.bf16 %v846_v14, %v845_v13 }
  0x36   : > { %6376 = vmatprep.subr.bf16.mxu1 %v6375_v61  ;;  %v754_v18 = vld [vmem:[%s8255_s3 + $0x8] sm:$0xff]  ;;  %v756_v22 = vld [vmem:[%s8255_s3 + $0x18] sm:$0xff]  ;;  %v829_v24 = vld [vmem:[%s8253_s0 + $0x160] sm:$0xff]  ;;  %v6353_v26 = vpack.c.bf16 %v798_v17, %v797_v16  ;;  %v6355_v29 = vpack.c.bf16 %v816_v21, %v815_v20  ;;  %v6852_v16 = vmov 0.0  }
  0x37   : > { %6346 = vmatpush3.bf16.msra.mxu0 %v6345_v0  ;;  %920 = vmatprep.mubr.f32.mxu0 %v754_v18  ;;  %v830_v25 = vld [vmem:[%s8253_s0 + $0x168] sm:$0xff]  ;;  %v847_v27 = vld [vmem:[%s8253_s0 + $0x1f0] sm:$0xff]  ;;  %v848_v28 = vld [vmem:[%s8253_s0 + $0x1f8] sm:$0xff] }
  0x38   : > { %6348 = vmatprep.subr.bf16.mxu0 %v6347_v3  ;;  %1025 = vmatprep.mubr.f32.mxu1 %v756_v22  ;;  %v799_v30 = vld [vmem:[%s8253_s0 + $0x70] sm:$0xff]  ;;  %v800_v31 = vld [vmem:[%s8253_s0 + $0x78] sm:$0xff]  ;;  %v6385_v32 = vpack.c.bf16 %v830_v25, %v829_v24  ;;  %v6387_v33 = vpack.c.bf16 %v848_v28, %v847_v27  ;;  %v753_v38 = vld [vmem:[%s8255_s3] sm:$0xff] }
  0x39   : > { %6378 = vmatpush3.bf16.msra.mxu1 %v6377_v6  ;;  %v831_v34 = vld [vmem:[%s8253_s0 + $0x170] sm:$0xff]  ;;  %v832_v35 = vld [vmem:[%s8253_s0 + $0x178] sm:$0xff]  ;;  %v6357_v36 = vpack.c.bf16 %v800_v31, %v799_v30  ;;  %v758_v39 = vld [vmem:[%s8255_s3 + $0x28] sm:$0xff] }
  0x3a   : > { %6380 = vmatprep.subr.bf16.mxu1 %v6379_v9  ;;  %v6389_v37 = vpack.c.bf16 %v832_v35, %v831_v34  ;;  %v755_v40 = vld [vmem:[%s8255_s3 + $0x10] sm:$0xff]  ;;  %v760_v41 = vld [vmem:[%s8255_s3 + $0x38] sm:$0xff]  ;;  %v757_v42 = vld [vmem:[%s8255_s3 + $0x20] sm:$0xff] }
  0x3b   : > { %6350 = vmatpush3.bf16.msra.mxu0 %v6349_v12  ;;  %v762_v43 = vld [vmem:[%s8255_s3 + $0x48] sm:$0xff]  ;;  %v759_v44 = vld [vmem:[%s8255_s3 + $0x30] sm:$0xff]  ;;  %v764_v45 = vld [vmem:[%s8255_s3 + $0x58] sm:$0xff] }
  0x3c   : > { %6352 = vmatprep.subr.bf16.mxu0 %v6351_v15  ;;  %v761_v46 = vld [vmem:[%s8255_s3 + $0x40] sm:$0xff]  ;;  %v766_v47 = vld [vmem:[%s8255_s3 + $0x68] sm:$0xff]  ;;  %v763_v48 = vld [vmem:[%s8255_s3 + $0x50] sm:$0xff] }
  0x3d   : > { %6382 = vmatpush3.bf16.msra.mxu1 %v6381_v19  ;;  %v768_v49 = vld [vmem:[%s8255_s3 + $0x78] sm:$0xff]  ;;  %v765_v50 = vld [vmem:[%s8255_s3 + $0x60] sm:$0xff]  ;;  %v770_v51 = vld [vmem:[%s8255_s3 + $0x88] sm:$0xff] }
  0x3e   : > { %6384 = vmatprep.subr.bf16.mxu1 %v6383_v23  ;;  %v767_v52 = vld [vmem:[%s8255_s3 + $0x70] sm:$0xff]  ;;  %v772_v53 = vld [vmem:[%s8255_s3 + $0x98] sm:$0xff]  ;;  %v769_v54 = vld [vmem:[%s8255_s3 + $0x80] sm:$0xff] }
  0x3f   : > { %6354 = vmatpush3.bf16.msra.mxu0 %v6353_v26  ;;  %v774_v55 = vld [vmem:[%s8255_s3 + $0xa8] sm:$0xff]  ;;  %v771_v56 = vld [vmem:[%s8255_s3 + $0x90] sm:$0xff]  ;;  %v776_v57 = vld [vmem:[%s8255_s3 + $0xb8] sm:$0xff] }
  0x40   : > { %6356 = vmatprep.subr.bf16.mxu0 %v6355_v29  ;;  %v773_v58 = vld [vmem:[%s8255_s3 + $0xa0] sm:$0xff]  ;;  %v775_v59 = vld [vmem:[%s8255_s3 + $0xb0] sm:$0xff]  ;;  %v780_v60 = vld [vmem:[%s8255_s3 + $0xd8] sm:$0xff] }
  0x41   : > { %6386 = vmatpush3.bf16.msra.mxu1 %v6385_v32  ;;  %v1074_v61 = vld [vmem:[%s8256_s7] sm:$0xff]  ;;  %v1075_v62 = vld [vmem:[%s8256_s7 + $0x8] sm:$0xff]  ;;  %v779_v63 = vld [vmem:[%s8255_s3 + $0xd0] sm:$0xff] }
  0x42   : > { %6388 = vmatprep.subr.bf16.mxu1 %v6387_v33  ;;  %v7301_v0 = vpack.c.bf16 %v1075_v62, %v1074_v61  ;;  %v5388_v2 = vld [vmem:[%s8256_s7 + $0x20] sm:$0xff]  ;;  %v5389_v3 = vld [vmem:[%s8256_s7 + $0x28] sm:$0xff]  ;;  %v784_v5 = vld [vmem:[%s8255_s3 + $0xf8] sm:$0xff] }
  0x43   : > { %6358 = vmatpush3.bf16.msra.mxu0 %v6357_v36  ;;  %v778_v4 = vld [vmem:[%s8255_s3 + $0xc8] sm:$0xff]  ;;  %v7318_v6 = vpack.c.bf16 %v5389_v3, %v5388_v2  ;;  %v1076_v7 = vld [vmem:[%s8256_s7 + $0x10] sm:$0xff]  ;;  %v777_v8 = vld [vmem:[%s8255_s3 + $0xc0] sm:$0xff] }
  0x44   : > { %6391 = vmatprep.subr.bf16.mxu0 %v6850_v1  ;;  %v783_v9 = vld [vmem:[%s8255_s3 + $0xf0] sm:$0xff]  ;;  %v1077_v10 = vld [vmem:[%s8256_s7 + $0x18] sm:$0xff]  ;;  %v782_v14 = vld [vmem:[%s8255_s3 + $0xe8] sm:$0xff] }
  0x45   : > { %6390 = vmatpush3.bf16.msra.mxu1 %v6389_v37  ;;  %v7333_v11 = vpack.c.bf16 %v1077_v10, %v1076_v7  ;;  %v5390_v12 = vld [vmem:[%s8256_s7 + $0x30] sm:$0xff]  ;;  %v5391_v13 = vld [vmem:[%s8256_s7 + $0x38] sm:$0xff]  ;;  %v781_v17 = vld [vmem:[%s8255_s3 + $0xe0] sm:$0xff]  ;;  %s8260_s3 = sld [smem:[#allocation12_spill]] }
  0x46   : > { %921 = vmatmul.mubr.f32.vlgmr.msra.gmra.mrb[0].mxu0 %v753_v38  ;;  %6397 = vmatprep.subr.bf16.mxu1 %v6850_v1  ;;  %v7347_v15 = vpack.c.bf16 %v5391_v13, %v5390_v12  ;;  %v7362_v19 = vld [vmem:[%s8257_s23] ss:$0 sm:$0xff]  ;;  %v5400_v28 = vld [vmem:[%s8256_s7 + $0x68] sm:$0xff] }
  0x47   : > { %925 = vmatprep.mubr.f32.mxu0 %v758_v39  ;;  %6393 = vmatpush3.bf16.msra.mxu0 %v7318_v6  ;;  %v5399_v27 = vld [vmem:[%s8256_s7 + $0x60] sm:$0xff] }
  0x48   : > { %1026 = vmatmul.mubr.f32.vlgmr.msra.gmra.mrb[0].mxu1 %v755_v40  ;;  %6394 = vmatprep.subr.bf16.mxu0 %v6850_v1  ;;  %v7371_v34 = vpack.c.bf16 %v5400_v28, %v5399_v27  ;;  %v5394_v39 = vld [vmem:[%s8256_s7 + $0x40] sm:$0xff]  ;;  %v5395_v40 = vld [vmem:[%s8256_s7 + $0x48] sm:$0xff] }
  0x49   : > { %1030 = vmatprep.mubr.f32.mxu1 %v760_v41  ;;  %6399 = vmatpush3.bf16.msra.mxu1 %v7301_v0 }
  0x4a   : > { %926 = vmatmul.mubr.f32.gmra.mrb[2].mxu0 %v757_v42  ;;  %6400 = vmatprep.subr.bf16.mxu1 %v6850_v1  ;;  %v5401_v42 = vld [vmem:[%s8256_s7 + $0x70] sm:$0xff] }
  0x4b   : > { %930 = vmatprep.mubr.f32.mxu0 %v762_v43  ;;  %6396 = vmatpush3.bf16.msra.mxu0 %v7347_v15  ;;  %v5402_v43 = vld [vmem:[%s8256_s7 + $0x78] sm:$0xff] }
  0x4c   : > { %1031 = vmatmul.mubr.f32.gmra.mrb[2].mxu1 %v759_v44  ;;  %6403 = vmatprep.subr.bf16.mxu0 %v6850_v1 }
  0x4d   : > { %1035 = vmatprep.mubr.f32.mxu1 %v764_v45  ;;  %6402 = vmatpush3.bf16.msra.mxu1 %v7333_v11 }
  0x4e   : > { %931 = vmatmul.mubr.f32.gmra.mrb[4].mxu0 %v761_v46  ;;  %6409 = vmatprep.subr.bf16.mxu1 %v6850_v1 }
  0x4f   : > { %935 = vmatprep.mubr.f32.mxu0 %v766_v47 }
  0x50   : > { %1036 = vmatmul.mubr.f32.gmra.mrb[4].mxu1 %v763_v48  ;;  %v7390_v48 = vpack.c.bf16 %v5395_v40, %v5394_v39 }
  0x51   : > { %1040 = vmatprep.mubr.f32.mxu1 %v768_v49 }
  0x52   : > { %936 = vmatmul.mubr.f32.gmra.mrb[6].mxu0 %v765_v50 }
  0x53   : > { %940 = vmatprep.mubr.f32.mxu0 %v770_v51 }
  0x54   : > { %1041 = vmatmul.mubr.f32.gmra.mrb[6].mxu1 %v767_v52 }
  0x55   : > { %1045 = vmatprep.mubr.f32.mxu1 %v772_v53  ;;  %v5396_v53 = vld [vmem:[%s8256_s7 + $0x50] sm:$0xff] }
  0x56   : > { %941 = vmatmul.mubr.f32.gmra.mrb[8].mxu0 %v769_v54  ;;  %v5397_v54 = vld [vmem:[%s8256_s7 + $0x58] sm:$0xff] }
  0x57   : > { %945 = vmatprep.mubr.f32.mxu0 %v774_v55  ;;  %v7403_v55 = vpack.c.bf16 %v5402_v43, %v5401_v42  ;;  %v7408_v61 = vpack.c.bf16 %v5397_v54, %v5396_v53 }
  0x58   : > { %1046 = vmatmul.mubr.f32.gmra.mrb[8].mxu1 %v771_v56 }
  0x59   : > { %1050 = vmatprep.mubr.f32.mxu1 %v776_v57 }
  0x5a   : > { %946 = vmatmul.mubr.f32.gmra.mrb[10].mxu0 %v773_v58 }
  0x5b   : > { %950 = vmatprep.mubr.f32.mxu0 %v778_v4 }
  0x5c   : > { %1051 = vmatmul.mubr.f32.gmra.mrb[10].mxu1 %v775_v59 }
  0x5d   : > { %1055 = vmatprep.mubr.f32.mxu1 %v780_v60 }
  0x5e   : > { %951 = vmatmul.mubr.f32.gmra.mrb[12].mxu0 %v777_v8 }
  0x5f   : > { %955 = vmatprep.mubr.f32.mxu0 %v782_v14 }
  0x60   : > { %1056 = vmatmul.mubr.f32.gmra.mrb[12].mxu1 %v779_v63 }
  0x61   : > { %1060 = vmatprep.mubr.f32.mxu1 %v784_v5 }
  0x62   : > { %956 = vmatmul.mubr.f32.gmra.mrb[14].mxu0 %v781_v17 }
  0x63   : > { %5868 = vmatprep.mubr.msk.f32.mxu0 %vm6851_vm1, %v6852_v16 }
  0x64   : > { %1061 = vmatmul.mubr.f32.gmra.mrb[14].mxu1 %v783_v9 }
  0x65   : > { %5879 = vmatprep.mubr.msk.f32.mxu1 %vm6851_vm1, %v6852_v16 }
 0x119   : > { %v5533_v18 = vpop.f32.mrb[0].mxu0 }
 0x11a   : > { %v5534_v20 = vpop.f32.mrb[1].mxu0 }
 0x11b   : > { %v5535_v21 = vadd.f32 %v5534_v20, %v5533_v18  ;;  %v5589_v22 = vpop.f32.mrb[0].mxu1 }
 0x11c   : > { %v5590_v23 = vpop.f32.mrb[1].mxu1 }
 0x11d   : > { %v923_v24 = vadd.f32 %v5535_v21, %v7362_v19  ;;  %v5591_v25 = vadd.f32 %v5590_v23, %v5589_v22  ;;  %v5536_v26 = vpop.f32.mrb[2].mxu0 }
 0x11e   : > { %v5537_v29 = vpop.f32.mrb[3].mxu0 }
 0x11f   : > { %v1028_v30 = vadd.f32 %v5591_v25, %v923_v24  ;;  %v5538_v31 = vadd.f32 %v5537_v29, %v5536_v26  ;;  %v5592_v32 = vpop.f32.mrb[2].mxu1 }
 0x120   : > { %v5593_v33 = vpop.f32.mrb[3].mxu1 }
 0x121   : > { %v7373_v35 = vmax.f32 %v1028_v30, 0.0  ;;  %v928_v36 = vadd.f32 %v5538_v31, %v7362_v19  ;;  %v5594_v37 = vadd.f32 %v5593_v33, %v5592_v32  ;;  %v5539_v38 = vpop.f32.mrb[4].mxu0 }
 0x122   : > { %v5540_v41 = vpop.f32.mrb[5].mxu0 }
 0x123   : > { %v1033_v44 = vadd.f32 %v5594_v37, %v928_v36  ;;  %v5541_v45 = vadd.f32 %v5540_v41, %v5539_v38  ;;  %v5595_v46 = vpop.f32.mrb[4].mxu1  ;;  %5880 = vmatmul.mubr.msk.f32.vlgmr.msra.gmra.mrb[16].mxu1 %vm1083_vm2, %v7373_v35 }
 0x124   : > { %v5596_v47 = vpop.f32.mrb[5].mxu1  ;;  %6411 = vmatpush3.bf16.msra.mxu1 %v7371_v34  ;;  %5901 = vmatprep.mubr.msk.f32.mxu1 %vm6851_vm1, %v6852_v16 }
 0x125   : > { %v1067_v49 = vmax.f32 %v1033_v44, 0.0  ;;  %v933_v50 = vadd.f32 %v5541_v45, %v7362_v19  ;;  %v5597_v51 = vadd.f32 %v5596_v47, %v5595_v46  ;;  %v5542_v52 = vpop.f32.mrb[6].mxu0  ;;  %6412 = vmatprep.subr.bf16.mxu1 %v6850_v1 }
 0x126   : > { %v5543_v56 = vpop.f32.mrb[7].mxu0 }
 0x127   : > { %v1038_v57 = vadd.f32 %v5597_v51, %v933_v50  ;;  %v5544_v58 = vadd.f32 %v5543_v56, %v5542_v52  ;;  %v5598_v59 = vpop.f32.mrb[6].mxu1  ;;  %1401 = vrot.lane.b32.xlu0 %v1067_v49, %s6853_s5  ;;  %5869 = vmatmul.mubr.msk.f32.vlgmr.msra.gmra.mrb[16].mxu0 %vm1083_vm2, %v1067_v49 }
 0x128   : > { %6405 = vmatpush3.bf16.msra.mxu0 %v7390_v48  ;;  %v5599_v60 = vpop.f32.mrb[7].mxu1  ;;  %5890 = vmatprep.mubr.msk.f32.mxu0 %vm6851_vm1, %v6852_v16 }
 0x129   : > { %v7412_v62 = vmax.f32 %v1038_v57, 0.0  ;;  %v938_v63 = vadd.f32 %v5544_v58, %v7362_v19  ;;  %v5600_v2 = vadd.f32 %v5599_v60, %v5598_v59  ;;  %6406 = vmatprep.subr.bf16.mxu0 %v6850_v1  ;;  %6414 = vmatpush3.bf16.msra.mxu1 %v7403_v55  ;;  %v5545_v3 = vpop.f32.mrb[8].mxu0 }
 0x12a   : > { %v5546_v4 = vpop.f32.mrb[9].mxu0  ;;  %6421 = vmatprep.subr.bf16.mxu1 %v6850_v1 }
 0x12b   : > { %v1043_v5 = vadd.f32 %v5600_v2, %v938_v63  ;;  %1549 = vrot.lane.b32.xlu1 %v7412_v62, %s6853_s5  ;;  %1475 = vrot.lane.b32.xlu0 %v7373_v35, %s6853_s5  ;;  %v5547_v7 = vadd.f32 %v5546_v4, %v5545_v3  ;;  %v5601_v8 = vpop.f32.mrb[8].mxu1  ;;  %v5412_v63 = vld [vmem:[%s8258_s1 + $0x38] sm:$0xff]  ;;  %v5409_v4 = vld [vmem:[%s8258_s1 + $0x20] sm:$0xff] }
 0x12c   : > { %6408 = vmatpush3.bf16.msra.mxu0 %v7408_v61  ;;  %v5602_v9 = vpop.f32.mrb[9].mxu1 }
 0x12d   : > { %v7423_v10 = vmax.f32 %v1043_v5, 0.0  ;;  %v943_v12 = vadd.f32 %v5547_v7, %v7362_v19  ;;  %v5548_v13 = vpop.f32.mrb[10].mxu0  ;;  %v5603_v14 = vadd.f32 %v5602_v9, %v5601_v8  ;;  %6415 = vmatprep.subr.bf16.mxu0 %v6850_v1  ;;  %v5411_v5 = vld [vmem:[%s8258_s1 + $0x30] sm:$0xff] }
 0x12e   : > { %v5549_v17 = vpop.f32.mrb[11].mxu0  ;;  %v6441_v9 = vpack.c.bf16 %v5411_v5, %v5409_v4 }
 0x12f   : > { %5891 = vmatmul.mubr.msk.f32.vlgmr.msra.gmra.mrb[18].mxu0 %vm1083_vm2, %v7412_v62  ;;  %1624 = vrot.lane.b32.xlu1 %v7423_v10, %s6853_s5  ;;  %v5550_v18 = vadd.f32 %v5549_v17, %v5548_v13  ;;  %v1048_v20 = vadd.f32 %v5603_v14, %v943_v12  ;;  %v5604_v21 = vpop.f32.mrb[10].mxu1  ;;  %v1400_v12 = vld [vmem:[%s8258_s1 + $0x18] sm:$0xff] }
 0x130   : > { %1855 = vrot.lane.b32.xlu0 %v1067_v49, %s6854_s6  ;;  %5902 = vmatmul.mubr.msk.f32.vlgmr.msra.gmra.mrb[18].mxu1 %vm1083_vm2, %v7423_v10  ;;  %v5605_v22 = vpop.f32.mrb[11].mxu1 }
 0x131   : > { %v948_v23 = vadd.f32 %v5550_v18, %v7362_v19  ;;  %v5606_v24 = vadd.f32 %v5605_v22, %v5604_v21  ;;  %6417 = vmatpush3.bf16.msra.mxu0 %v7318_v6  ;;  %6423 = vmatpush3.bf16.msra.mxu1 %v7301_v0  ;;  %v7445_v26 = vmax.f32 %v1048_v20, 0.0  ;;  %v5551_v32 = vpop.f32.mrb[12].mxu0 }
 0x132   : > { %6418 = vmatprep.subr.bf16.mxu0 %v6850_v1  ;;  %5912 = vmatprep.mubr.msk.f32.mxu0 %vm6851_vm1, %v6852_v16  ;;  %v5552_v36 = vpop.f32.mrb[13].mxu0 }
 0x133   : > { %1929 = vrot.lane.b32.xlu1 %v7373_v35, %s6854_s6  ;;  %v1053_v25 = vadd.f32 %v5606_v24, %v948_v23  ;;  %6424 = vmatprep.subr.bf16.mxu1 %v6850_v1  ;;  %v5607_v28 = vpop.f32.mrb[12].mxu1  ;;  %v5553_v37 = vadd.f32 %v5552_v36, %v5551_v32 }
 0x134   : > { %2003 = vrot.lane.b32.xlu0 %v7412_v62, %s6854_s6  ;;  %5923 = vmatprep.mubr.msk.f32.mxu1 %vm6851_vm1, %v6852_v16  ;;  %v5608_v29 = vpop.f32.mrb[13].mxu1 }
 0x135   : > { %6420 = vmatpush3.bf16.msra.mxu0 %v7347_v15  ;;  %6426 = vmatpush3.bf16.msra.mxu1 %v7333_v11  ;;  %v7455_v27 = vmax.f32 %v1053_v25, 0.0  ;;  %v5609_v30 = vadd.f32 %v5608_v29, %v5607_v28  ;;  %v5554_v38 = vpop.f32.mrb[14].mxu0  ;;  %v953_v41 = vadd.f32 %v5553_v37, %v7362_v19 }
 0x136   : > { %6427 = vmatprep.subr.bf16.mxu0 %v6850_v1  ;;  %6433 = vmatprep.subr.bf16.mxu1 %v6850_v1  ;;  %v5555_v39 = vpop.f32.mrb[15].mxu0 }
 0x137   : > { %2078 = vrot.lane.b32.xlu1 %v7423_v10, %s6854_s6  ;;  %v5610_v31 = vpop.f32.mrb[14].mxu1  ;;  %v5556_v40 = vadd.f32 %v5555_v39, %v5554_v38  ;;  %v1058_v44 = vadd.f32 %v5609_v30, %v953_v41  ;;  %v1397_v39 = vld [vmem:[%s8258_s1] sm:$0xff] }
 0x138   : > { %2747 = vrot.lane.b32.xlu0 %v7445_v26, %s6853_s5  ;;  %v5611_v33 = vpop.f32.mrb[15].mxu1  ;;  %v7658_v41 = vld [vmem:[%s8259_s30] ss:$0 sm:$0xff] }
 0x139   : > { %v5612_v35 = vadd.f32 %v5611_v33, %v5610_v31  ;;  %v958_v42 = vadd.f32 %v5556_v40, %v7362_v19  ;;  %v7469_v46 = vmax.f32 %v1058_v44, 0.0  ;;  %v1399_v40 = vld [vmem:[%s8258_s1 + $0x10] sm:$0xff] }
 0x13b   : > { %2822 = vrot.lane.b32.xlu1 %v7455_v27, %s6853_s5  ;;  %v1063_v43 = vadd.f32 %v5612_v35, %v958_v42 }
 0x13c   : > { %3120 = vrot.lane.b32.xlu0 %v7445_v26, %s6854_s6 }
 0x13d   : > { %v7467_v45 = vmax.f32 %v1063_v43, 0.0  ;;  %v6445_v43 = vpack.c.bf16 %v1399_v40, %v1397_v39 }
 0x13f   : > { %3195 = vrot.lane.b32.xlu1 %v7455_v27, %s6854_s6 }
 0x140   : > { %3864 = vrot.lane.b32.xlu0 %v7469_v46, %s6853_s5 }
 0x143   : > { %3939 = vrot.lane.b32.xlu1 %v7467_v45, %s6853_s5 }
 0x144   : > { %4237 = vrot.lane.b32.xlu0 %v7469_v46, %s6854_s6 }
 0x147   : > { %4312 = vrot.lane.b32.xlu1 %v7467_v45, %s6854_s6 }
 0x199   : > { %v1402_v47 = vpop.permute.xlu0 %1401 }
 0x19a   : > { %5913 = vmatmul.mubr.msk.f32.vlgmr.msra.gmra.mrb[20].mxu0 %vm1083_vm2, %v1402_v47 }
 0x19b   : > { %6429 = vmatpush3.bf16.msra.mxu0 %v7390_v48  ;;  %5934 = vmatprep.mubr.msk.f32.mxu0 %vm6851_vm1, %v6852_v16 }
 0x19c   : > { %6430 = vmatprep.subr.bf16.mxu0 %v6850_v1 }
 0x19d   : > { %v1476_v19 = vpop.permute.xlu0 %1475  ;;  %v1550_v49 = vpop.permute.xlu1 %1549 }
 0x19e   : > { %5924 = vmatmul.mubr.msk.f32.vlgmr.msra.gmra.mrb[20].mxu1 %vm1083_vm2, %v1476_v19 }
 0x19f   : > { %6432 = vmatpush3.bf16.msra.mxu0 %v7408_v61  ;;  %6435 = vmatpush3.bf16.msra.mxu1 %v7371_v34 }
 0x1a0   : > { %6436 = vmatprep.subr.bf16.mxu1 %v6850_v1  ;;  %5945 = vmatprep.mubr.msk.f32.mxu1 %vm6851_vm1, %v6852_v16 }
 0x1a1   : > { %v7494_v50 = vpop.permute.xlu1 %1624 }
 0x1a2   : > { %5935 = vmatmul.mubr.msk.f32.vlgmr.msra.gmra.mrb[22].mxu0 %vm1083_vm2, %v1550_v49  ;;  %v1856_v51 = vpop.permute.xlu0 %1855 }
 0x1a3   : > { %6438 = vmatpush3.bf16.msra.mxu1 %v7403_v55  ;;  %1774 = vmatprep.mubr.f32.mxu0 %v6852_v16 }
 0x1a4   : > { %6447 = vmatprep.subr.bf16.mxu1 %v6850_v1 }
 0x1a5   : > { %v7543_v53 = vpop.permute.xlu1 %1929 }
 0x1a6   : > { %5946 = vmatmul.mubr.msk.f32.vlgmr.msra.gmra.mrb[22].mxu1 %vm1083_vm2, %v7494_v50  ;;  %v7511_v52 = vpop.permute.xlu0 %2003 }
 0x1a7   : > { %6449 = vmatpush3.bf16.msra.mxu1 %v7318_v6  ;;  %5956 = vmatprep.mubr.msk.f32.mxu1 %vm6851_vm1, %v6852_v16 }
 0x1a8   : > { %6450 = vmatprep.subr.bf16.mxu1 %v6850_v1 }
 0x1a9   : > { %v7548_v54 = vpop.permute.xlu1 %2078 }
 0x1aa   : > { %v7563_v57 = vpop.permute.xlu0 %2747 }
 0x1ab   : > { %6452 = vmatpush3.bf16.msra.mxu1 %v7347_v15 }
 0x1ac   : > { %6459 = vmatprep.subr.bf16.mxu1 %v6850_v1 }
 0x1ad   : > { %v2823_v56 = vpop.permute.xlu1 %2822 }
 0x1ae   : > { %5957 = vmatmul.mubr.msk.f32.vlgmr.msra.gmra.mrb[24].mxu1 %vm1083_vm2, %v1856_v51  ;;  %v7572_v58 = vpop.permute.xlu0 %3120 }
 0x1af   : > { %6461 = vmatpush3.bf16.msra.mxu1 %v7390_v48  ;;  %5978 = vmatprep.mubr.msk.f32.mxu1 %vm6851_vm1, %v6852_v16 }
 0x1b0   : > { %6462 = vmatprep.subr.bf16.mxu1 %v6850_v1 }
 0x1b1   : > { %v7632_v23 = vpop.permute.xlu1 %3195 }
 0x1b3   : > { %6464 = vmatpush3.bf16.msra.mxu1 %v7408_v61 }
 0x1b4   : > { %6475 = vmatprep.subr.bf16.mxu1 %v6850_v1 }
 0x1b5   : > { %v3940_v24 = vpop.permute.xlu1 %3939 }
 0x1b6   : > { %5979 = vmatmul.mubr.msk.f32.vlgmr.msra.gmra.mrb[26].mxu1 %vm1083_vm2, %v7511_v52 }
 0x1b7   : > { %6477 = vmatpush3.bf16.msra.mxu1 %v7318_v6  ;;  %6000 = vmatprep.mubr.msk.f32.mxu1 %vm6851_vm1, %v6852_v16 }
 0x1b8   : > { %6478 = vmatprep.subr.bf16.mxu1 %v6850_v1 }
 0x1b9   : > { %v4313_v25 = vpop.permute.xlu1 %4312 }
 0x1bb   : > { %6480 = vmatpush3.bf16.msra.mxu1 %v7347_v15 }
 0x1bc   : > { %6481 = vmatprep.subr.bf16.mxu1 %v6850_v1 }
 0x1be   : > { %6001 = vmatmul.mubr.msk.f32.vlgmr.msra.gmra.mrb[28].mxu1 %vm1083_vm2, %v7423_v10  ;;  %v1398_v10 = vld [vmem:[%s8258_s1 + $0x8] sm:$0xff] }
 0x1bf   : > { %6483 = vmatpush3.bf16.msra.mxu1 %v7301_v0  ;;  %6011 = vmatprep.mubr.msk.f32.mxu1 %vm6851_vm1, %v6852_v16  ;;  %v6443_v13 = vpack.c.bf16 %v1400_v12, %v1398_v10 }
 0x1c0   : > { %6484 = vmatprep.subr.bf16.mxu1 %v6850_v1 }
 0x1c3   : > { %6486 = vmatpush3.bf16.msra.mxu1 %v7333_v11 }
 0x1c4   : > { %6493 = vmatprep.subr.bf16.mxu1 %v6850_v1 }
 0x1c6   : > { %6012 = vmatmul.mubr.msk.f32.vlgmr.msra.gmra.mrb[30].mxu1 %vm1083_vm2, %v7412_v62  ;;  %v5410_v62 = vld [vmem:[%s8258_s1 + $0x28] sm:$0xff] }
 0x1c7   : > { %6495 = vmatpush3.bf16.msra.mxu1 %v7371_v34  ;;  %6033 = vmatprep.mubr.msk.f32.mxu1 %vm6851_vm1, %v6852_v16  ;;  %v6439_v3 = vpack.c.bf16 %v5412_v63, %v5410_v62 }
 0x1c8   : > { %6496 = vmatprep.subr.bf16.mxu1 %v6850_v1 }
 0x1c9   : > { %6440 = vmatprep.subr.bf16.mxu0 %v6439_v3 }
 0x1ca   : > { %6442 = vmatpush1.bf16.msra.mxu0 %v6441_v9 }
 0x1cb   : > { %6498 = vmatpush3.bf16.msra.mxu1 %v7403_v55  ;;  %6444 = vmatprep.subr.bf16.mxu0 %v6443_v13 }
 0x1cc   : > { %6509 = vmatprep.subr.bf16.mxu1 %v6850_v1 }
 0x1ce   : > { %6034 = vmatmul.mubr.msk.f32.vlgmr.msra.gmra.mrb[32].mxu1 %vm1083_vm2, %v7455_v27 }
 0x1cf   : > { %6511 = vmatpush3.bf16.msra.mxu1 %v7301_v0  ;;  %6055 = vmatprep.mubr.msk.f32.mxu1 %vm6851_vm1, %v6852_v16 }
 0x1d0   : > { %6512 = vmatprep.subr.bf16.mxu1 %v6850_v1 }
 0x1d3   : > { %6514 = vmatpush3.bf16.msra.mxu1 %v7333_v11 }
 0x1d4   : > { %6521 = vmatprep.subr.bf16.mxu1 %v6850_v1 }
 0x1d6   : > { %6056 = vmatmul.mubr.msk.f32.vlgmr.msra.gmra.mrb[34].mxu1 %vm1083_vm2, %v1550_v49 }
 0x1d7   : > { %6523 = vmatpush3.bf16.msra.mxu1 %v7371_v34  ;;  %6077 = vmatprep.mubr.msk.f32.mxu1 %vm6851_vm1, %v6852_v16 }
 0x1d8   : > { %6524 = vmatprep.subr.bf16.mxu1 %v6850_v1 }
 0x1db   : > { %6526 = vmatpush3.bf16.msra.mxu1 %v7403_v55 }
 0x1dc   : > { %6531 = vmatprep.subr.bf16.mxu1 %v6850_v1 }
 0x1de   : > { %6078 = vmatmul.mubr.msk.f32.vlgmr.msra.gmra.mrb[36].mxu1 %vm1083_vm2, %v2823_v56 }
 0x1df   : > { %6533 = vmatpush3.bf16.msra.mxu1 %v7318_v6  ;;  %6088 = vmatprep.mubr.msk.f32.mxu1 %vm6851_vm1, %v6852_v16 }
 0x1e0   : > { %6534 = vmatprep.subr.bf16.mxu1 %v6850_v1 }
 0x1e3   : > { %6536 = vmatpush3.bf16.msra.mxu1 %v7347_v15 }
 0x1e4   : > { %6543 = vmatprep.subr.bf16.mxu1 %v6850_v1 }
 0x1e6   : > { %6089 = vmatmul.mubr.msk.f32.vlgmr.msra.gmra.mrb[38].mxu1 %vm1083_vm2, %v7548_v54 }
 0x1e7   : > { %6545 = vmatpush3.bf16.msra.mxu1 %v7390_v48  ;;  %6110 = vmatprep.mubr.msk.f32.mxu1 %vm6851_vm1, %v6852_v16 }
 0x1e8   : > { %6546 = vmatprep.subr.bf16.mxu1 %v6850_v1 }
 0x1eb   : > { %6548 = vmatpush3.bf16.msra.mxu1 %v7408_v61 }
 0x1ec   : > { %6559 = vmatprep.subr.bf16.mxu1 %v6850_v1 }
 0x1ee   : > { %6111 = vmatmul.mubr.msk.f32.vlgmr.msra.gmra.mrb[40].mxu1 %vm1083_vm2, %v7572_v58 }
 0x1ef   : > { %6561 = vmatpush3.bf16.msra.mxu1 %v7318_v6  ;;  %6132 = vmatprep.mubr.msk.f32.mxu1 %vm6851_vm1, %v6852_v16 }
 0x1f0   : > { %6562 = vmatprep.subr.bf16.mxu1 %v6850_v1 }
 0x1f3   : > { %6564 = vmatpush3.bf16.msra.mxu1 %v7347_v15 }
 0x1f4   : > { %6571 = vmatprep.subr.bf16.mxu1 %v6850_v1 }
 0x1f6   : > { %v1226_v59 = vpop.f32.mrb[16].mxu1  ;;  %6133 = vmatmul.mubr.msk.f32.vlgmr.msra.gmra.mrb[42].mxu1 %vm1083_vm2, %v7455_v27 }
 0x1f7   : > { %v5881_v60 = vpop.f32.mrb[17].mxu1  ;;  %6573 = vmatpush3.bf16.msra.mxu1 %v7390_v48  ;;  %6154 = vmatprep.mubr.msk.f32.mxu1 %vm6851_vm1, %v6852_v16 }
 0x1f8   : > { %6574 = vmatprep.subr.bf16.mxu1 %v6850_v1 }
 0x1fa   : > { %v1153_v2 = vpop.f32.mrb[16].mxu0 }
 0x1fb   : > { %v1227_v7 = vadd.f32 %v1226_v59, %v1153_v2  ;;  %v5870_v8 = vpop.f32.mrb[17].mxu0  ;;  %6576 = vmatpush3.bf16.msra.mxu1 %v7408_v61 }
 0x1fc   : > { %6587 = vmatprep.subr.bf16.mxu1 %v6850_v1 }
 0x1fe   : > { %6155 = vmatmul.mubr.msk.f32.vlgmr.msra.gmra.mrb[44].mxu1 %vm1083_vm2, %v7469_v46 }
 0x1ff   : > { %6589 = vmatpush3.bf16.msra.mxu1 %v7318_v6  ;;  %6176 = vmatprep.mubr.msk.f32.mxu1 %vm6851_vm1, %v6852_v16 }
 0x200   : > { %6590 = vmatprep.subr.bf16.mxu1 %v6850_v1 }
 0x202   : > { %v1304_v14 = vpop.f32.mrb[18].mxu0 }
 0x203   : > { %v1308_v17 = vadd.f32 %v1304_v14, %v1227_v7  ;;  %v5892_v18 = vpop.f32.mrb[19].mxu0  ;;  %v1383_v20 = vpop.f32.mrb[18].mxu1  ;;  %6592 = vmatpush3.bf16.msra.mxu1 %v7347_v15 }
 0x204   : > { %v5903_v21 = vpop.f32.mrb[19].mxu1  ;;  %6593 = vmatprep.subr.bf16.mxu1 %v6850_v1  ;;  %v5420_v18 = vld [vmem:[%s8258_s1 + $0x48] sm:$0xff] }
 0x205   : > { %v1387_v22 = vadd.f32 %v1383_v20, %v1308_v17  ;;  %v5422_v20 = vld [vmem:[%s8258_s1 + $0x58] sm:$0xff] }
 0x206   : > { %6177 = vmatmul.mubr.msk.f32.vlgmr.msra.gmra.mrb[46].mxu1 %vm1083_vm2, %v2823_v56  ;;  %v6471_v21 = vpack.c.bf16 %v5422_v20, %v5420_v18  ;;  %v5439_v18 = vld [vmem:[%s8258_s1 + $0x90] sm:$0xff] }
 0x207   : > { %6595 = vmatpush3.bf16.msra.mxu1 %v7301_v0  ;;  %6187 = vmatprep.mubr.msk.f32.mxu1 %vm6851_vm1, %v6852_v16  ;;  %v1395_v47 = vadd.f32 %v7658_v41, %v1387_v22  ;;  %v5419_v22 = vld [vmem:[%s8258_s1 + $0x40] sm:$0xff] }
 0x208   : > { %6596 = vmatprep.subr.bf16.mxu1 %v6850_v1 }
 0x209   : > { %v1396_v49 = vmax.f32 %v1395_v47, 0.0 }
 0x20b   : > { %6598 = vmatpush3.bf16.msra.mxu1 %v7333_v11 }
 0x20c   : > { %6605 = vmatprep.subr.bf16.mxu1 %v6850_v1 }
 0x20e   : > { %6188 = vmatmul.mubr.msk.f32.vlgmr.msra.gmra.mrb[48].mxu1 %vm1083_vm2, %v7563_v57 }
 0x20f   : > { %6607 = vmatpush3.bf16.msra.mxu1 %v7371_v34  ;;  %6209 = vmatprep.mubr.msk.f32.mxu1 %vm6851_vm1, %v6852_v16 }
 0x210   : > { %6608 = vmatprep.subr.bf16.mxu1 %v6850_v1 }
 0x213   : > { %6610 = vmatpush3.bf16.msra.mxu1 %v7403_v55 }
 0x214   : > { %6621 = vmatprep.subr.bf16.mxu1 %v6850_v1 }
 0x216   : > { %6210 = vmatmul.mubr.msk.f32.vlgmr.msra.gmra.mrb[50].mxu1 %vm1083_vm2, %v3940_v24  ;;  %v5421_v24 = vld [vmem:[%s8258_s1 + $0x50] sm:$0xff] }
 0x217   : > { %6623 = vmatpush3.bf16.msra.mxu1 %v7301_v0  ;;  %6231 = vmatprep.mubr.msk.f32.mxu1 %vm6851_vm1, %v6852_v16 }
 0x218   : > { %6624 = vmatprep.subr.bf16.mxu1 %v6850_v1 }
 0x21b   : > { %6626 = vmatpush3.bf16.msra.mxu1 %v7333_v11 }
 0x21c   : > { %6633 = vmatprep.subr.bf16.mxu1 %v6850_v1 }
 0x21e   : > { %6232 = vmatmul.mubr.msk.f32.vlgmr.msra.gmra.mrb[52].mxu1 %vm1083_vm2, %v7572_v58 }
 0x21f   : > { %6635 = vmatpush3.bf16.msra.mxu1 %v7371_v34  ;;  %6253 = vmatprep.mubr.msk.f32.mxu1 %vm6851_vm1, %v6852_v16 }
 0x220   : > { %6636 = vmatprep.subr.bf16.mxu1 %v6850_v1 }
 0x223   : > { %6638 = vmatpush3.bf16.msra.mxu1 %v7403_v55 }
 0x226   : > { %6254 = vmatmul.mubr.msk.f32.vlgmr.msra.gmra.mrb[54].mxu1 %vm1083_vm2, %v4313_v25  ;;  %v6473_v25 = vpack.c.bf16 %v5421_v24, %v5419_v22 }
 0x26d   : > { %v1471_v27 = vpop.f32.mrb[20].mxu0 }
 0x26e   : > { %v5914_v28 = vpop.f32.mrb[21].mxu0 }
 0x271   : > { %v1545_v29 = vpop.f32.mrb[20].mxu1 }
 0x272   : > { %v1546_v30 = vadd.f32 %v1545_v29, %v1471_v27  ;;  %v5925_v31 = vpop.f32.mrb[21].mxu1 }
 0x275   : > { %v1619_v32 = vpop.f32.mrb[22].mxu0 }
 0x276   : > { %v1623_v33 = vadd.f32 %v1619_v32, %v1546_v30  ;;  %v5936_v35 = vpop.f32.mrb[23].mxu0 }
 0x279   : > { %v1694_v36 = vpop.f32.mrb[22].mxu1 }
 0x27a   : > { %v1698_v37 = vadd.f32 %v1694_v36, %v1623_v33  ;;  %v5947_v38 = vpop.f32.mrb[23].mxu1 }
 0x27c   : > { %v1699_v42 = vadd.f32 %v7658_v41, %v1698_v37 }
 0x27e   : > { %v1700_v44 = vmax.f32 %v1699_v42, 0.0 }
 0x280   : > { %5413 = vmatmul.mubr.msk.f32.vlgmr.msra.gmra.mrb[24].mxu0 %vm1706_vm3, %v1700_v44 }
 0x281   : > { %6446 = vmatpush1.bf16.msra.mxu0 %v6445_v43  ;;  %v1925_v46 = vpop.f32.mrb[24].mxu1  ;;  %1848 = vmatprep.mubr.f32.mxu0 %v6852_v16 }
 0x282   : > { %v5958_v19 = vpop.f32.mrb[25].mxu1  ;;  %6453 = vmatprep.subr.bf16.mxu0 %v6850_v1 }
 0x288   : > { %5414 = vmatmul.mubr.msk.f32.vlgmr.msra.gmra.mrb[24].mxu0 %vm1706_vm3, %v1396_v49 }
 0x289   : > { %6455 = vmatpush3.bf16.msra.mxu0 %v7301_v0  ;;  %v2073_v51 = vpop.f32.mrb[26].mxu1  ;;  %5967 = vmatprep.mubr.msk.f32.mxu0 %vm6851_vm1, %v6852_v16 }
 0x28a   : > { %v5980_v56 = vpop.f32.mrb[27].mxu1  ;;  %6456 = vmatprep.subr.bf16.mxu0 %v6850_v1 }
 0x28d   : > { %6458 = vmatpush3.bf16.msra.mxu0 %v7333_v11 }
 0x28e   : > { %6465 = vmatprep.subr.bf16.mxu0 %v6850_v1 }
 0x290   : > { %5968 = vmatmul.mubr.msk.f32.vlgmr.msra.gmra.mrb[26].mxu0 %vm1083_vm2, %v7543_v53 }
 0x291   : > { %6467 = vmatpush3.bf16.msra.mxu0 %v7371_v34  ;;  %v2302_v58 = vpop.f32.mrb[28].mxu1  ;;  %5989 = vmatprep.mubr.msk.f32.mxu0 %vm6851_vm1, %v6852_v16 }
 0x292   : > { %v6002_v59 = vpop.f32.mrb[29].mxu1  ;;  %6468 = vmatprep.subr.bf16.mxu0 %v6850_v1 }
 0x293   : > { %v5428_v59 = vld [vmem:[%s8258_s1 + $0x60] sm:$0xff] }
 0x295   : > { %6470 = vmatpush3.bf16.msra.mxu0 %v7403_v55 }
 0x296   : > { %6472 = vmatprep.subr.bf16.mxu0 %v6471_v21 }
 0x298   : > { %5990 = vmatmul.mubr.msk.f32.vlgmr.msra.gmra.mrb[28].mxu0 %vm1083_vm2, %v7548_v54 }
 0x299   : > { %v2372_v60 = vpop.f32.mrb[30].mxu1  ;;  %2227 = vmatprep.mubr.f32.mxu0 %v6852_v16  ;;  %6474 = vmatpush1.bf16.msra.mxu0 %v6473_v25 }
 0x29a   : > { %v2373_v62 = vadd.f32 %v2372_v60, %v2302_v58  ;;  %v6013_v63 = vpop.f32.mrb[31].mxu1  ;;  %6487 = vmatprep.subr.bf16.mxu0 %v6850_v1  ;;  %v5430_v60 = vld [vmem:[%s8258_s1 + $0x70] sm:$0xff] }
 0x29b   : > { %v6501_v63 = vpack.c.bf16 %v5430_v60, %v5428_v59 }
 0x2a1   : > { %v2519_v53 = vpop.f32.mrb[32].mxu1 }
 0x2a2   : > { %v6035_v2 = vpop.f32.mrb[33].mxu1 }
 0x2a9   : > { %v7682_v3 = vpop.f32.mrb[34].mxu1 }
 0x2aa   : > { %v6057_v4 = vpop.f32.mrb[35].mxu1 }
 0x2b1   : > { %v7684_v5 = vpop.f32.mrb[36].mxu1 }
 0x2b2   : > { %v6079_v7 = vpop.f32.mrb[37].mxu1 }
 0x2b9   : > { %v7686_v8 = vpop.f32.mrb[38].mxu1 }
 0x2ba   : > { %v6090_v9 = vpop.f32.mrb[39].mxu1 }
 0x2c1   : > { %v7688_v10 = vpop.f32.mrb[40].mxu1 }
 0x2c2   : > { %v6112_v12 = vpop.f32.mrb[41].mxu1 }
 0x2c9   : > { %v7690_v54 = vpop.f32.mrb[42].mxu1 }
 0x2ca   : > { %v6134_v13 = vpop.f32.mrb[43].mxu1 }
 0x2d1   : > { %v7692_v14 = vpop.f32.mrb[44].mxu1 }
 0x2d2   : > { %v6156_v17 = vpop.f32.mrb[45].mxu1 }
 0x2d3   : > { %v5437_v17 = vld [vmem:[%s8258_s1 + $0x80] sm:$0xff] }
 0x2d9   : > { %v3790_v27 = vpop.f32.mrb[46].mxu1 }
 0x2da   : > { %v6178_v28 = vpop.f32.mrb[47].mxu1 }
 0x2e1   : > { %v3860_v29 = vpop.f32.mrb[48].mxu1 }
 0x2e2   : > { %v7707_v30 = vadd.f32 %v3860_v29, %v3790_v27  ;;  %v6189_v31 = vpop.f32.mrb[49].mxu1 }
 0x2e9   : > { %v7709_v32 = vpop.f32.mrb[50].mxu1 }
 0x2ea   : > { %v6211_v33 = vpop.f32.mrb[51].mxu1 }
 0x2eb   : > { %v5446_v33 = vld [vmem:[%s8258_s1 + $0xa0] sm:$0xff] }
 0x2f1   : > { %v7711_v35 = vpop.f32.mrb[52].mxu1 }
 0x2f2   : > { %v6233_v36 = vpop.f32.mrb[53].mxu1 }
 0x2f3   : > { %v5448_v36 = vld [vmem:[%s8258_s1 + $0xb0] sm:$0xff] }
 0x2f9   : > { %v7713_v37 = vpop.f32.mrb[54].mxu1 }
 0x2fa   : > { %v6255_v38 = vpop.f32.mrb[55].mxu1 }
 0x2fb   : > { %v6557_v38 = vpack.c.bf16 %v5448_v36, %v5446_v33  ;;  %v4507_v33 = vld [vmem:[%s8209_s10 + $0xa8] sm:$0xff] }
 0x363   : > { %v1999_v39 = vpop.f32.mrb[26].mxu0 }
 0x364   : > { %v2000_v40 = vadd.f32 %v1999_v39, %v1925_v46  ;;  %v5969_v42 = vpop.f32.mrb[27].mxu0  ;;  %v5429_v46 = vld [vmem:[%s8258_s1 + $0x68] sm:$0xff] }
 0x366   : > { %v2077_v43 = vadd.f32 %v2073_v51, %v2000_v40  ;;  %v5431_v51 = vld [vmem:[%s8258_s1 + $0x78] sm:$0xff] }
 0x367   : > { %v6499_v58 = vpack.c.bf16 %v5431_v51, %v5429_v46 }
 0x36b   : > { %v2148_v44 = vpop.f32.mrb[28].mxu0 }
 0x36c   : > { %v2152_v47 = vadd.f32 %v2148_v44, %v2077_v43  ;;  %v5991_v19 = vpop.f32.mrb[29].mxu0 }
 0x36e   : > { %v2153_v49 = vadd.f32 %v7658_v41, %v2152_v47 }
 0x370   : > { %v2154_v56 = vmax.f32 %v2153_v49, 0.0 }
 0x372   : > { %5423 = vmatmul.mubr.msk.f32.vlgmr.msra.gmra.mrb[24].mxu0 %vm1706_vm3, %v2154_v56 }
 0x373   : > { %6489 = vmatpush3.bf16.msra.mxu0 %v7390_v48  ;;  %6022 = vmatprep.mubr.msk.f32.mxu0 %vm6851_vm1, %v6852_v16 }
 0x374   : > { %6490 = vmatprep.subr.bf16.mxu0 %v6850_v1 }
 0x377   : > { %6492 = vmatpush3.bf16.msra.mxu0 %v7408_v61 }
 0x378   : > { %6500 = vmatprep.subr.bf16.mxu0 %v6499_v58 }
 0x37a   : > { %6023 = vmatmul.mubr.msk.f32.vlgmr.msra.gmra.mrb[30].mxu0 %vm1083_vm2, %v7445_v26 }
 0x37b   : > { %2598 = vmatprep.mubr.f32.mxu0 %v6852_v16  ;;  %6502 = vmatpush1.bf16.msra.mxu0 %v6501_v63 }
 0x37c   : > { %6503 = vmatprep.subr.bf16.mxu0 %v6850_v1 }
 0x44d   : > { %v2445_v2 = vpop.f32.mrb[30].mxu0 }
 0x44e   : > { %v2449_v4 = vadd.f32 %v2445_v2, %v2373_v62  ;;  %v6024_v7 = vpop.f32.mrb[31].mxu0  ;;  %v5438_v62 = vld [vmem:[%s8258_s1 + $0x88] sm:$0xff] }
 0x450   : > { %v2523_v9 = vadd.f32 %v2519_v53, %v2449_v4  ;;  %v5467_v4 = vld [vmem:[%s8258_s1 + $0xf8] sm:$0xff] }
 0x452   : > { %v2524_v12 = vadd.f32 %v7658_v41, %v2523_v9  ;;  %v5464_v9 = vld [vmem:[%s8258_s1 + $0xe0] sm:$0xff] }
 0x454   : > { %v2525_v13 = vmax.f32 %v2524_v12, 0.0  ;;  %v5466_v12 = vld [vmem:[%s8258_s1 + $0xf0] sm:$0xff] }
 0x456   : > { %5432 = vmatmul.mubr.msk.f32.vlgmr.msra.gmra.mrb[24].mxu0 %vm1706_vm3, %v2525_v13  ;;  %v6613_v13 = vpack.c.bf16 %v5466_v12, %v5464_v9 }
 0x457   : > { %6505 = vmatpush3.bf16.msra.mxu0 %v7318_v6  ;;  %6044 = vmatprep.mubr.msk.f32.mxu0 %vm6851_vm1, %v6852_v16 }
 0x458   : > { %6506 = vmatprep.subr.bf16.mxu0 %v6850_v1 }
 0x45b   : > { %6508 = vmatpush3.bf16.msra.mxu0 %v7347_v15 }
 0x45c   : > { %6515 = vmatprep.subr.bf16.mxu0 %v6850_v1 }
 0x45e   : > { %6045 = vmatmul.mubr.msk.f32.vlgmr.msra.gmra.mrb[32].mxu0 %vm1083_vm2, %v7494_v50  ;;  %v5440_v50 = vld [vmem:[%s8258_s1 + $0x98] sm:$0xff] }
 0x45f   : > { %6517 = vmatpush3.bf16.msra.mxu0 %v7390_v48  ;;  %6066 = vmatprep.mubr.msk.f32.mxu0 %vm6851_vm1, %v6852_v16  ;;  %v6527_v53 = vpack.c.bf16 %v5440_v50, %v5438_v62 }
 0x460   : > { %6518 = vmatprep.subr.bf16.mxu0 %v6850_v1 }
 0x463   : > { %6520 = vmatpush3.bf16.msra.mxu0 %v7408_v61 }
 0x464   : > { %6528 = vmatprep.subr.bf16.mxu0 %v6527_v53 }
 0x466   : > { %6067 = vmatmul.mubr.msk.f32.vlgmr.msra.gmra.mrb[34].mxu0 %vm1083_vm2, %v7563_v57  ;;  %v6529_v57 = vpack.c.bf16 %v5439_v18, %v5437_v17 }
 0x467   : > { %2971 = vmatprep.mubr.f32.mxu0 %v6852_v16 }
 0x468   : > { %6530 = vmatpush1.bf16.msra.mxu0 %v6529_v57 }
 0x469   : > { %6537 = vmatprep.subr.bf16.mxu0 %v6850_v1 }
 0x531   : > { %v2673_v20 = vpop.f32.mrb[32].mxu0 }
 0x532   : > { %v2744_v21 = vadd.f32 %v7682_v3, %v2673_v20  ;;  %v6046_v22 = vpop.f32.mrb[33].mxu0  ;;  %v5447_v3 = vld [vmem:[%s8258_s1 + $0xa8] sm:$0xff]  ;;  %v4502_v20 = vld [vmem:[%s8209_s10 + $0x80] sm:$0xff] }
 0x533   : > { %v4486_v22 = vld [vmem:[%s8209_s10] sm:$0xff] }
 0x539   : > { %v2817_v24 = vpop.f32.mrb[34].mxu0 }
 0x53a   : > { %v2821_v25 = vadd.f32 %v2817_v24, %v2744_v21  ;;  %v6068_v27 = vpop.f32.mrb[35].mxu0  ;;  %v4503_v21 = vld [vmem:[%s8209_s10 + $0x88] sm:$0xff] }
 0x53b   : > { %v6643_v24 = vpack.c.bf16 %v4503_v21, %v4502_v20  ;;  %v4504_v27 = vld [vmem:[%s8209_s10 + $0x90] sm:$0xff]  ;;  %v4691_v21 = vld [vmem:[%s8214_s15 + $0x18] sm:$0xff] }
 0x53c   : > { %v2896_v28 = vadd.f32 %v7684_v5, %v2821_v25  ;;  %v4487_v25 = vld [vmem:[%s8209_s10 + $0x8] sm:$0xff]  ;;  %v4690_v20 = vld [vmem:[%s8214_s15 + $0x10] sm:$0xff] }
 0x53d   : > { %6644 = vmatprep.subr.bf16.mxu1 %v6643_v24  ;;  %v4472_v24 = vlaneseq }
 0x53e   : > { %v2897_v29 = vadd.f32 %v7658_v41, %v2896_v28  ;;  %v4505_v28 = vld [vmem:[%s8209_s10 + $0x98] sm:$0xff] }
 0x540   : > { %v2898_v31 = vmax.f32 %v2897_v29, 0.0  ;;  %v6645_v29 = vpack.c.bf16 %v4487_v25, %v4486_v22  ;;  %v6679_v22 = vpack.c.bf16 %v4691_v21, %v4690_v20  ;;  %v4473_v25 = vshrl.u32 %v4472_v24, 7 }
 0x542   : > { %5441 = vmatmul.mubr.msk.f32.vlgmr.msra.gmra.mrb[24].mxu0 %vm1706_vm3, %v2898_v31  ;;  %v6647_v31 = vpack.c.bf16 %v4505_v28, %v4504_v27  ;;  %6646 = vmatpush3.bf16.msra.mxu1 %v6645_v29  ;;  %v4474_v27 = vsub.s32 0, %v4473_v25  ;;  %v4470_v28 = vld [vmem:[%s8261_s9] sm:$0x3]  ;;  %v4478_v29 = vsub.s32 1, %v4473_v25 }
 0x543   : > { %6539 = vmatpush3.bf16.msra.mxu0 %v7301_v0  ;;  %6099 = vmatprep.mubr.msk.f32.mxu0 %vm6851_vm1, %v6852_v16 }
 0x544   : > { %6540 = vmatprep.subr.bf16.mxu0 %v6850_v1  ;;  %6648 = vmatprep.subr.bf16.mxu1 %v6647_v31  ;;  %v4475_v31 = vrot.slane %v4470_v28, %v4474_v27 }
 0x547   : > { %6542 = vmatpush3.bf16.msra.mxu0 %v7333_v11 }
 0x548   : > { %6549 = vmatprep.subr.bf16.mxu0 %v6850_v1 }
 0x54a   : > { %6100 = vmatmul.mubr.msk.f32.vlgmr.msra.gmra.mrb[36].mxu0 %vm1083_vm2, %v7511_v52  ;;  %v5449_v52 = vld [vmem:[%s8258_s1 + $0xb8] sm:$0xff] }
 0x54b   : > { %6551 = vmatpush3.bf16.msra.mxu0 %v7371_v34  ;;  %6121 = vmatprep.mubr.msk.f32.mxu0 %vm6851_vm1, %v6852_v16  ;;  %v6555_v5 = vpack.c.bf16 %v5449_v52, %v5447_v3  ;;  %v4488_v3 = vld [vmem:[%s8209_s10 + $0x10] sm:$0xff]  ;;  %v4489_v52 = vld [vmem:[%s8209_s10 + $0x18] sm:$0xff] }
 0x54c   : > { %6552 = vmatprep.subr.bf16.mxu0 %v6850_v1  ;;  %v6649_v36 = vpack.c.bf16 %v4489_v52, %v4488_v3  ;;  %v4479_v3 = vrot.slane %v4470_v28, %v4478_v29 }
 0x54e   : > { %6650 = vmatpush3.bf16.msra.mxu1 %v6649_v36 }
 0x54f   : > { %6554 = vmatpush3.bf16.msra.mxu0 %v7403_v55 }
 0x550   : > { %6556 = vmatprep.subr.bf16.mxu0 %v6555_v5  ;;  %v4506_v5 = vld [vmem:[%s8209_s10 + $0xa0] sm:$0xff] }
 0x552   : > { %6122 = vmatmul.mubr.msk.f32.vlgmr.msra.gmra.mrb[38].mxu0 %vm1083_vm2, %v7632_v23 }
 0x553   : > { %3344 = vmatprep.mubr.f32.mxu0 %v6852_v16  ;;  %6558 = vmatpush1.bf16.msra.mxu0 %v6557_v38  ;;  %v6651_v38 = vpack.c.bf16 %v4507_v33, %v4506_v5 }
 0x554   : > { %6565 = vmatprep.subr.bf16.mxu0 %v6850_v1 }
 0x555   : > { %6652 = vmatprep.subr.bf16.mxu1 %v6651_v38 }
 0x61d   : > { %v3116_v39 = vpop.f32.mrb[36].mxu0 }
 0x61e   : > { %v3117_v40 = vadd.f32 %v3116_v39, %v7686_v8  ;;  %v6101_v42 = vpop.f32.mrb[37].mxu0  ;;  %v4490_v39 = vld [vmem:[%s8209_s10 + $0x20] sm:$0xff] }
 0x61f   : > { %v4508_v42 = vld [vmem:[%s8209_s10 + $0xb0] sm:$0xff] }
 0x620   : > { %v3194_v43 = vadd.f32 %v7688_v10, %v3117_v40  ;;  %v4491_v40 = vld [vmem:[%s8209_s10 + $0x28] sm:$0xff] }
 0x625   : > { %v3265_v44 = vpop.f32.mrb[38].mxu0 }
 0x626   : > { %v3269_v47 = vadd.f32 %v3265_v44, %v3194_v43  ;;  %v6123_v19 = vpop.f32.mrb[39].mxu0  ;;  %v4509_v43 = vld [vmem:[%s8209_s10 + $0xb8] sm:$0xff]  ;;  %v6653_v44 = vpack.c.bf16 %v4491_v40, %v4490_v39  ;;  %v5479_v40 = vld [vmem:[%s8212_s13] ss:$0 sm:$0xff] }
 0x627   : > { %v4492_v19 = vld [vmem:[%s8209_s10 + $0x30] sm:$0xff] }
 0x628   : > { %v3270_v49 = vadd.f32 %v7658_v41, %v3269_v47  ;;  %v6655_v47 = vpack.c.bf16 %v4509_v43, %v4508_v42  ;;  %6654 = vmatpush3.bf16.msra.mxu1 %v6653_v44 }
 0x62a   : > { %v3271_v56 = vmax.f32 %v3270_v49, 0.0  ;;  %v4493_v49 = vld [vmem:[%s8209_s10 + $0x38] sm:$0xff]  ;;  %6656 = vmatprep.subr.bf16.mxu1 %v6655_v47 }
 0x62c   : > { %5450 = vmatmul.mubr.msk.f32.vlgmr.msra.gmra.mrb[24].mxu0 %vm1706_vm3, %v3271_v56  ;;  %v4510_v56 = vld [vmem:[%s8209_s10 + $0xc0] sm:$0xff] }
 0x62d   : > { %6567 = vmatpush3.bf16.msra.mxu0 %v7301_v0  ;;  %6143 = vmatprep.mubr.msk.f32.mxu0 %vm6851_vm1, %v6852_v16  ;;  %v5456_v0 = vld [vmem:[%s8258_s1 + $0xc8] sm:$0xff] }
 0x62e   : > { %6568 = vmatprep.subr.bf16.mxu0 %v6850_v1 }
 0x631   : > { %6570 = vmatpush3.bf16.msra.mxu0 %v7333_v11  ;;  %v5458_v11 = vld [vmem:[%s8258_s1 + $0xd8] sm:$0xff] }
 0x632   : > { %6577 = vmatprep.subr.bf16.mxu0 %v6850_v1 }
 0x634   : > { %6144 = vmatmul.mubr.msk.f32.vlgmr.msra.gmra.mrb[40].mxu0 %vm1083_vm2, %v7445_v26  ;;  %v5455_v26 = vld [vmem:[%s8258_s1 + $0xc0] sm:$0xff] }
 0x635   : > { %6579 = vmatpush3.bf16.msra.mxu0 %v7371_v34  ;;  %6165 = vmatprep.mubr.msk.f32.mxu0 %vm6851_vm1, %v6852_v16  ;;  %v6583_v34 = vpack.c.bf16 %v5458_v11, %v5456_v0  ;;  %v4511_v0 = vld [vmem:[%s8209_s10 + $0xc8] sm:$0xff]  ;;  %v6657_v11 = vpack.c.bf16 %v4493_v49, %v4492_v19  ;;  %v4684_v19 = vld [vmem:[%s8213_s14] sm:$0xff] }
 0x636   : > { %6580 = vmatprep.subr.bf16.mxu0 %v6850_v1  ;;  %v4685_v49 = vld [vmem:[%s8213_s14 + $0x8] sm:$0xff] }
 0x637   : > { %6658 = vmatpush3.bf16.msra.mxu1 %v6657_v11  ;;  %v4687_v11 = vld [vmem:[%s8213_s14 + $0x18] sm:$0xff] }
 0x639   : > { %6582 = vmatpush3.bf16.msra.mxu0 %v7403_v55  ;;  %v5457_v55 = vld [vmem:[%s8258_s1 + $0xd0] sm:$0xff] }
 0x63a   : > { %6584 = vmatprep.subr.bf16.mxu0 %v6583_v34  ;;  %v6659_v34 = vpack.c.bf16 %v4511_v0, %v4510_v56  ;;  %v6682_v56 = vpack.c.bf16 %v4685_v49, %v4684_v19  ;;  %v4686_v0 = vld [vmem:[%s8213_s14 + $0x10] sm:$0xff] }
 0x63c   : > { %6166 = vmatmul.mubr.msk.f32.vlgmr.msra.gmra.mrb[42].mxu0 %vm1083_vm2, %v7467_v45  ;;  %v6585_v45 = vpack.c.bf16 %v5457_v55, %v5455_v26  ;;  %v4494_v26 = vld [vmem:[%s8209_s10 + $0x40] sm:$0xff]  ;;  %v4495_v55 = vld [vmem:[%s8209_s10 + $0x48] sm:$0xff]  ;;  %6660 = vmatprep.subr.bf16.mxu1 %v6659_v34  ;;  %v6685_v34 = vpack.c.bf16 %v4687_v11, %v4686_v0 }
 0x63d   : > { %3715 = vmatprep.mubr.f32.mxu0 %v6852_v16 }
 0x63e   : > { %6586 = vmatpush1.bf16.msra.mxu0 %v6585_v45  ;;  %v4512_v45 = vld [vmem:[%s8209_s10 + $0xd0] sm:$0xff] }
 0x63f   : > { %6599 = vmatprep.subr.bf16.mxu0 %v6850_v1 }
 0x707   : > { %v3489_v8 = vpop.f32.mrb[40].mxu0 }
 0x708   : > { %v3490_v10 = vadd.f32 %v3489_v8, %v7690_v54  ;;  %v6145_v46 = vpop.f32.mrb[41].mxu0  ;;  %v3865_v54 = vpop.permute.xlu0 %3864  ;;  %v4513_v8 = vld [vmem:[%s8209_s10 + $0xd8] sm:$0xff] }
 0x709   : > { %v6663_v46 = vpack.c.bf16 %v4513_v8, %v4512_v45 }
 0x70a   : > { %v3566_v51 = vadd.f32 %v7692_v14, %v3490_v10  ;;  %v5465_v14 = vld [vmem:[%s8258_s1 + $0xe8] sm:$0xff]  ;;  %v6661_v10 = vpack.c.bf16 %v4495_v55, %v4494_v26  ;;  %v5478_v55 = vld [vmem:[%s8210_s11] ss:$0 sm:$0xff] }
 0x70b   : > { %v6611_v7 = vpack.c.bf16 %v5467_v4, %v5465_v14 }
 0x70c   : > { %6662 = vmatpush3.bf16.msra.mxu1 %v6661_v10 }
 0x70d   : > { %6664 = vmatprep.subr.bf16.mxu1 %v6663_v46 }
 0x70f   : > { %v3636_v58 = vpop.f32.mrb[42].mxu0 }
 0x710   : > { %v3640_v59 = vadd.f32 %v3636_v58, %v3566_v51  ;;  %v6167_v60 = vpop.f32.mrb[43].mxu0  ;;  %v4496_v51 = vld [vmem:[%s8209_s10 + $0x50] sm:$0xff]  ;;  %v4497_v58 = vld [vmem:[%s8209_s10 + $0x58] sm:$0xff] }
 0x711   : > { %v4515_v60 = vld [vmem:[%s8209_s10 + $0xe8] sm:$0xff] }
 0x712   : > { %v3641_v63 = vadd.f32 %v7658_v41, %v3640_v59  ;;  %v4514_v59 = vld [vmem:[%s8209_s10 + $0xe0] sm:$0xff] }
 0x714   : > { %v3642_v2 = vmax.f32 %v3641_v63, 0.0  ;;  %v6665_v63 = vpack.c.bf16 %v4497_v58, %v4496_v51  ;;  %v5484_v58 = vld [vmem:[%s8215_s16] ss:$0 sm:$0xff] }
 0x716   : > { %5459 = vmatmul.mubr.msk.f32.vlgmr.msra.gmra.mrb[24].mxu0 %vm1706_vm3, %v3642_v2  ;;  %v6667_v2 = vpack.c.bf16 %v4515_v60, %v4514_v59  ;;  %6666 = vmatpush3.bf16.msra.mxu1 %v6665_v63 }
 0x717   : > { %6601 = vmatpush3.bf16.msra.mxu0 %v7390_v48  ;;  %6198 = vmatprep.mubr.msk.f32.mxu0 %vm6851_vm1, %v6852_v16 }
 0x718   : > { %6602 = vmatprep.subr.bf16.mxu0 %v6850_v1  ;;  %6668 = vmatprep.subr.bf16.mxu1 %v6667_v2 }
 0x71b   : > { %6604 = vmatpush3.bf16.msra.mxu0 %v7408_v61 }
 0x71c   : > { %6612 = vmatprep.subr.bf16.mxu0 %v6611_v7 }
 0x71e   : > { %6199 = vmatmul.mubr.msk.f32.vlgmr.msra.gmra.mrb[44].mxu0 %vm1083_vm2, %v3865_v54 }
 0x71f   : > { %4088 = vmatprep.mubr.f32.mxu0 %v6852_v16  ;;  %6614 = vmatpush1.bf16.msra.mxu0 %v6613_v13 }
 0x720   : > { %6615 = vmatprep.subr.bf16.mxu0 %v6850_v1 }
 0x7f1   : > { %v3934_v62 = vpop.f32.mrb[44].mxu0 }
 0x7f2   : > { %v3938_v50 = vadd.f32 %v3934_v62, %v7707_v30  ;;  %v6200_v53 = vpop.f32.mrb[45].mxu0  ;;  %v5473_v30 = vld [vmem:[%s8258_s1 + $0x100] sm:$0xff] }
 0x7f3   : > { %v4597_v53 = vld [vmem:[%s8211_s12] sm:$0x3] }
 0x7f4   : > { %v4013_v17 = vadd.f32 %v7709_v32, %v3938_v50 }
 0x7f6   : > { %v4014_v18 = vadd.f32 %v7658_v41, %v4013_v17  ;;  %v4516_v17 = vld [vmem:[%s8209_s10 + $0xf0] sm:$0xff] }
 0x7f8   : > { %v4015_v57 = vmax.f32 %v4014_v18, 0.0  ;;  %v4517_v18 = vld [vmem:[%s8209_s10 + $0xf8] sm:$0xff] }
 0x7fa   : > { %5468 = vmatmul.mubr.msk.f32.vlgmr.msra.gmra.mrb[24].mxu0 %vm1706_vm3, %v4015_v57  ;;  %v4596_v57 = vld [vmem:[%s8260_s3] sm:$0xff] }
 0x7fb   : > { %6617 = vmatpush3.bf16.msra.mxu0 %v7318_v6  ;;  %6220 = vmatprep.mubr.msk.f32.mxu0 %vm6851_vm1, %v6852_v16  ;;  %v4238_v6 = vpop.permute.xlu0 %4237 }
 0x7fc   : > { %6618 = vmatprep.subr.bf16.mxu0 %v6850_v1 }
 0x7ff   : > { %6620 = vmatpush3.bf16.msra.mxu0 %v7347_v15  ;;  %v5474_v15 = vld [vmem:[%s8258_s1 + $0x108] sm:$0xff] }
 0x800   : > { %6627 = vmatprep.subr.bf16.mxu0 %v6850_v1 }
 0x802   : > { %6221 = vmatmul.mubr.msk.f32.vlgmr.msra.gmra.mrb[46].mxu0 %vm1083_vm2, %v7632_v23 }
 0x803   : > { %6629 = vmatpush3.bf16.msra.mxu0 %v7390_v48  ;;  %6242 = vmatprep.mubr.msk.f32.mxu0 %vm6851_vm1, %v6852_v16  ;;  %v5476_v48 = vld [vmem:[%s8258_s1 + $0x118] sm:$0xff] }
 0x804   : > { %6630 = vmatprep.subr.bf16.mxu0 %v6850_v1  ;;  %v6639_v23 = vpack.c.bf16 %v5476_v48, %v5474_v15  ;;  %v4500_v15 = vld [vmem:[%s8209_s10 + $0x70] sm:$0xff]  ;;  %v4501_v48 = vld [vmem:[%s8209_s10 + $0x78] sm:$0xff] }
 0x807   : > { %6632 = vmatpush3.bf16.msra.mxu0 %v7408_v61  ;;  %v5475_v61 = vld [vmem:[%s8258_s1 + $0x110] sm:$0xff] }
 0x808   : > { %v6641_v32 = vpack.c.bf16 %v5475_v61, %v5473_v30  ;;  %6640 = vmatprep.subr.bf16.mxu0 %v6639_v23  ;;  %v6673_v23 = vpack.c.bf16 %v4501_v48, %v4500_v15  ;;  %v4688_v30 = vld [vmem:[%s8214_s15] sm:$0xff]  ;;  %v4689_v61 = vld [vmem:[%s8214_s15 + $0x8] sm:$0xff] }
 0x80a   : > { %6243 = vmatmul.mubr.msk.f32.vlgmr.msra.gmra.mrb[48].mxu0 %vm1083_vm2, %v4238_v6  ;;  %v6671_v6 = vpack.c.bf16 %v4517_v18, %v4516_v17 }
 0x80b   : > { %4461 = vmatprep.mubr.f32.mxu0 %v6852_v16  ;;  %6642 = vmatpush1.bf16.msra.mxu0 %v6641_v32  ;;  %v6676_v32 = vpack.c.bf16 %v4689_v61, %v4688_v30 }
 0x80c   : > { %6256 = vmatprep.subr.mxu0 %v6852_v16 }
 0x8d5   : > { %v4163_v54 = vpop.f32.mrb[46].mxu0 }
 0x8d6   : > { %v4234_v14 = vadd.f32 %v7711_v35, %v4163_v54  ;;  %v6222_v4 = vpop.f32.mrb[47].mxu0  ;;  %v4498_v35 = vld [vmem:[%s8209_s10 + $0x60] sm:$0xff] }
 0x8dd   : > { %v4307_v7 = vpop.f32.mrb[48].mxu0 }
 0x8de   : > { %v4311_v9 = vadd.f32 %v4307_v7, %v4234_v14  ;;  %v6244_v12 = vpop.f32.mrb[49].mxu0 }
 0x8e0   : > { %v4386_v13 = vadd.f32 %v7713_v37, %v4311_v9 }
 0x8e2   : > { %v4387_v62 = vadd.f32 %v7658_v41, %v4386_v13  ;;  %v4499_v41 = vld [vmem:[%s8209_s10 + $0x68] sm:$0xff] }
 0x8e3   : > { %v6669_v37 = vpack.c.bf16 %v4499_v41, %v4498_v35 }
 0x8e4   : > { %v4388_v50 = vmax.f32 %v4387_v62, 0.0 }
 0x8e5   : > { %6670 = vmatpush3.bf16.msra.mxu1 %v6669_v37 }
 0x8e6   : > { %5477 = vmatmul.mubr.msk.f32.vlgmr.msra.gmra.mrb[24].mxu0 %vm1706_vm3, %v4388_v50  ;;  %6672 = vmatprep.subr.bf16.mxu1 %v6671_v6 }
 0x8e7   : > { %6257 = vmatpush3.msk.msra.mxu0 %vm4609_vm4, %v4597_v53  ;;  %6258 = vmatprep.mubr.msk.f32.mxu0 %vm6851_vm1, %v6852_v16 }
 0x8e8   : > { %6675 = vmatprep.subr.bf16.mxu0 %v6850_v1 }
 0x8e9   : > { %6674 = vmatpush3.bf16.msra.mxu1 %v6673_v23 }
 0x8ea   : > { %6259 = vmatmul.mubr.msk.f32.vlgmr.msra.gmra.mrb[50].mxu0 %vm4605_vm5, %v4596_v57 }
 0x8eb   : > { %6269 = vmatprep.mubr.msk.f32.mxu0 %vm6851_vm1, %v6852_v16  ;;  %6677 = vmatpush3.bf16.msra.mxu0 %v6676_v32 }
 0x8ec   : > { %6678 = vmatprep.subr.bf16.mxu0 %v6850_v1 }
 0x8ef   : > { %6680 = vmatpush3.bf16.msra.mxu0 %v6679_v22 }
 0x8f0   : > { %6681 = vmatprep.subr.bf16.mxu0 %v6850_v1 }
 0x9b9   : > { %v4463_v52 = vpop.f32.mrb[24].mxu0 }
 0x9ba   : > { %v4482_v5 = vadd.f32 %v4475_v31, %v4463_v52  ;;  %v4465_v33 = vpop.f32.mrb[25].mxu0 }
 0x9bb   : > { %v4483_v36 = vadd.f32 %v4479_v3, %v4465_v33 }
 0x9bc   : > { %v4484_v39 = vmax.f32 %v4482_v5, 0.0 }
 0x9bd   : > { %v4485_v38 = vmax.f32 %v4483_v36, 0.0  ;;  %v4679_v42 = vpop.f32.mrb[50].mxu0 }
 0x9be   : > { %v4680_v43 = vadd.f32 %v5479_v40, %v4679_v42  ;;  %v6260_v44 = vpop.f32.mrb[51].mxu0 }
 0x9bf   : > { %4589 = vmatprep.mubr.f32.mxu1 %v4485_v38 }
 0x9c0   : > { %4590 = vmatmul.mubr.f32.vlgmr.msra.gmra.mrb[56].mxu1 %v4484_v39  ;;  %v4683_v47 = vmax.f32 %v4680_v43, 0.0 }
 0x9c2   : > { %6270 = vmatmul.mubr.msk.f32.vlgmr.msra.gmra.mrb[52].mxu0 %vm1083_vm2, %v4683_v47 }
 0x9c3   : > { %6683 = vmatpush3.bf16.msra.mxu0 %v6682_v56  ;;  %6280 = vmatprep.mubr.msk.f32.mxu0 %vm6851_vm1, %v6852_v16 }
 0x9c4   : > { %6684 = vmatprep.subr.bf16.mxu0 %v6850_v1 }
 0x9c7   : > { %6686 = vmatpush3.bf16.msra.mxu0 %v6685_v34 }
 0xa93   : > { %v5825_v26 = vpop.f32.mrb[56].mxu1 }
 0xa94   : > { %v5826_v45 = vpop.f32.mrb[57].mxu1 }
 0xa95   : > { %v5827_v8 = vadd.f32 %v5826_v45, %v5825_v26  ;;  %v4761_v1 = vpop.f32.mrb[52].mxu0 }
 0xa96   : > { %v6271_v46 = vpop.f32.mrb[53].mxu0 }
 0xa97   : > { %v4592_v16 = vadd.f32 %v5827_v8, %v5478_v55 }
 0xa99   : > { %v4595_v10 = vmax.f32 %v4592_v16, 0.0 }
 0xa9b   : > { %6281 = vmatmul.mubr.msk.f32.vlgmr.msra.gmra.mrb[54].mxu0 %vm1083_vm2, %v4595_v10 }
 0xb6e   : > { %v4834_v51 = vpop.f32.mrb[54].mxu0 }
 0xb6f   : > { %v4835_v59 = vadd.f32 %v4834_v51, %v4761_v1  ;;  %v6282_v60 = vpop.f32.mrb[55].mxu0 }
 0xb71   : > { %v4845_v63 = vadd.f32 %v5484_v58, %v4835_v59 }
 0xb73   : > { %4846 = vst [vmem:[#allocation2] sm:$0xff] %v4845_v63 }
 0xb74 PF: > { %v4852_v2 = vld [vmem:[%s8216_s17] sm:$0xff]  ;;  %v4853_v54 = vld [vmem:[%s8216_s17 + $0x8] sm:$0xff]  ;;  %v4854_v14 = vld [vmem:[%s8216_s17 + $0x10] sm:$0xff]  ;;  %v6855_v4 = vmov 0.0|0.0   ;;  %vm6856_vm6 = vmmov 0   ;;  %v6857_v12 = vmov 0.0  }
 0xb75   : > { %6687 = vmatprep.subr.bf16.mxu0 %v6855_v4  ;;  %v6688_v7 = vpack.c.bf16 %v4853_v54, %v4852_v2  ;;  %v4855_v9 = vld [vmem:[%s8216_s17 + $0x18] sm:$0xff]  ;;  %6291 = vmatprep.mubr.msk.f32.mxu0 %vm6856_vm6, %v6857_v12  ;;  %vm4856_vm7 = vcmask 261120   ;;  %s5485_s0 = sshll.u32 %s7001_s2, 1  ;;  %s8238_s6 = smov 64   ;;  %v4851_v17 = vld [vmem:[#allocation4] sm:$0x3] }
 0xb76   : > { %6693 = vmatprep.subr.bf16.mxu1 %v6855_v4  ;;  %6302 = vmatprep.mubr.msk.f32.mxu1 %vm6856_vm6, %v6857_v12  ;;  %v6691_v13 = vpack.c.bf16 %v4855_v9, %v4854_v14  ;;  %s4848_s5 = scalar_lea.vmem [#allocation2], %s5485_s0  ;;  %s8235_s30 = smov 32   ;;  %v4978_v21 = vld [vmem:[%s8218_s19] sm:$0xff]  ;;  %v4979_v22 = vld [vmem:[%s8218_s19 + $0x8] sm:$0xff]  ;;  %v4980_v28 = vld [vmem:[%s8218_s19 + $0x10] sm:$0xff]  ;;  %vm4963_vm8 = vcmask 254976  }
 0xb77   : > { %6689 = vmatpush3.bf16.msra.mxu0 %v6688_v7  ;;  %v4974_v24 = vld [vmem:[%s8217_s18] sm:$0xff]  ;;  %v6694_v25 = vpack.c.bf16 %v4979_v22, %v4978_v21  ;;  %v4975_v27 = vld [vmem:[%s8217_s18 + $0x8] sm:$0xff]  ;;  %v4981_v29 = vld [vmem:[%s8218_s19 + $0x18] sm:$0xff]  ;;  %vm5273_vm9 = vcmask 1024   ;;  %vm5256_vm10 = vcmask 41992   ;;  %vm5267_vm11 = vcmask 33792  }
 0xb78   : > { %6690 = vmatprep.subr.bf16.mxu0 %v6855_v4  ;;  %v6700_v31 = vpack.c.bf16 %v4975_v27, %v4974_v24  ;;  %v4976_v3 = vld [vmem:[%s8217_s18 + $0x10] sm:$0xff]  ;;  %v4977_v52 = vld [vmem:[%s8217_s18 + $0x18] sm:$0xff]  ;;  %v6697_v5 = vpack.c.bf16 %v4981_v29, %v4980_v28  ;;  %v4973_v42 = vld [vmem:[#allocation4 + $0x2] sm:$0x3]  ;;  %p5494_p5 = scmp.ne.s32.totalorder %s7001_s2, 3 }
 0xb79   : > { %6695 = vmatpush3.bf16.msra.mxu1 %v6694_v25  ;;  %v6703_v33 = vpack.c.bf16 %v4977_v52, %v4976_v3  ;;  %v5490_v49 = vld [vmem:[%s8219_s20] ss:$0 sm:$0xff]  ;;  %v5174_v60 = vld [vmem:[%s8220_s21 + $0x8] sm:$0xff]  ;;  %v5175_v63 = vld [vmem:[%s8220_s21 + $0x10] sm:$0xff] }
 0xb7a   : > { %v4849_v50 = vld [vmem:[%s4848_s5] sm:$0x3]  ;;  %6696 = vmatprep.subr.bf16.mxu1 %v6855_v4  ;;  %v5176_v54 = vld [vmem:[%s8220_s21 + $0x18] sm:$0xff] }
 0xb7b   : > { %6692 = vmatpush3.bf16.msra.mxu0 %v6691_v13  ;;  %v4850_v62 = vld [vmem:[#allocation3] sm:$0x3]  ;;  %v4971_v36 = vld [vmem:[#allocation3 + $0x2] sm:$0x3]  ;;  %v5173_v59 = vld [vmem:[%s8220_s21] sm:$0xff]  ;;  %v6709_v14 = vpack.c.bf16 %v5176_v54, %v5175_v63 }
 0xb7c   : > { %6699 = vmatprep.subr.bf16.mxu0 %v6855_v4  ;;  %v6706_v2 = vpack.c.bf16 %v5174_v60, %v5173_v59 }
 0xb7d   : > { %6698 = vmatpush3.bf16.msra.mxu1 %v6697_v5 }
 0xb7e   : > { %6292 = vmatmul.mubr.msk.f32.vlgmr.msra.gmra.mrb[0].mxu0 %vm4856_vm7, %v4850_v62  ;;  %6705 = vmatprep.subr.bf16.mxu1 %v6855_v4  ;;  %v5492_v62 = vld [vmem:[%s8221_s22] ss:$0 sm:$0xff] }
 0xb7f   : > { %6313 = vmatprep.mubr.msk.f32.mxu0 %vm6856_vm6, %v6857_v12  ;;  %6701 = vmatpush3.bf16.msra.mxu0 %v6700_v31 }
 0xb80   : > { %6702 = vmatprep.subr.bf16.mxu0 %v6855_v4  ;;  %6303 = vmatmul.mubr.msk.f32.vlgmr.msra.gmra.mrb[0].mxu1 %vm4856_vm7, %v4971_v36 }
 0xb81   : > { %6324 = vmatprep.mubr.msk.f32.mxu1 %vm6856_vm6, %v6857_v12  ;;  %6707 = vmatpush3.bf16.msra.mxu1 %v6706_v2 }
 0xb82   : > { %6708 = vmatprep.subr.bf16.mxu1 %v6855_v4 }
 0xb83   : > { %6704 = vmatpush3.bf16.msra.mxu0 %v6703_v33 }
 0xb85   : > { %6710 = vmatpush3.bf16.msra.mxu1 %v6709_v14 }
 0xc51   : > { %v4926_v53 = vpop.f32.mrb[0].mxu0 }
 0xc52   : > { %v4930_v35 = vadd.f32 %v4926_v53, %v4849_v50  ;;  %v6293_v41 = vpop.f32.mrb[1].mxu0 }
 0xc53   : > { %v5051_v43 = vpop.f32.mrb[0].mxu1 }
 0xc54   : > { %6762 = vtanh.f32 %v4930_v35  ;;  %v5487_v18 = vmul.f32 -1.442695, %v4930_v35  ;;  %v6304_v44 = vpop.f32.mrb[1].mxu1 }
 0xc56   : > { %6764 = vpow2.f32 %v5487_v18 }
 0xc5e   : > { %v6763_v37 = vpop.eup %6762 }
 0xc5f   : > { %4944 = vrot.lane.b32.xlu0 %v6763_v37, %s8238_s6  ;;  %s8262_s6 = smov 64  }
 0xc60   : > { %v6765_v57 = vpop.eup %6764 }
 0xc61   : > { %v4934_v6 = vadd.f32 1.0, %v6765_v57 }
 0xc63   : > { %4938 = vrot.lane.b32.xlu0 %v4851_v17, %s8235_s30  ;;  %6766 = vrcp.f32 %v4934_v6 }
 0xc6d   : > { %v6767_v15 = vpop.eup %6766 }
 0xcd1   : > { %v4945_v48 = vpop.permute.xlu0 %4944 }
 0xcd2   : > { %v4947_v23 = vmul.f32 %v6767_v15, %v4945_v48 }
 0xcd4   : > { %4949 = vrot.lane.b32.xlu1 %v4947_v23, %s8235_s30  ;;  %s8263_s30 = smov 32  }
 0xcd5   : > { %v4939_v30 = vpop.permute.xlu0 %4938 }
 0xcd6   : > { %v4941_v61 = vmul.f32 %v6767_v15, %v4939_v30 }
 0xd46   : > { %v4950_v32 = vpop.permute.xlu1 %4949 }
 0xd47   : > { %v8072_v20 = vadd.f32 %v4950_v32, %v4941_v61 }
 0xd49   : > { %6768 = vtanh.f32 %v8072_v20 }
 0xd53   : > { %v6769_v38 = vpop.eup %6768 }
 0xd54   : > { %4955 = vrot.lane.b32.xlu1 %v6769_v38, %s8262_s6 }
 0xdc6   : > { %v4956_v39 = vpop.permute.xlu1 %4955 }
 0xdc7   : > { %v4958_v40 = vmul.f32 %v6767_v15, %v4956_v39 }
 0xdc9   : > { %4960 = vrot.lane.b32.xlu0 %v4958_v40, %s8263_s30 }
 0xdcd   : > { %5142 = vrot.lane.b32.xlu0 %v4973_v42, %s8263_s30 }
 0xe3b   : > { %v4961_v47 = vpop.permute.xlu0 %4960 }
 0xe3c   : > { %4964 = vst.msk [vmem:[#allocation3] sm:$0x3] %vm4963_vm8, %v4961_v47  ;;  %6314 = vmatmul.mubr.msk.f32.vlgmr.msra.gmra.mrb[2].mxu0 %vm4856_vm7, %v4961_v47 }
 0xe3f   : > { %v5143_v1 = vpop.permute.xlu0 %5142 }
 0xe43   : > { %v5280_v32 = vld [vmem:[#allocation3] sm:$0x3] (!%p5494_p5) }
 0xe44   : > { %5282 = vst.msk [vmem:[#allocation5] sm:$0x3] (!%p5494_p5), %vm4963_vm8, %v5280_v32 }
 0xf0f   : > { %v5123_v19 = vpop.f32.mrb[2].mxu0 }
 0xf10   : > { %v5124_v56 = vadd.f32 %v5123_v19, %v5051_v43  ;;  %v6315_v0 = vpop.f32.mrb[3].mxu0 }
 0xf12   : > { %v5134_v11 = vadd.f32 %v5490_v49, %v5124_v56 }
 0xf14   : > { %6770 = vtanh.f32 %v5134_v11  ;;  %v5491_v26 = vmul.f32 -1.442695, %v5134_v11 }
 0xf16   : > { %6772 = vpow2.f32 %v5491_v26 }
 0xf1e   : > { %v6771_v34 = vpop.eup %6770 }
 0xf1f   : > { %5148 = vrot.lane.b32.xlu1 %v6771_v34, %s8262_s6 }
 0xf20   : > { %v6773_v55 = vpop.eup %6772 }
 0xf21   : > { %v5138_v45 = vadd.f32 1.0, %v6773_v55 }
 0xf23   : > { %6774 = vrcp.f32 %v5138_v45 }
 0xf2d   : > { %v6775_v8 = vpop.eup %6774 }
 0xf2e   : > { %v5145_v46 = vmul.f32 %v6775_v8, %v5143_v1 }
 0xf91   : > { %v5149_v16 = vpop.permute.xlu1 %5148 }
 0xf92   : > { %v5151_v10 = vmul.f32 %v6775_v8, %v5149_v16 }
 0xf94   : > { %5153 = vrot.lane.b32.xlu1 %v5151_v10, %s8263_s30 }
0x1006   : > { %v5154_v51 = vpop.permute.xlu1 %5153 }
0x1007   : > { %v5156_v58 = vadd.f32 %v5154_v51, %v5145_v46 }
0x1009   : > { %6776 = vtanh.f32 %v5156_v58 }
0x1013   : > { %v6777_v7 = vpop.eup %6776 }
0x1014   : > { %5159 = vrot.lane.b32.xlu0 %v6777_v7, %s8262_s6  ;;  %s6860_s6 = smov 96  }
0x1086   : > { %v5160_v9 = vpop.permute.xlu0 %5159 }
0x1087   : > { %v5162_v12 = vmul.f32 %v6775_v8, %v5160_v9 }
0x1089   : > { %5164 = vrot.lane.b32.xlu1 %v5162_v12, %s8263_s30  ;;  %s6861_s30 = smov 127  }
0x10fb   : > { %v5165_v13 = vpop.permute.xlu1 %5164 }
0x10fc   : > { %5167 = vst.msk [vmem:[#allocation3 + $0x2] sm:$0x3] %vm4963_vm8, %v5165_v13  ;;  %6325 = vmatmul.mubr.msk.f32.vlgmr.msra.gmra.mrb[2].mxu1 %vm4856_vm7, %v5165_v13 }
0x11cf   : > { %v5252_v50 = vpop.f32.mrb[2].mxu1 }
0x11d0   : > { %v5253_v4 = vadd.f32 %v5492_v62, %v5252_v50  ;;  %v6326_v53 = vpop.f32.mrb[3].mxu1 }
0x11d2   : > { %5274 = vst.msk [vmem:[%s7010_s26] sm:$0x3] %vm5273_vm9, %v5253_v4  ;;  %v5257_v35 = vsel %vm5256_vm10, %v5253_v4, -inf }
0x11d3   : > { %5258 = vmax.xlane.f32.xlu0 %v5257_v35 }
0x11e9   : > { %4966 = vrot.lane.b32.xlu0 %v8072_v20, %s6860_s6  ;;  %v5281_v20 = vld [vmem:[#allocation3 + $0x2] sm:$0x3] (!%p5494_p5) }
0x11ea   : > { %5283 = vst.msk [vmem:[#allocation5 + $0x2] sm:$0x3] (!%p5494_p5), %vm4963_vm8, %v5281_v20 }
0x1260   : > { %v5259_v41 = vpop.xlane.xlu0 %5258 }
0x1261   : > { %v5260_v37 = vsub.f32 %v5253_v4, %v5259_v41 }
0x1263   : > { %v5261_v17 = vmul.f32 1.442695, %v5260_v37 }
0x1264   : > { %v4967_v18 = vpop.permute.xlu0 %4966 }
0x1265   : > { %6778 = vpow2.f32 %v5261_v17  ;;  %4969 = vst.msk [vmem:[#allocation4] sm:$0x3] %vm4963_vm8, %v4967_v18 }
0x126c   : > { %v5284_v21 = vld [vmem:[#allocation4] sm:$0x3] (!%p5494_p5) }
0x126d   : > { %5286 = vst.msk [vmem:[#allocation7] sm:$0x3] (!%p5494_p5), %vm4963_vm8, %v5284_v21 }
0x126f   : > { %v6779_v57 = vpop.eup %6778 }
0x1270   : > { %5264 = vrot.lane.b32.xlu1 %v6779_v57, %s6861_s30 }
0x12e2   : > { %v5265_v6 = vpop.permute.xlu1 %5264 }
0x12e3   : > { %v5268_v15 = vsel %vm5267_vm11, %v5265_v6, 0.0 }
0x12e4   : > { %5269 = vadd.xlane.f32.xlu1 %v5268_v15 }
0x12f5   : > { %5169 = vrot.lane.b32.xlu1 %v5156_v58, %s6860_s6 }
0x1371   : > { %v5270_v48 = vpop.xlane.xlu1 %5269 }
0x1372   : > { %6780 = vrcp.f32 %v5270_v48 }
0x1375   : > { %v5170_v23 = vpop.permute.xlu1 %5169 }
0x1376   : > { %5172 = vst.msk [vmem:[#allocation4 + $0x2] sm:$0x3] %vm4963_vm8, %v5170_v23 }
0x1379   : > { %5279 = sbr.rel (%p5494_p5) target bundleno = 4992 (0x1380), region = 120 }
0x137c   : > { %v6781_v30 = vpop.eup %6780 }
0x137d   : > { %v5272_v61 = vmul.f32 %v6781_v30, %v6779_v57  ;;  %v5285_v22 = vld [vmem:[#allocation4 + $0x2] sm:$0x3] (!%p5494_p5) }
0x137e   : > { %5287 = vst.msk [vmem:[#allocation7 + $0x2] sm:$0x3] (!%p5494_p5), %vm4963_vm8, %v5285_v22 }
0x137f   : > { %5275 = vst.msk [vmem:[%s7010_s26] sm:$0x3] %vm5256_vm10, %v5272_v61 }
0x1380 PF: > { %p6735_p6 = scmp.eq.s32.totalorder %s7001_s2, 3  ;;  %s6862_s26 = smov [#allocation5]  }
0x1381   : > { %s5301_s5 = sshll.u32 %s6862_s26, 4  ;;  %s5302_s5 = int_to_ptr.vmem [resolvable:$true] %s5301_s5 }
0x1382   : > { %s6782_s1 = scalar_lea.vmem %s5302_s5, 64  ;;  %p6789_p10 = scmp.lt.s32.totalorder %s5302_s5, %s5302_s5 }
0x1383   : > { %p6783_p7 = scmp.ne.s32.totalorder %s5302_s5, %s6782_s1  ;;  %p6790_p11 = scmp.lt.s32.totalorder %s6782_s1, %s6782_s1 }
0x1385   : > { %p6784_p8 = pnand %p6783_p7, %p6735_p6  ;;  %p6791_p12 = por %p6790_p11, %p6789_p10 }
0x1387   : > { %p6785_p9 = pneg %p6784_p8 }
0x1389   : > { %p6792_p13 = pnand %p6791_p12, %p6785_p9 }
0x138b   : > { %6795 = shalt.err (!%p6792_p13)
}
0x138c   : > { %s6796_s8 = scalar_lea.hbm %s8223_s24, 64 }
0x138d   : > { %p6797_p0 = scmp.ne.s32.totalorder %s8223_s24, %s6796_s8  ;;  %p6802_p3 = scmp.lt.u32.totalorder %s6796_s8, %s8223_s24 }
0x138f   : > { %p6798_p1 = pnand %p6797_p0, %p6735_p6 }
0x1391   : > { %p6799_p2 = pneg %p6798_p1 }
0x1393   : > { %p6804_p4 = pnand %p6802_p3, %p6799_p2 }
0x1395   : > { %6807 = shalt.err (!%p6804_p4)
}
0x1396   : > { %s6863_s6 = smov 2   ;;  %s8264_s30 = smov 32  }
0x1397   : > { %6728 = dma.vmem_to_hbm [thread:$0]  (%p6735_p6), %s5302_s5, 64, %s8223_s24, [#allocation6], %s8264_s30, %s8264_s30, %s6863_s6  }
0x1398   : > { %s6864_s23 = smov [#allocation7]  }
0x1399   : > { %s5314_s3 = sshll.u32 %s6864_s23, 4  ;;  %s5315_s3 = int_to_ptr.vmem [resolvable:$true] %s5314_s3 }
0x139a   : > { %s6808_s4 = scalar_lea.vmem %s5315_s3, 64  ;;  %p6815_p9 = scmp.lt.s32.totalorder %s5315_s3, %s5315_s3 }
0x139b   : > { %p6809_p5 = scmp.ne.s32.totalorder %s5315_s3, %s6808_s4  ;;  %p6816_p10 = scmp.lt.s32.totalorder %s6808_s4, %s6808_s4 }
0x139d   : > { %p6810_p7 = pnand %p6809_p5, %p6735_p6  ;;  %p6817_p11 = por %p6816_p10, %p6815_p9 }
0x139f   : > { %p6811_p8 = pneg %p6810_p7 }
0x13a1   : > { %p6818_p12 = pnand %p6817_p11, %p6811_p8 }
0x13a3   : > { %6821 = shalt.err (!%p6818_p12)
}
0x13a4   : > { %s6822_s9 = scalar_lea.hbm %s8224_s25, 64 }
0x13a5   : > { %p6823_p13 = scmp.ne.s32.totalorder %s8224_s25, %s6822_s9  ;;  %p6828_p2 = scmp.lt.u32.totalorder %s6822_s9, %s8224_s25 }
0x13a7   : > { %p6824_p0 = pnand %p6823_p13, %p6735_p6 }
0x13a9   : > { %p6825_p1 = pneg %p6824_p0 }
0x13ab   : > { %p6830_p3 = pnand %p6828_p2, %p6825_p1 }
0x13ad   : > { %6833 = shalt.err (!%p6830_p3)
}
0x13ae   : > { %6730 = dma.vmem_to_hbm [thread:$0]  (%p6735_p6), %s5315_s3, 64, %s8224_s25, [#allocation8], %s8264_s30, %s8264_s30, %s6863_s6  }
0x13af   : > { %6839 = dma.done.wait (%p6735_p6), [#allocation6], 64  }
0x13b0   : > { %6841 = vsyncadd (%p6735_p6), [#allocation6], 4294967232 }
0x13b1   : > { %6843 = dma.done.wait (%p6735_p6), [#allocation8], 64  }
0x13b2   : > { %6845 = vsyncadd (%p6735_p6), [#allocation8], 4294967232 }
0x13b3 PF: > { %s38_s29 = sadd.s32 1, %s6848_s29  }
0x13b4   : > { %p35_p4 = scmp.ge.s32.totalorder %s38_s29, 6  }
0x13b6   :  { %37 = sbr.rel (!%p35_p4) target bundleno = 14 (0xe), region = 178 }
0x13bd   :  { %5341 = vsyncpa [#allocation6], 1 }
0x13be   :  { %5343 = vsyncpa [#allocation6 + $0x1], 1 }
0x13bf   :  { %5344 = vsyncpa [#allocation8], 1 }

</bundles_post_ra>
